<compile_context>
chip_gen: v6e
topology: v6e:2x2x1
jax: 0.10.0
libtpu: 0.0.40
codegen_flags: <defaults>
</compile_context>

<pallas_src>
import functools
import math

import jax
import jax.numpy as jnp
import numpy as np
from jax.experimental import pallas as pl
from jax.experimental.pallas import tpu as pltpu


# --------------------------------------------------------------------------
# Pallas kernel: one invocation computes BOTH directions (no grid).
# --------------------------------------------------------------------------
def gru_bidir_kernel(x_ref, lens_ref, w_i_ref, w_h_ref, b_gi_ref, b_hn_ref,
                     out_ref, *, T, B):
    """Shapes seen by the kernel:

    x_ref:    (T*B, D)      f32  time-major rows, forward order (bwd uses
                                 static reversed row offsets; no reversed copy)
    lens_ref: (B, 1)        i32  valid lengths
    w_i_ref:  (D, 6*Hp)     f32  [fwd | bwd] x [W_ir | W_iz | W_in] (H padded to Hp)
    w_h_ref:  (2, Hp, 3*Hp) bf16 per-direction [W_hr | W_hz | W_hn]
    b_gi_ref: (1, 6*Hp)     f32  [fwd | bwd] x [b_ir+b_hr | b_iz+b_hz | b_in]
    b_hn_ref: (2, 1, Hp)    f32  per-direction b_hn
    out_ref:  (2, T*B, Hp)  f32  masked hidden states, both directions, in
                                 ORIGINAL time order, lane-dense layout
    """
    Hp = out_ref.shape[-1]
    GW = 3 * Hp

    lens = lens_ref[...]                                  # (B, 1) int32
    # Packed-sequence validity masks, hoisted out of the recurrence
    # (one VPU compare per timestep, shared by both directions).
    valid = [lens > t for t in range(T)]                  # T x (B, 1) bool

    # Hoisted input projection: BOTH directions, all T timesteps, in ONE MXU
    # matmul (x-side biases and the fused r/z h-biases folded in).  This is off
    # the serial h-chain, so full f32 precision is kept here.
    gx = jnp.dot(x_ref[...], w_i_ref[...],
                 preferred_element_type=jnp.float32,
                 precision=jax.lax.Precision.HIGHEST) + b_gi_ref[...]  # (T*B, 6Hp)
    gx_f = gx[:, :GW]
    gx_b = gx[:, GW:]

    def step(h, gi, d, mb):
        # The only MXU op on the serial h->h dependence chain: a single bf16
        # pass (vs the old 6-pass f32 HIGHEST decomposition).  The weight load
        # stays inside the step so ~24 bf16 vregs of W_h are not pinned across
        # the fully unrolled loop (Mosaic schedules / CSEs the loads).
        gh = jnp.dot(h.astype(jnp.bfloat16), w_h_ref[d],
                     preferred_element_type=jnp.float32)               # (B, 3Hp)
        b_hn = b_hn_ref[d]                                             # (1, Hp)
        rz = jax.nn.sigmoid(gi[:, :2 * Hp] + gh[:, :2 * Hp])
        r, z = rz[:, :Hp], rz[:, Hp:]
        n = jnp.tanh(gi[:, 2 * Hp:] + r * (gh[:, 2 * Hp:] + b_hn))
        h_new = (1.0 - z) * n + z * h
        # pack_padded_sequence semantics: freeze h and zero the output when the
        # original time index is past this sequence's length.
        return jnp.where(mb, h_new, h), jnp.where(mb, h_new, 0.0)

    h_f = jnp.zeros((B, Hp), jnp.float32)
    h_b = jnp.zeros((B, Hp), jnp.float32)
    # Fully unrolled recurrence.  The fwd and bwd chains are independent, so
    # interleaving them in one body lets the scheduler overlap one direction's
    # EUP/VPU work with the other direction's MXU pass (the main win on
    # single-TensorCore v5e/v6e; on v7x this could instead be a CORE_PARALLEL
    # grid axis / core_map split).
    for s in range(T):
        t_b = T - 1 - s                                   # bwd walks reversed time
        h_f, o_f = step(h_f, gx_f[s * B:(s + 1) * B, :], 0, valid[s])
        h_b, o_b = step(h_b, gx_b[t_b * B:(t_b + 1) * B, :], 1, valid[t_b])
        # Lane-dense (full 128-lane) stores into a flattened (T*B, Hp) slab;
        # bwd rows go straight to their original time slots (no un-reverse).
        out_ref[0, s * B:(s + 1) * B, :] = o_f
        out_ref[1, t_b * B:(t_b + 1) * B, :] = o_b


# --------------------------------------------------------------------------
# Wrapper (matches PackedGRU.forward: batch-first x, per-sequence lengths)
# --------------------------------------------------------------------------
def packed_gru_forward(x, lengths, packed, total_length=300):
    """x: (B, T, in_dim) f32, lengths: (B,) int; returns (B, total_length, 2H)."""
    B, T, D = x.shape
    H, Hp = packed["H"], packed["Hp"]
    assert total_length >= T

    x_tm = jnp.transpose(x, (1, 0, 2)).reshape(T * B, D).astype(jnp.float32)
    lens2 = lengths.astype(jnp.int32).reshape(B, 1)

    kernel = functools.partial(gru_bidir_kernel, T=T, B=B)
    vmem = lambda: pl.BlockSpec(memory_space=pltpu.MemorySpace.VMEM)

    out = pl.pallas_call(
        kernel,
        out_shape=jax.ShapeDtypeStruct((2, T * B, Hp), jnp.float32),
        in_specs=[vmem() for _ in range(6)],
        out_specs=vmem(),
    )(x_tm, lens2, packed["w_i"], packed["w_h"], packed["b_gi"], packed["b_hn"])

    out4 = out.reshape(2, T, B, Hp)[..., :H]              # (2, T, B, H)
    res = jnp.concatenate([out4[0], out4[1]], axis=-1)    # (T, B, 2H)
    res = jnp.transpose(res, (1, 0, 2))                   # (B, T, 2H)
    # pad_packed_sequence(total_length=300): zero-pad the time axis.
    return jnp.pad(res, ((0, 0), (0, total_length - T), (0, 0)))


# --------------------------------------------------------------------------
# Parameter init (PyTorch nn.GRU layout) + packing into kernel operands
# --------------------------------------------------------------------------
def _init_dir_raw(key, in_dim, hid_dim):
    k = 1.0 / math.sqrt(hid_dim)
    k0, k1, k2, k3 = jax.random.split(key, 4)
    H = hid_dim
    return {
        "w_ih": jax.random.uniform(k0, (3 * H, in_dim), jnp.float32, -k, k),
        "w_hh": jax.random.uniform(k1, (3 * H, H), jnp.float32, -k, k),
        "b_ih": jax.random.uniform(k2, (3 * H,), jnp.float32, -k, k),
        "b_hh": jax.random.uniform(k3, (3 * H,), jnp.float32, -k, k),
    }


def init_packed_gru_params(key, in_dim, hid_dim):
    kf, kb = jax.random.split(key)
    return {"fwd": _init_dir_raw(kf, in_dim, hid_dim),
            "bwd": _init_dir_raw(kb, in_dim, hid_dim)}


def pack_gru_params(params, in_dim, hid_dim, lane=128):
    """Pack per-direction PyTorch-layout weights into kernel operands:
       W_i (D, 6Hp) f32, W_h (2, Hp, 3Hp) bf16, b_gi (1, 6Hp) f32, b_hn (2,1,Hp) f32."""
    H = hid_dim
    Hp = ((H + lane - 1) // lane) * lane

    def pack_dir(p):
        w_ih, w_hh, b_ih, b_hh = p["w_ih"], p["w_hh"], p["b_ih"], p["b_hh"]

        def pad_cols(w):   # (rows, H) -> (rows, Hp)
            return jnp.pad(w, ((0, 0), (0, Hp - H)))

        def pad_vec(b):    # (H,) -> (Hp,)
            return jnp.pad(b, (0, Hp - H))

        # PyTorch gate order in the stacked (3H, .) tensors: r, z, n.
        w_i = jnp.concatenate(
            [pad_cols(w_ih[g * H:(g + 1) * H].T) for g in range(3)], axis=1)  # (D, 3Hp)
        w_h = jnp.concatenate(
            [pad_cols(w_hh[g * H:(g + 1) * H].T) for g in range(3)], axis=1)
        w_h = jnp.pad(w_h, ((0, Hp - H), (0, 0)))                             # (Hp, 3Hp)
        b_gi = jnp.concatenate([pad_vec(b_ih[:H] + b_hh[:H]),                 # r: b_ir+b_hr
                                pad_vec(b_ih[H:2 * H] + b_hh[H:2 * H]),       # z: b_iz+b_hz
                                pad_vec(b_ih[2 * H:])])                       # n: b_in
        b_hn = pad_vec(b_hh[2 * H:])                                          # n: b_hn
        return w_i, w_h, b_gi, b_hn

    wi_f, wh_f, bg_f, bh_f = pack_dir(params["fwd"])
    wi_b, wh_b, bg_b, bh_b = pack_dir(params["bwd"])
    return {
        # Both directions' input projections fused along lanes -> one hoisted matmul.
        "w_i":  jnp.concatenate([wi_f, wi_b], axis=1),                 # (D, 6Hp)  f32
        "b_gi": jnp.concatenate([bg_f, bg_b]).reshape(1, 6 * Hp),      # (1, 6Hp)  f32
        # Recurrent weights in bf16: single MXU pass per step, half the vregs.
        "w_h":  jnp.stack([wh_f, wh_b]).astype(jnp.bfloat16),          # (2, Hp, 3Hp) bf16
        "b_hn": jnp.stack([bh_f, bh_b]).reshape(2, 1, Hp),             # (2, 1, Hp) f32
        "H": H, "Hp": Hp,
    }


# --------------------------------------------------------------------------
# Pure-JAX f32 reference (correctness check of the Pallas kernel)
# --------------------------------------------------------------------------
def _ref_direction(x, lengths, p, reverse):
    B, T, _ = x.shape
    H = p["w_hh"].shape[1]
    hi = jax.lax.Precision.HIGHEST
    w_ih, w_hh, b_ih, b_hh = p["w_ih"], p["w_hh"], p["b_ih"], p["b_hh"]
    w_ir, w_iz, w_in = w_ih[:H].T, w_ih[H:2 * H].T, w_ih[2 * H:].T
    w_hr, w_hz, w_hn = w_hh[:H].T, w_hh[H:2 * H].T, w_hh[2 * H:].T
    b_ir, b_iz, b_in = b_ih[:H], b_ih[H:2 * H], b_ih[2 * H:]
    b_hr, b_hz, b_hn = b_hh[:H], b_hh[H:2 * H], b_hh[2 * H:]
    mask = (jnp.arange(T)[None, :] < lengths[:, None]).astype(jnp.float32)

    def step(h, t):
        xt = x[:, t]
        m = mask[:, t][:, None]
        r = jax.nn.sigmoid(jnp.dot(xt, w_ir, precision=hi) + b_ir
                           + jnp.dot(h, w_hr, precision=hi) + b_hr)
        z = jax.nn.sigmoid(jnp.dot(xt, w_iz, precision=hi) + b_iz
                           + jnp.dot(h, w_hz, precision=hi) + b_hz)
        n = jnp.tanh(jnp.dot(xt, w_in, precision=hi) + b_in
                     + r * (jnp.dot(h, w_hn, precision=hi) + b_hn))
        h_new = (1.0 - z) * n + z * h
        return m * h_new + (1.0 - m) * h, m * h_new

    order = jnp.arange(T)[::-1] if reverse else jnp.arange(T)
    _, outs = jax.lax.scan(step, jnp.zeros((B, H), jnp.float32), order)
    if reverse:
        outs = outs[::-1]
    return jnp.transpose(outs, (1, 0, 2))


def packed_gru_ref(x, lengths, params, total_length=300):
    B, T, _ = x.shape
    f = _ref_direction(x, lengths, params["fwd"], reverse=False)
    b = _ref_direction(x, lengths, params["bwd"], reverse=True)
    out = jnp.concatenate([f, b], axis=-1)
    return jnp.pad(out, ((0, 0), (0, total_length - T), (0, 0)))


# --------------------------------------------------------------------------
if __name__ == "__main__":
    key = jax.random.PRNGKey(0)
    kx, kp = jax.random.split(key)

    B, T, IN_DIM, HID = 2, 8, 16, 32
    x = jax.random.normal(kx, (B, T, IN_DIM), jnp.float32)
    lengths = jnp.array([8, 5], dtype=jnp.int32)     # variable-length sequences
    params = init_packed_gru_params(kp, IN_DIM, HID)
    packed = pack_gru_params(params, IN_DIM, HID)

    out = packed_gru_forward(x, lengths, packed, total_length=300)
    out = jax.block_until_ready(out)

    assert out.shape == (B, 300, 2 * HID), out.shape
    assert bool(jnp.all(jnp.isfinite(out)))
    # padded region must be zero (beyond per-sequence length and beyond T)
    assert bool(jnp.all(out[:, T:, :] == 0.0))
    assert bool(jnp.all(out[1, 5:, :] == 0.0))

    # Tolerance is looser than before because the recurrent matmul now runs as
    # a single bf16 MXU pass (per perf feedback) against an exact-f32 reference.
    ref = jax.block_until_ready(packed_gru_ref(x, lengths, params, 300))
    np.testing.assert_allclose(np.asarray(out), np.asarray(ref),
                               rtol=2e-2, atol=2e-2)

    print("KERNEL_OK")
</pallas_src>

<mosaic_0001>
module attributes {stable_mosaic.version = 11 : i64} {
  func.func @gru_bidir_kernel(%arg0: memref<16x16xf32, #tpu.memory_space<vmem>>, %arg1: memref<2x1xi32, #tpu.memory_space<vmem>>, %arg2: memref<16x768xf32, #tpu.memory_space<vmem>>, %arg3: memref<2x128x384xbf16, #tpu.memory_space<vmem>>, %arg4: memref<1x768xf32, #tpu.memory_space<vmem>>, %arg5: memref<2x1x128xf32, #tpu.memory_space<vmem>>, %arg6: memref<2x16x128xf32, #tpu.memory_space<vmem>>) attributes {dimension_semantics = [], scalar_prefetch = 0 : i64, scratch_operands = 0 : i64, tpu.core_type = #tpu.core_type<tc>} {
    %c0 = arith.constant 0 : index
    %c0_0 = arith.constant 0 : index
    %0 = vector.load %arg1[%c0, %c0_0] : memref<2x1xi32, #tpu.memory_space<vmem>>, vector<2x1xi32>
    %c0_i32 = arith.constant 0 : i32
    %1 = vector.broadcast %c0_i32 : i32 to vector<2x1xi32>
    %2 = arith.cmpi sgt, %0, %1 : vector<2x1xi32>
    %c1_i32 = arith.constant 1 : i32
    %3 = vector.broadcast %c1_i32 : i32 to vector<2x1xi32>
    %4 = arith.cmpi sgt, %0, %3 : vector<2x1xi32>
    %c2_i32 = arith.constant 2 : i32
    %5 = vector.broadcast %c2_i32 : i32 to vector<2x1xi32>
    %6 = arith.cmpi sgt, %0, %5 : vector<2x1xi32>
    %c3_i32 = arith.constant 3 : i32
    %7 = vector.broadcast %c3_i32 : i32 to vector<2x1xi32>
    %8 = arith.cmpi sgt, %0, %7 : vector<2x1xi32>
    %c4_i32 = arith.constant 4 : i32
    %9 = vector.broadcast %c4_i32 : i32 to vector<2x1xi32>
    %10 = arith.cmpi sgt, %0, %9 : vector<2x1xi32>
    %c5_i32 = arith.constant 5 : i32
    %11 = vector.broadcast %c5_i32 : i32 to vector<2x1xi32>
    %12 = arith.cmpi sgt, %0, %11 : vector<2x1xi32>
    %c6_i32 = arith.constant 6 : i32
    %13 = vector.broadcast %c6_i32 : i32 to vector<2x1xi32>
    %14 = arith.cmpi sgt, %0, %13 : vector<2x1xi32>
    %c7_i32 = arith.constant 7 : i32
    %15 = vector.broadcast %c7_i32 : i32 to vector<2x1xi32>
    %16 = arith.cmpi sgt, %0, %15 : vector<2x1xi32>
    %c0_1 = arith.constant 0 : index
    %c0_2 = arith.constant 0 : index
    %17 = vector.load %arg0[%c0_1, %c0_2] : memref<16x16xf32, #tpu.memory_space<vmem>>, vector<16x16xf32>
    %c0_3 = arith.constant 0 : index
    %c0_4 = arith.constant 0 : index
    %18 = vector.load %arg2[%c0_3, %c0_4] : memref<16x768xf32, #tpu.memory_space<vmem>>, vector<16x768xf32>
    %cst = arith.constant dense<0.000000e+00> : vector<16x768xf32>
    %19 = tpu.matmul %17, %18, %cst {dimension_numbers = #tpu.dot_dimension_numbers<[1], [0], [0], [1], [0, 0, 1, 1], [], []>, precision = #tpu.contract_precision<fp32>} : vector<16x16xf32>, vector<16x768xf32>, vector<16x768xf32> -> vector<16x768xf32>
    %c0_5 = arith.constant 0 : index
    %c0_6 = arith.constant 0 : index
    %20 = vector.load %arg4[%c0_5, %c0_6] : memref<1x768xf32, #tpu.memory_space<vmem>>, vector<1x768xf32>
    %21 = vector.broadcast %20 : vector<1x768xf32> to vector<16x768xf32>
    %22 = arith.addf %19, %21 : vector<16x768xf32>
    %23 = vector.extract_strided_slice %22 {offsets = [0, 0], sizes = [16, 384], strides = [1, 1]} : vector<16x768xf32> to vector<16x384xf32>
    %24 = vector.extract_strided_slice %22 {offsets = [0, 384], sizes = [16, 384], strides = [1, 1]} : vector<16x768xf32> to vector<16x384xf32>
    %cst_7 = arith.constant 0.000000e+00 : f32
    %25 = vector.broadcast %cst_7 : f32 to vector<2x128xf32>
    %cst_8 = arith.constant 0.000000e+00 : f32
    %26 = vector.broadcast %cst_8 : f32 to vector<2x128xf32>
    %27 = vector.extract_strided_slice %23 {offsets = [0, 0], sizes = [2, 384], strides = [1, 1]} : vector<16x384xf32> to vector<2x384xf32>
    %28 = arith.truncf %25 : vector<2x128xf32> to vector<2x128xbf16>
    %c0_9 = arith.constant 0 : index
    %c0_10 = arith.constant 0 : index
    %c0_11 = arith.constant 0 : index
    %29 = vector.load %arg3[%c0_9, %c0_10, %c0_11] : memref<2x128x384xbf16, #tpu.memory_space<vmem>>, vector<1x128x384xbf16>
    %30 = vector.shape_cast %29 : vector<1x128x384xbf16> to vector<128x384xbf16>
    %cst_12 = arith.constant dense<0.000000e+00> : vector<2x384xf32>
    %31 = tpu.matmul %28, %30, %cst_12 {dimension_numbers = #tpu.dot_dimension_numbers<[1], [0], [0], [1], [0, 0, 1, 1], [], []>} : vector<2x128xbf16>, vector<128x384xbf16>, vector<2x384xf32> -> vector<2x384xf32>
    %c0_13 = arith.constant 0 : index
    %c0_14 = arith.constant 0 : index
    %c0_15 = arith.constant 0 : index
    %32 = vector.load %arg5[%c0_13, %c0_14, %c0_15] : memref<2x1x128xf32, #tpu.memory_space<vmem>>, vector<1x1x128xf32>
    %33 = vector.shape_cast %32 : vector<1x1x128xf32> to vector<1x128xf32>
    %34 = vector.extract_strided_slice %27 {offsets = [0, 0], sizes = [2, 256], strides = [1, 1]} : vector<2x384xf32> to vector<2x256xf32>
    %35 = vector.extract_strided_slice %31 {offsets = [0, 0], sizes = [2, 256], strides = [1, 1]} : vector<2x384xf32> to vector<2x256xf32>
    %36 = arith.addf %34, %35 : vector<2x256xf32>
    %37 = arith.negf %36 : vector<2x256xf32>
    %38 = math.exp %37 : vector<2x256xf32>
    %cst_16 = arith.constant 1.000000e+00 : f32
    %39 = vector.broadcast %cst_16 : f32 to vector<2x256xf32>
    %40 = arith.addf %39, %38 : vector<2x256xf32>
    %41 = arith.divf %39, %40 : vector<2x256xf32>
    %42 = vector.extract_strided_slice %41 {offsets = [0, 0], sizes = [2, 128], strides = [1, 1]} : vector<2x256xf32> to vector<2x128xf32>
    %43 = vector.extract_strided_slice %41 {offsets = [0, 128], sizes = [2, 128], strides = [1, 1]} : vector<2x256xf32> to vector<2x128xf32>
    %44 = vector.extract_strided_slice %27 {offsets = [0, 256], sizes = [2, 128], strides = [1, 1]} : vector<2x384xf32> to vector<2x128xf32>
    %45 = vector.extract_strided_slice %31 {offsets = [0, 256], sizes = [2, 128], strides = [1, 1]} : vector<2x384xf32> to vector<2x128xf32>
    %46 = vector.broadcast %33 : vector<1x128xf32> to vector<2x128xf32>
    %47 = arith.addf %45, %46 : vector<2x128xf32>
    %48 = arith.mulf %42, %47 : vector<2x128xf32>
    %49 = arith.addf %44, %48 : vector<2x128xf32>
    %50 = math.tanh %49 : vector<2x128xf32>
    %cst_17 = arith.constant 1.000000e+00 : f32
    %51 = vector.broadcast %cst_17 : f32 to vector<2x128xf32>
    %52 = arith.subf %51, %43 : vector<2x128xf32>
    %53 = arith.mulf %52, %50 : vector<2x128xf32>
    %54 = arith.mulf %43, %25 : vector<2x128xf32>
    %55 = arith.addf %53, %54 : vector<2x128xf32>
    %56 = vector.shape_cast %2 : vector<2x1xi1> to vector<2x1xi1>
    %57 = vector.broadcast %56 : vector<2x1xi1> to vector<2x128xi1>
    %58 = arith.select %57, %55, %25 : vector<2x128xi1>, vector<2x128xf32>
    %cst_18 = arith.constant 0.000000e+00 : f32
    %59 = vector.shape_cast %2 : vector<2x1xi1> to vector<2x1xi1>
    %60 = vector.broadcast %59 : vector<2x1xi1> to vector<2x128xi1>
    %61 = vector.broadcast %cst_18 : f32 to vector<2x128xf32>
    %62 = arith.select %60, %55, %61 : vector<2x128xi1>, vector<2x128xf32>
    %63 = vector.extract_strided_slice %24 {offsets = [14, 0], sizes = [2, 384], strides = [1, 1]} : vector<16x384xf32> to vector<2x384xf32>
    %64 = arith.truncf %26 : vector<2x128xf32> to vector<2x128xbf16>
    %c1 = arith.constant 1 : index
    %c0_19 = arith.constant 0 : index
    %c0_20 = arith.constant 0 : index
    %65 = vector.load %arg3[%c1, %c0_19, %c0_20] : memref<2x128x384xbf16, #tpu.memory_space<vmem>>, vector<1x128x384xbf16>
    %66 = vector.shape_cast %65 : vector<1x128x384xbf16> to vector<128x384xbf16>
    %cst_21 = arith.constant dense<0.000000e+00> : vector<2x384xf32>
    %67 = tpu.matmul %64, %66, %cst_21 {dimension_numbers = #tpu.dot_dimension_numbers<[1], [0], [0], [1], [0, 0, 1, 1], [], []>} : vector<2x128xbf16>, vector<128x384xbf16>, vector<2x384xf32> -> vector<2x384xf32>
    %c1_22 = arith.constant 1 : index
    %c0_23 = arith.constant 0 : index
    %c0_24 = arith.constant 0 : index
    %68 = vector.load %arg5[%c1_22, %c0_23, %c0_24] : memref<2x1x128xf32, #tpu.memory_space<vmem>>, vector<1x1x128xf32>
    %69 = vector.shape_cast %68 : vector<1x1x128xf32> to vector<1x128xf32>
    %70 = vector.extract_strided_slice %63 {offsets = [0, 0], sizes = [2, 256], strides = [1, 1]} : vector<2x384xf32> to vector<2x256xf32>
    %71 = vector.extract_strided_slice %67 {offsets = [0, 0], sizes = [2, 256], strides = [1, 1]} : vector<2x384xf32> to vector<2x256xf32>
    %72 = arith.addf %70, %71 : vector<2x256xf32>
    %73 = arith.negf %72 : vector<2x256xf32>
    %74 = math.exp %73 : vector<2x256xf32>
    %cst_25 = arith.constant 1.000000e+00 : f32
    %75 = vector.broadcast %cst_25 : f32 to vector<2x256xf32>
    %76 = arith.addf %75, %74 : vector<2x256xf32>
    %77 = arith.divf %75, %76 : vector<2x256xf32>
    %78 = vector.extract_strided_slice %77 {offsets = [0, 0], sizes = [2, 128], strides = [1, 1]} : vector<2x256xf32> to vector<2x128xf32>
    %79 = vector.extract_strided_slice %77 {offsets = [0, 128], sizes = [2, 128], strides = [1, 1]} : vector<2x256xf32> to vector<2x128xf32>
    %80 = vector.extract_strided_slice %63 {offsets = [0, 256], sizes = [2, 128], strides = [1, 1]} : vector<2x384xf32> to vector<2x128xf32>
    %81 = vector.extract_strided_slice %67 {offsets = [0, 256], sizes = [2, 128], strides = [1, 1]} : vector<2x384xf32> to vector<2x128xf32>
    %82 = vector.broadcast %69 : vector<1x128xf32> to vector<2x128xf32>
    %83 = arith.addf %81, %82 : vector<2x128xf32>
    %84 = arith.mulf %78, %83 : vector<2x128xf32>
    %85 = arith.addf %80, %84 : vector<2x128xf32>
    %86 = math.tanh %85 : vector<2x128xf32>
    %cst_26 = arith.constant 1.000000e+00 : f32
    %87 = vector.broadcast %cst_26 : f32 to vector<2x128xf32>
    %88 = arith.subf %87, %79 : vector<2x128xf32>
    %89 = arith.mulf %88, %86 : vector<2x128xf32>
    %90 = arith.mulf %79, %26 : vector<2x128xf32>
    %91 = arith.addf %89, %90 : vector<2x128xf32>
    %92 = vector.shape_cast %16 : vector<2x1xi1> to vector<2x1xi1>
    %93 = vector.broadcast %92 : vector<2x1xi1> to vector<2x128xi1>
    %94 = arith.select %93, %91, %26 : vector<2x128xi1>, vector<2x128xf32>
    %cst_27 = arith.constant 0.000000e+00 : f32
    %95 = vector.shape_cast %16 : vector<2x1xi1> to vector<2x1xi1>
    %96 = vector.broadcast %95 : vector<2x1xi1> to vector<2x128xi1>
    %97 = vector.broadcast %cst_27 : f32 to vector<2x128xf32>
    %98 = arith.select %96, %91, %97 : vector<2x128xi1>, vector<2x128xf32>
    %c0_28 = arith.constant 0 : index
    %c0_29 = arith.constant 0 : index
    %c0_30 = arith.constant 0 : index
    %99 = vector.load %arg6[%c0_28, %c0_29, %c0_30] : memref<2x16x128xf32, #tpu.memory_space<vmem>>, vector<1x2x128xf32>
    %100 = vector.shape_cast %99 : vector<1x2x128xf32> to vector<2x128xf32>
    %101 = vector.shape_cast %62 : vector<2x128xf32> to vector<1x2x128xf32>
    tpu.vector_store %arg6[%c0_28, %c0_29, %c0_30], %101 {strides = array<i32>} : memref<2x16x128xf32, #tpu.memory_space<vmem>>, vector<1x2x128xf32>,
    %c1_31 = arith.constant 1 : index
    %c14 = arith.constant 14 : index
    %c0_32 = arith.constant 0 : index
    %102 = vector.load %arg6[%c1_31, %c14, %c0_32] : memref<2x16x128xf32, #tpu.memory_space<vmem>>, vector<1x2x128xf32>
    %103 = vector.shape_cast %102 : vector<1x2x128xf32> to vector<2x128xf32>
    %104 = vector.shape_cast %98 : vector<2x128xf32> to vector<1x2x128xf32>
    tpu.vector_store %arg6[%c1_31, %c14, %c0_32], %104 {strides = array<i32>} : memref<2x16x128xf32, #tpu.memory_space<vmem>>, vector<1x2x128xf32>,
    %105 = vector.extract_strided_slice %23 {offsets = [2, 0], sizes = [2, 384], strides = [1, 1]} : vector<16x384xf32> to vector<2x384xf32>
    %106 = arith.truncf %58 : vector<2x128xf32> to vector<2x128xbf16>
    %c0_33 = arith.constant 0 : index
    %c0_34 = arith.constant 0 : index
    %c0_35 = arith.constant 0 : index
    %107 = vector.load %arg3[%c0_33, %c0_34, %c0_35] : memref<2x128x384xbf16, #tpu.memory_space<vmem>>, vector<1x128x384xbf16>
    %108 = vector.shape_cast %107 : vector<1x128x384xbf16> to vector<128x384xbf16>
    %cst_36 = arith.constant dense<0.000000e+00> : vector<2x384xf32>
    %109 = tpu.matmul %106, %108, %cst_36 {dimension_numbers = #tpu.dot_dimension_numbers<[1], [0], [0], [1], [0, 0, 1, 1], [], []>} : vector<2x128xbf16>, vector<128x384xbf16>, vector<2x384xf32> -> vector<2x384xf32>
    %c0_37 = arith.constant 0 : index
    %c0_38 = arith.constant 0 : index
    %c0_39 = arith.constant 0 : index
    %110 = vector.load %arg5[%c0_37, %c0_38, %c0_39] : memref<2x1x128xf32, #tpu.memory_space<vmem>>, vector<1x1x128xf32>
    %111 = vector.shape_cast %110 : vector<1x1x128xf32> to vector<1x128xf32>
    %112 = vector.extract_strided_slice %105 {offsets = [0, 0], sizes = [2, 256], strides = [1, 1]} : vector<2x384xf32> to vector<2x256xf32>
    %113 = vector.extract_strided_slice %109 {offsets = [0, 0], sizes = [2, 256], strides = [1, 1]} : vector<2x384xf32> to vector<2x256xf32>
    %114 = arith.addf %112, %113 : vector<2x256xf32>
    %115 = arith.negf %114 : vector<2x256xf32>
    %116 = math.exp %115 : vector<2x256xf32>
    %cst_40 = arith.constant 1.000000e+00 : f32
    %117 = vector.broadcast %cst_40 : f32 to vector<2x256xf32>
    %118 = arith.addf %117, %116 : vector<2x256xf32>
    %119 = arith.divf %117, %118 : vector<2x256xf32>
    %120 = vector.extract_strided_slice %119 {offsets = [0, 0], sizes = [2, 128], strides = [1, 1]} : vector<2x256xf32> to vector<2x128xf32>
    %121 = vector.extract_strided_slice %119 {offsets = [0, 128], sizes = [2, 128], strides = [1, 1]} : vector<2x256xf32> to vector<2x128xf32>
    %122 = vector.extract_strided_slice %105 {offsets = [0, 256], sizes = [2, 128], strides = [1, 1]} : vector<2x384xf32> to vector<2x128xf32>
    %123 = vector.extract_strided_slice %109 {offsets = [0, 256], sizes = [2, 128], strides = [1, 1]} : vector<2x384xf32> to vector<2x128xf32>
    %124 = vector.broadcast %111 : vector<1x128xf32> to vector<2x128xf32>
    %125 = arith.addf %123, %124 : vector<2x128xf32>
    %126 = arith.mulf %120, %125 : vector<2x128xf32>
    %127 = arith.addf %122, %126 : vector<2x128xf32>
    %128 = math.tanh %127 : vector<2x128xf32>
    %cst_41 = arith.constant 1.000000e+00 : f32
    %129 = vector.broadcast %cst_41 : f32 to vector<2x128xf32>
    %130 = arith.subf %129, %121 : vector<2x128xf32>
    %131 = arith.mulf %130, %128 : vector<2x128xf32>
    %132 = arith.mulf %121, %58 : vector<2x128xf32>
    %133 = arith.addf %131, %132 : vector<2x128xf32>
    %134 = vector.shape_cast %4 : vector<2x1xi1> to vector<2x1xi1>
    %135 = vector.broadcast %134 : vector<2x1xi1> to vector<2x128xi1>
    %136 = arith.select %135, %133, %58 : vector<2x128xi1>, vector<2x128xf32>
    %cst_42 = arith.constant 0.000000e+00 : f32
    %137 = vector.shape_cast %4 : vector<2x1xi1> to vector<2x1xi1>
    %138 = vector.broadcast %137 : vector<2x1xi1> to vector<2x128xi1>
    %139 = vector.broadcast %cst_42 : f32 to vector<2x128xf32>
    %140 = arith.select %138, %133, %139 : vector<2x128xi1>, vector<2x128xf32>
    %141 = vector.extract_strided_slice %24 {offsets = [12, 0], sizes = [2, 384], strides = [1, 1]} : vector<16x384xf32> to vector<2x384xf32>
    %142 = arith.truncf %94 : vector<2x128xf32> to vector<2x128xbf16>
    %c1_43 = arith.constant 1 : index
    %c0_44 = arith.constant 0 : index
    %c0_45 = arith.constant 0 : index
    %143 = vector.load %arg3[%c1_43, %c0_44, %c0_45] : memref<2x128x384xbf16, #tpu.memory_space<vmem>>, vector<1x128x384xbf16>
    %144 = vector.shape_cast %143 : vector<1x128x384xbf16> to vector<128x384xbf16>
    %cst_46 = arith.constant dense<0.000000e+00> : vector<2x384xf32>
    %145 = tpu.matmul %142, %144, %cst_46 {dimension_numbers = #tpu.dot_dimension_numbers<[1], [0], [0], [1], [0, 0, 1, 1], [], []>} : vector<2x128xbf16>, vector<128x384xbf16>, vector<2x384xf32> -> vector<2x384xf32>
    %c1_47 = arith.constant 1 : index
    %c0_48 = arith.constant 0 : index
    %c0_49 = arith.constant 0 : index
    %146 = vector.load %arg5[%c1_47, %c0_48, %c0_49] : memref<2x1x128xf32, #tpu.memory_space<vmem>>, vector<1x1x128xf32>
    %147 = vector.shape_cast %146 : vector<1x1x128xf32> to vector<1x128xf32>
    %148 = vector.extract_strided_slice %141 {offsets = [0, 0], sizes = [2, 256], strides = [1, 1]} : vector<2x384xf32> to vector<2x256xf32>
    %149 = vector.extract_strided_slice %145 {offsets = [0, 0], sizes = [2, 256], strides = [1, 1]} : vector<2x384xf32> to vector<2x256xf32>
    %150 = arith.addf %148, %149 : vector<2x256xf32>
    %151 = arith.negf %150 : vector<2x256xf32>
    %152 = math.exp %151 : vector<2x256xf32>
    %cst_50 = arith.constant 1.000000e+00 : f32
    %153 = vector.broadcast %cst_50 : f32 to vector<2x256xf32>
    %154 = arith.addf %153, %152 : vector<2x256xf32>
    %155 = arith.divf %153, %154 : vector<2x256xf32>
    %156 = vector.extract_strided_slice %155 {offsets = [0, 0], sizes = [2, 128], strides = [1, 1]} : vector<2x256xf32> to vector<2x128xf32>
    %157 = vector.extract_strided_slice %155 {offsets = [0, 128], sizes = [2, 128], strides = [1, 1]} : vector<2x256xf32> to vector<2x128xf32>
    %158 = vector.extract_strided_slice %141 {offsets = [0, 256], sizes = [2, 128], strides = [1, 1]} : vector<2x384xf32> to vector<2x128xf32>
    %159 = vector.extract_strided_slice %145 {offsets = [0, 256], sizes = [2, 128], strides = [1, 1]} : vector<2x384xf32> to vector<2x128xf32>
    %160 = vector.broadcast %147 : vector<1x128xf32> to vector<2x128xf32>
    %161 = arith.addf %159, %160 : vector<2x128xf32>
    %162 = arith.mulf %156, %161 : vector<2x128xf32>
    %163 = arith.addf %158, %162 : vector<2x128xf32>
    %164 = math.tanh %163 : vector<2x128xf32>
    %cst_51 = arith.constant 1.000000e+00 : f32
    %165 = vector.broadcast %cst_51 : f32 to vector<2x128xf32>
    %166 = arith.subf %165, %157 : vector<2x128xf32>
    %167 = arith.mulf %166, %164 : vector<2x128xf32>
    %168 = arith.mulf %157, %94 : vector<2x128xf32>
    %169 = arith.addf %167, %168 : vector<2x128xf32>
    %170 = vector.shape_cast %14 : vector<2x1xi1> to vector<2x1xi1>
    %171 = vector.broadcast %170 : vector<2x1xi1> to vector<2x128xi1>
    %172 = arith.select %171, %169, %94 : vector<2x128xi1>, vector<2x128xf32>
    %cst_52 = arith.constant 0.000000e+00 : f32
    %173 = vector.shape_cast %14 : vector<2x1xi1> to vector<2x1xi1>
    %174 = vector.broadcast %173 : vector<2x1xi1> to vector<2x128xi1>
    %175 = vector.broadcast %cst_52 : f32 to vector<2x128xf32>
    %176 = arith.select %174, %169, %175 : vector<2x128xi1>, vector<2x128xf32>
    %c0_53 = arith.constant 0 : index
    %c2 = arith.constant 2 : index
    %c0_54 = arith.constant 0 : index
    %177 = vector.load %arg6[%c0_53, %c2, %c0_54] : memref<2x16x128xf32, #tpu.memory_space<vmem>>, vector<1x2x128xf32>
    %178 = vector.shape_cast %177 : vector<1x2x128xf32> to vector<2x128xf32>
    %179 = vector.shape_cast %140 : vector<2x128xf32> to vector<1x2x128xf32>
    tpu.vector_store %arg6[%c0_53, %c2, %c0_54], %179 {strides = array<i32>} : memref<2x16x128xf32, #tpu.memory_space<vmem>>, vector<1x2x128xf32>,
    %c1_55 = arith.constant 1 : index
    %c12 = arith.constant 12 : index
    %c0_56 = arith.constant 0 : index
    %180 = vector.load %arg6[%c1_55, %c12, %c0_56] : memref<2x16x128xf32, #tpu.memory_space<vmem>>, vector<1x2x128xf32>
    %181 = vector.shape_cast %180 : vector<1x2x128xf32> to vector<2x128xf32>
    %182 = vector.shape_cast %176 : vector<2x128xf32> to vector<1x2x128xf32>
    tpu.vector_store %arg6[%c1_55, %c12, %c0_56], %182 {strides = array<i32>} : memref<2x16x128xf32, #tpu.memory_space<vmem>>, vector<1x2x128xf32>,
    %183 = vector.extract_strided_slice %23 {offsets = [4, 0], sizes = [2, 384], strides = [1, 1]} : vector<16x384xf32> to vector<2x384xf32>
    %184 = arith.truncf %136 : vector<2x128xf32> to vector<2x128xbf16>
    %c0_57 = arith.constant 0 : index
    %c0_58 = arith.constant 0 : index
    %c0_59 = arith.constant 0 : index
    %185 = vector.load %arg3[%c0_57, %c0_58, %c0_59] : memref<2x128x384xbf16, #tpu.memory_space<vmem>>, vector<1x128x384xbf16>
    %186 = vector.shape_cast %185 : vector<1x128x384xbf16> to vector<128x384xbf16>
    %cst_60 = arith.constant dense<0.000000e+00> : vector<2x384xf32>
    %187 = tpu.matmul %184, %186, %cst_60 {dimension_numbers = #tpu.dot_dimension_numbers<[1], [0], [0], [1], [0, 0, 1, 1], [], []>} : vector<2x128xbf16>, vector<128x384xbf16>, vector<2x384xf32> -> vector<2x384xf32>
    %c0_61 = arith.constant 0 : index
    %c0_62 = arith.constant 0 : index
    %c0_63 = arith.constant 0 : index
    %188 = vector.load %arg5[%c0_61, %c0_62, %c0_63] : memref<2x1x128xf32, #tpu.memory_space<vmem>>, vector<1x1x128xf32>
    %189 = vector.shape_cast %188 : vector<1x1x128xf32> to vector<1x128xf32>
    %190 = vector.extract_strided_slice %183 {offsets = [0, 0], sizes = [2, 256], strides = [1, 1]} : vector<2x384xf32> to vector<2x256xf32>
    %191 = vector.extract_strided_slice %187 {offsets = [0, 0], sizes = [2, 256], strides = [1, 1]} : vector<2x384xf32> to vector<2x256xf32>
    %192 = arith.addf %190, %191 : vector<2x256xf32>
    %193 = arith.negf %192 : vector<2x256xf32>
    %194 = math.exp %193 : vector<2x256xf32>
    %cst_64 = arith.constant 1.000000e+00 : f32
    %195 = vector.broadcast %cst_64 : f32 to vector<2x256xf32>
    %196 = arith.addf %195, %194 : vector<2x256xf32>
    %197 = arith.divf %195, %196 : vector<2x256xf32>
    %198 = vector.extract_strided_slice %197 {offsets = [0, 0], sizes = [2, 128], strides = [1, 1]} : vector<2x256xf32> to vector<2x128xf32>
    %199 = vector.extract_strided_slice %197 {offsets = [0, 128], sizes = [2, 128], strides = [1, 1]} : vector<2x256xf32> to vector<2x128xf32>
    %200 = vector.extract_strided_slice %183 {offsets = [0, 256], sizes = [2, 128], strides = [1, 1]} : vector<2x384xf32> to vector<2x128xf32>
    %201 = vector.extract_strided_slice %187 {offsets = [0, 256], sizes = [2, 128], strides = [1, 1]} : vector<2x384xf32> to vector<2x128xf32>
    %202 = vector.broadcast %189 : vector<1x128xf32> to vector<2x128xf32>
    %203 = arith.addf %201, %202 : vector<2x128xf32>
    %204 = arith.mulf %198, %203 : vector<2x128xf32>
    %205 = arith.addf %200, %204 : vector<2x128xf32>
    %206 = math.tanh %205 : vector<2x128xf32>
    %cst_65 = arith.constant 1.000000e+00 : f32
    %207 = vector.broadcast %cst_65 : f32 to vector<2x128xf32>
    %208 = arith.subf %207, %199 : vector<2x128xf32>
    %209 = arith.mulf %208, %206 : vector<2x128xf32>
    %210 = arith.mulf %199, %136 : vector<2x128xf32>
    %211 = arith.addf %209, %210 : vector<2x128xf32>
    %212 = vector.shape_cast %6 : vector<2x1xi1> to vector<2x1xi1>
    %213 = vector.broadcast %212 : vector<2x1xi1> to vector<2x128xi1>
    %214 = arith.select %213, %211, %136 : vector<2x128xi1>, vector<2x128xf32>
    %cst_66 = arith.constant 0.000000e+00 : f32
    %215 = vector.shape_cast %6 : vector<2x1xi1> to vector<2x1xi1>
    %216 = vector.broadcast %215 : vector<2x1xi1> to vector<2x128xi1>
    %217 = vector.broadcast %cst_66 : f32 to vector<2x128xf32>
    %218 = arith.select %216, %211, %217 : vector<2x128xi1>, vector<2x128xf32>
    %219 = vector.extract_strided_slice %24 {offsets = [10, 0], sizes = [2, 384], strides = [1, 1]} : vector<16x384xf32> to vector<2x384xf32>
    %220 = arith.truncf %172 : vector<2x128xf32> to vector<2x128xbf16>
    %c1_67 = arith.constant 1 : index
    %c0_68 = arith.constant 0 : index
    %c0_69 = arith.constant 0 : index
    %221 = vector.load %arg3[%c1_67, %c0_68, %c0_69] : memref<2x128x384xbf16, #tpu.memory_space<vmem>>, vector<1x128x384xbf16>
    %222 = vector.shape_cast %221 : vector<1x128x384xbf16> to vector<128x384xbf16>
    %cst_70 = arith.constant dense<0.000000e+00> : vector<2x384xf32>
    %223 = tpu.matmul %220, %222, %cst_70 {dimension_numbers = #tpu.dot_dimension_numbers<[1], [0], [0], [1], [0, 0, 1, 1], [], []>} : vector<2x128xbf16>, vector<128x384xbf16>, vector<2x384xf32> -> vector<2x384xf32>
    %c1_71 = arith.constant 1 : index
    %c0_72 = arith.constant 0 : index
    %c0_73 = arith.constant 0 : index
    %224 = vector.load %arg5[%c1_71, %c0_72, %c0_73] : memref<2x1x128xf32, #tpu.memory_space<vmem>>, vector<1x1x128xf32>
    %225 = vector.shape_cast %224 : vector<1x1x128xf32> to vector<1x128xf32>
    %226 = vector.extract_strided_slice %219 {offsets = [0, 0], sizes = [2, 256], strides = [1, 1]} : vector<2x384xf32> to vector<2x256xf32>
    %227 = vector.extract_strided_slice %223 {offsets = [0, 0], sizes = [2, 256], strides = [1, 1]} : vector<2x384xf32> to vector<2x256xf32>
    %228 = arith.addf %226, %227 : vector<2x256xf32>
    %229 = arith.negf %228 : vector<2x256xf32>
    %230 = math.exp %229 : vector<2x256xf32>
    %cst_74 = arith.constant 1.000000e+00 : f32
    %231 = vector.broadcast %cst_74 : f32 to vector<2x256xf32>
    %232 = arith.addf %231, %230 : vector<2x256xf32>
    %233 = arith.divf %231, %232 : vector<2x256xf32>
    %234 = vector.extract_strided_slice %233 {offsets = [0, 0], sizes = [2, 128], strides = [1, 1]} : vector<2x256xf32> to vector<2x128xf32>
    %235 = vector.extract_strided_slice %233 {offsets = [0, 128], sizes = [2, 128], strides = [1, 1]} : vector<2x256xf32> to vector<2x128xf32>
    %236 = vector.extract_strided_slice %219 {offsets = [0, 256], sizes = [2, 128], strides = [1, 1]} : vector<2x384xf32> to vector<2x128xf32>
    %237 = vector.extract_strided_slice %223 {offsets = [0, 256], sizes = [2, 128], strides = [1, 1]} : vector<2x384xf32> to vector<2x128xf32>
    %238 = vector.broadcast %225 : vector<1x128xf32> to vector<2x128xf32>
    %239 = arith.addf %237, %238 : vector<2x128xf32>
    %240 = arith.mulf %234, %239 : vector<2x128xf32>
    %241 = arith.addf %236, %240 : vector<2x128xf32>
    %242 = math.tanh %241 : vector<2x128xf32>
    %cst_75 = arith.constant 1.000000e+00 : f32
    %243 = vector.broadcast %cst_75 : f32 to vector<2x128xf32>
    %244 = arith.subf %243, %235 : vector<2x128xf32>
    %245 = arith.mulf %244, %242 : vector<2x128xf32>
    %246 = arith.mulf %235, %172 : vector<2x128xf32>
    %247 = arith.addf %245, %246 : vector<2x128xf32>
    %248 = vector.shape_cast %12 : vector<2x1xi1> to vector<2x1xi1>
    %249 = vector.broadcast %248 : vector<2x1xi1> to vector<2x128xi1>
    %250 = arith.select %249, %247, %172 : vector<2x128xi1>, vector<2x128xf32>
    %cst_76 = arith.constant 0.000000e+00 : f32
    %251 = vector.shape_cast %12 : vector<2x1xi1> to vector<2x1xi1>
    %252 = vector.broadcast %251 : vector<2x1xi1> to vector<2x128xi1>
    %253 = vector.broadcast %cst_76 : f32 to vector<2x128xf32>
    %254 = arith.select %252, %247, %253 : vector<2x128xi1>, vector<2x128xf32>
    %c0_77 = arith.constant 0 : index
    %c4 = arith.constant 4 : index
    %c0_78 = arith.constant 0 : index
    %255 = vector.load %arg6[%c0_77, %c4, %c0_78] : memref<2x16x128xf32, #tpu.memory_space<vmem>>, vector<1x2x128xf32>
    %256 = vector.shape_cast %255 : vector<1x2x128xf32> to vector<2x128xf32>
    %257 = vector.shape_cast %218 : vector<2x128xf32> to vector<1x2x128xf32>
    tpu.vector_store %arg6[%c0_77, %c4, %c0_78], %257 {strides = array<i32>} : memref<2x16x128xf32, #tpu.memory_space<vmem>>, vector<1x2x128xf32>,
    %c1_79 = arith.constant 1 : index
    %c10 = arith.constant 10 : index
    %c0_80 = arith.constant 0 : index
    %258 = vector.load %arg6[%c1_79, %c10, %c0_80] : memref<2x16x128xf32, #tpu.memory_space<vmem>>, vector<1x2x128xf32>
    %259 = vector.shape_cast %258 : vector<1x2x128xf32> to vector<2x128xf32>
    %260 = vector.shape_cast %254 : vector<2x128xf32> to vector<1x2x128xf32>
    tpu.vector_store %arg6[%c1_79, %c10, %c0_80], %260 {strides = array<i32>} : memref<2x16x128xf32, #tpu.memory_space<vmem>>, vector<1x2x128xf32>,
    %261 = vector.extract_strided_slice %23 {offsets = [6, 0], sizes = [2, 384], strides = [1, 1]} : vector<16x384xf32> to vector<2x384xf32>
    %262 = arith.truncf %214 : vector<2x128xf32> to vector<2x128xbf16>
    %c0_81 = arith.constant 0 : index
    %c0_82 = arith.constant 0 : index
    %c0_83 = arith.constant 0 : index
    %263 = vector.load %arg3[%c0_81, %c0_82, %c0_83] : memref<2x128x384xbf16, #tpu.memory_space<vmem>>, vector<1x128x384xbf16>
    %264 = vector.shape_cast %263 : vector<1x128x384xbf16> to vector<128x384xbf16>
    %cst_84 = arith.constant dense<0.000000e+00> : vector<2x384xf32>
    %265 = tpu.matmul %262, %264, %cst_84 {dimension_numbers = #tpu.dot_dimension_numbers<[1], [0], [0], [1], [0, 0, 1, 1], [], []>} : vector<2x128xbf16>, vector<128x384xbf16>, vector<2x384xf32> -> vector<2x384xf32>
    %c0_85 = arith.constant 0 : index
    %c0_86 = arith.constant 0 : index
    %c0_87 = arith.constant 0 : index
    %266 = vector.load %arg5[%c0_85, %c0_86, %c0_87] : memref<2x1x128xf32, #tpu.memory_space<vmem>>, vector<1x1x128xf32>
    %267 = vector.shape_cast %266 : vector<1x1x128xf32> to vector<1x128xf32>
    %268 = vector.extract_strided_slice %261 {offsets = [0, 0], sizes = [2, 256], strides = [1, 1]} : vector<2x384xf32> to vector<2x256xf32>
    %269 = vector.extract_strided_slice %265 {offsets = [0, 0], sizes = [2, 256], strides = [1, 1]} : vector<2x384xf32> to vector<2x256xf32>
    %270 = arith.addf %268, %269 : vector<2x256xf32>
    %271 = arith.negf %270 : vector<2x256xf32>
    %272 = math.exp %271 : vector<2x256xf32>
    %cst_88 = arith.constant 1.000000e+00 : f32
    %273 = vector.broadcast %cst_88 : f32 to vector<2x256xf32>
    %274 = arith.addf %273, %272 : vector<2x256xf32>
    %275 = arith.divf %273, %274 : vector<2x256xf32>
    %276 = vector.extract_strided_slice %275 {offsets = [0, 0], sizes = [2, 128], strides = [1, 1]} : vector<2x256xf32> to vector<2x128xf32>
    %277 = vector.extract_strided_slice %275 {offsets = [0, 128], sizes = [2, 128], strides = [1, 1]} : vector<2x256xf32> to vector<2x128xf32>
    %278 = vector.extract_strided_slice %261 {offsets = [0, 256], sizes = [2, 128], strides = [1, 1]} : vector<2x384xf32> to vector<2x128xf32>
    %279 = vector.extract_strided_slice %265 {offsets = [0, 256], sizes = [2, 128], strides = [1, 1]} : vector<2x384xf32> to vector<2x128xf32>
    %280 = vector.broadcast %267 : vector<1x128xf32> to vector<2x128xf32>
    %281 = arith.addf %279, %280 : vector<2x128xf32>
    %282 = arith.mulf %276, %281 : vector<2x128xf32>
    %283 = arith.addf %278, %282 : vector<2x128xf32>
    %284 = math.tanh %283 : vector<2x128xf32>
    %cst_89 = arith.constant 1.000000e+00 : f32
    %285 = vector.broadcast %cst_89 : f32 to vector<2x128xf32>
    %286 = arith.subf %285, %277 : vector<2x128xf32>
    %287 = arith.mulf %286, %284 : vector<2x128xf32>
    %288 = arith.mulf %277, %214 : vector<2x128xf32>
    %289 = arith.addf %287, %288 : vector<2x128xf32>
    %290 = vector.shape_cast %8 : vector<2x1xi1> to vector<2x1xi1>
    %291 = vector.broadcast %290 : vector<2x1xi1> to vector<2x128xi1>
    %292 = arith.select %291, %289, %214 : vector<2x128xi1>, vector<2x128xf32>
    %cst_90 = arith.constant 0.000000e+00 : f32
    %293 = vector.shape_cast %8 : vector<2x1xi1> to vector<2x1xi1>
    %294 = vector.broadcast %293 : vector<2x1xi1> to vector<2x128xi1>
    %295 = vector.broadcast %cst_90 : f32 to vector<2x128xf32>
    %296 = arith.select %294, %289, %295 : vector<2x128xi1>, vector<2x128xf32>
    %297 = vector.extract_strided_slice %24 {offsets = [8, 0], sizes = [2, 384], strides = [1, 1]} : vector<16x384xf32> to vector<2x384xf32>
    %298 = arith.truncf %250 : vector<2x128xf32> to vector<2x128xbf16>
    %c1_91 = arith.constant 1 : index
    %c0_92 = arith.constant 0 : index
    %c0_93 = arith.constant 0 : index
    %299 = vector.load %arg3[%c1_91, %c0_92, %c0_93] : memref<2x128x384xbf16, #tpu.memory_space<vmem>>, vector<1x128x384xbf16>
    %300 = vector.shape_cast %299 : vector<1x128x384xbf16> to vector<128x384xbf16>
    %cst_94 = arith.constant dense<0.000000e+00> : vector<2x384xf32>
    %301 = tpu.matmul %298, %300, %cst_94 {dimension_numbers = #tpu.dot_dimension_numbers<[1], [0], [0], [1], [0, 0, 1, 1], [], []>} : vector<2x128xbf16>, vector<128x384xbf16>, vector<2x384xf32> -> vector<2x384xf32>
    %c1_95 = arith.constant 1 : index
    %c0_96 = arith.constant 0 : index
    %c0_97 = arith.constant 0 : index
    %302 = vector.load %arg5[%c1_95, %c0_96, %c0_97] : memref<2x1x128xf32, #tpu.memory_space<vmem>>, vector<1x1x128xf32>
    %303 = vector.shape_cast %302 : vector<1x1x128xf32> to vector<1x128xf32>
    %304 = vector.extract_strided_slice %297 {offsets = [0, 0], sizes = [2, 256], strides = [1, 1]} : vector<2x384xf32> to vector<2x256xf32>
    %305 = vector.extract_strided_slice %301 {offsets = [0, 0], sizes = [2, 256], strides = [1, 1]} : vector<2x384xf32> to vector<2x256xf32>
    %306 = arith.addf %304, %305 : vector<2x256xf32>
    %307 = arith.negf %306 : vector<2x256xf32>
    %308 = math.exp %307 : vector<2x256xf32>
    %cst_98 = arith.constant 1.000000e+00 : f32
    %309 = vector.broadcast %cst_98 : f32 to vector<2x256xf32>
    %310 = arith.addf %309, %308 : vector<2x256xf32>
    %311 = arith.divf %309, %310 : vector<2x256xf32>
    %312 = vector.extract_strided_slice %311 {offsets = [0, 0], sizes = [2, 128], strides = [1, 1]} : vector<2x256xf32> to vector<2x128xf32>
    %313 = vector.extract_strided_slice %311 {offsets = [0, 128], sizes = [2, 128], strides = [1, 1]} : vector<2x256xf32> to vector<2x128xf32>
    %314 = vector.extract_strided_slice %297 {offsets = [0, 256], sizes = [2, 128], strides = [1, 1]} : vector<2x384xf32> to vector<2x128xf32>
    %315 = vector.extract_strided_slice %301 {offsets = [0, 256], sizes = [2, 128], strides = [1, 1]} : vector<2x384xf32> to vector<2x128xf32>
    %316 = vector.broadcast %303 : vector<1x128xf32> to vector<2x128xf32>
    %317 = arith.addf %315, %316 : vector<2x128xf32>
    %318 = arith.mulf %312, %317 : vector<2x128xf32>
    %319 = arith.addf %314, %318 : vector<2x128xf32>
    %320 = math.tanh %319 : vector<2x128xf32>
    %cst_99 = arith.constant 1.000000e+00 : f32
    %321 = vector.broadcast %cst_99 : f32 to vector<2x128xf32>
    %322 = arith.subf %321, %313 : vector<2x128xf32>
    %323 = arith.mulf %322, %320 : vector<2x128xf32>
    %324 = arith.mulf %313, %250 : vector<2x128xf32>
    %325 = arith.addf %323, %324 : vector<2x128xf32>
    %326 = vector.shape_cast %10 : vector<2x1xi1> to vector<2x1xi1>
    %327 = vector.broadcast %326 : vector<2x1xi1> to vector<2x128xi1>
    %328 = arith.select %327, %325, %250 : vector<2x128xi1>, vector<2x128xf32>
    %cst_100 = arith.constant 0.000000e+00 : f32
    %329 = vector.shape_cast %10 : vector<2x1xi1> to vector<2x1xi1>
    %330 = vector.broadcast %329 : vector<2x1xi1> to vector<2x128xi1>
    %331 = vector.broadcast %cst_100 : f32 to vector<2x128xf32>
    %332 = arith.select %330, %325, %331 : vector<2x128xi1>, vector<2x128xf32>
    %c0_101 = arith.constant 0 : index
    %c6 = arith.constant 6 : index
    %c0_102 = arith.constant 0 : index
    %333 = vector.load %arg6[%c0_101, %c6, %c0_102] : memref<2x16x128xf32, #tpu.memory_space<vmem>>, vector<1x2x128xf32>
    %334 = vector.shape_cast %333 : vector<1x2x128xf32> to vector<2x128xf32>
    %335 = vector.shape_cast %296 : vector<2x128xf32> to vector<1x2x128xf32>
    tpu.vector_store %arg6[%c0_101, %c6, %c0_102], %335 {strides = array<i32>} : memref<2x16x128xf32, #tpu.memory_space<vmem>>, vector<1x2x128xf32>,
    %c1_103 = arith.constant 1 : index
    %c8 = arith.constant 8 : index
    %c0_104 = arith.constant 0 : index
    %336 = vector.load %arg6[%c1_103, %c8, %c0_104] : memref<2x16x128xf32, #tpu.memory_space<vmem>>, vector<1x2x128xf32>
    %337 = vector.shape_cast %336 : vector<1x2x128xf32> to vector<2x128xf32>
    %338 = vector.shape_cast %332 : vector<2x128xf32> to vector<1x2x128xf32>
    tpu.vector_store %arg6[%c1_103, %c8, %c0_104], %338 {strides = array<i32>} : memref<2x16x128xf32, #tpu.memory_space<vmem>>, vector<1x2x128xf32>,
    %339 = vector.extract_strided_slice %23 {offsets = [8, 0], sizes = [2, 384], strides = [1, 1]} : vector<16x384xf32> to vector<2x384xf32>
    %340 = arith.truncf %292 : vector<2x128xf32> to vector<2x128xbf16>
    %c0_105 = arith.constant 0 : index
    %c0_106 = arith.constant 0 : index
    %c0_107 = arith.constant 0 : index
    %341 = vector.load %arg3[%c0_105, %c0_106, %c0_107] : memref<2x128x384xbf16, #tpu.memory_space<vmem>>, vector<1x128x384xbf16>
    %342 = vector.shape_cast %341 : vector<1x128x384xbf16> to vector<128x384xbf16>
    %cst_108 = arith.constant dense<0.000000e+00> : vector<2x384xf32>
    %343 = tpu.matmul %340, %342, %cst_108 {dimension_numbers = #tpu.dot_dimension_numbers<[1], [0], [0], [1], [0, 0, 1, 1], [], []>} : vector<2x128xbf16>, vector<128x384xbf16>, vector<2x384xf32> -> vector<2x384xf32>
    %c0_109 = arith.constant 0 : index
    %c0_110 = arith.constant 0 : index
    %c0_111 = arith.constant 0 : index
    %344 = vector.load %arg5[%c0_109, %c0_110, %c0_111] : memref<2x1x128xf32, #tpu.memory_space<vmem>>, vector<1x1x128xf32>
    %345 = vector.shape_cast %344 : vector<1x1x128xf32> to vector<1x128xf32>
    %346 = vector.extract_strided_slice %339 {offsets = [0, 0], sizes = [2, 256], strides = [1, 1]} : vector<2x384xf32> to vector<2x256xf32>
    %347 = vector.extract_strided_slice %343 {offsets = [0, 0], sizes = [2, 256], strides = [1, 1]} : vector<2x384xf32> to vector<2x256xf32>
    %348 = arith.addf %346, %347 : vector<2x256xf32>
    %349 = arith.negf %348 : vector<2x256xf32>
    %350 = math.exp %349 : vector<2x256xf32>
    %cst_112 = arith.constant 1.000000e+00 : f32
    %351 = vector.broadcast %cst_112 : f32 to vector<2x256xf32>
    %352 = arith.addf %351, %350 : vector<2x256xf32>
    %353 = arith.divf %351, %352 : vector<2x256xf32>
    %354 = vector.extract_strided_slice %353 {offsets = [0, 0], sizes = [2, 128], strides = [1, 1]} : vector<2x256xf32> to vector<2x128xf32>
    %355 = vector.extract_strided_slice %353 {offsets = [0, 128], sizes = [2, 128], strides = [1, 1]} : vector<2x256xf32> to vector<2x128xf32>
    %356 = vector.extract_strided_slice %339 {offsets = [0, 256], sizes = [2, 128], strides = [1, 1]} : vector<2x384xf32> to vector<2x128xf32>
    %357 = vector.extract_strided_slice %343 {offsets = [0, 256], sizes = [2, 128], strides = [1, 1]} : vector<2x384xf32> to vector<2x128xf32>
    %358 = vector.broadcast %345 : vector<1x128xf32> to vector<2x128xf32>
    %359 = arith.addf %357, %358 : vector<2x128xf32>
    %360 = arith.mulf %354, %359 : vector<2x128xf32>
    %361 = arith.addf %356, %360 : vector<2x128xf32>
    %362 = math.tanh %361 : vector<2x128xf32>
    %cst_113 = arith.constant 1.000000e+00 : f32
    %363 = vector.broadcast %cst_113 : f32 to vector<2x128xf32>
    %364 = arith.subf %363, %355 : vector<2x128xf32>
    %365 = arith.mulf %364, %362 : vector<2x128xf32>
    %366 = arith.mulf %355, %292 : vector<2x128xf32>
    %367 = arith.addf %365, %366 : vector<2x128xf32>
    %368 = vector.shape_cast %10 : vector<2x1xi1> to vector<2x1xi1>
    %369 = vector.broadcast %368 : vector<2x1xi1> to vector<2x128xi1>
    %370 = arith.select %369, %367, %292 : vector<2x128xi1>, vector<2x128xf32>
    %cst_114 = arith.constant 0.000000e+00 : f32
    %371 = vector.shape_cast %10 : vector<2x1xi1> to vector<2x1xi1>
    %372 = vector.broadcast %371 : vector<2x1xi1> to vector<2x128xi1>
    %373 = vector.broadcast %cst_114 : f32 to vector<2x128xf32>
    %374 = arith.select %372, %367, %373 : vector<2x128xi1>, vector<2x128xf32>
    %375 = vector.extract_strided_slice %24 {offsets = [6, 0], sizes = [2, 384], strides = [1, 1]} : vector<16x384xf32> to vector<2x384xf32>
    %376 = arith.truncf %328 : vector<2x128xf32> to vector<2x128xbf16>
    %c1_115 = arith.constant 1 : index
    %c0_116 = arith.constant 0 : index
    %c0_117 = arith.constant 0 : index
    %377 = vector.load %arg3[%c1_115, %c0_116, %c0_117] : memref<2x128x384xbf16, #tpu.memory_space<vmem>>, vector<1x128x384xbf16>
    %378 = vector.shape_cast %377 : vector<1x128x384xbf16> to vector<128x384xbf16>
    %cst_118 = arith.constant dense<0.000000e+00> : vector<2x384xf32>
    %379 = tpu.matmul %376, %378, %cst_118 {dimension_numbers = #tpu.dot_dimension_numbers<[1], [0], [0], [1], [0, 0, 1, 1], [], []>} : vector<2x128xbf16>, vector<128x384xbf16>, vector<2x384xf32> -> vector<2x384xf32>
    %c1_119 = arith.constant 1 : index
    %c0_120 = arith.constant 0 : index
    %c0_121 = arith.constant 0 : index
    %380 = vector.load %arg5[%c1_119, %c0_120, %c0_121] : memref<2x1x128xf32, #tpu.memory_space<vmem>>, vector<1x1x128xf32>
    %381 = vector.shape_cast %380 : vector<1x1x128xf32> to vector<1x128xf32>
    %382 = vector.extract_strided_slice %375 {offsets = [0, 0], sizes = [2, 256], strides = [1, 1]} : vector<2x384xf32> to vector<2x256xf32>
    %383 = vector.extract_strided_slice %379 {offsets = [0, 0], sizes = [2, 256], strides = [1, 1]} : vector<2x384xf32> to vector<2x256xf32>
    %384 = arith.addf %382, %383 : vector<2x256xf32>
    %385 = arith.negf %384 : vector<2x256xf32>
    %386 = math.exp %385 : vector<2x256xf32>
    %cst_122 = arith.constant 1.000000e+00 : f32
    %387 = vector.broadcast %cst_122 : f32 to vector<2x256xf32>
    %388 = arith.addf %387, %386 : vector<2x256xf32>
    %389 = arith.divf %387, %388 : vector<2x256xf32>
    %390 = vector.extract_strided_slice %389 {offsets = [0, 0], sizes = [2, 128], strides = [1, 1]} : vector<2x256xf32> to vector<2x128xf32>
    %391 = vector.extract_strided_slice %389 {offsets = [0, 128], sizes = [2, 128], strides = [1, 1]} : vector<2x256xf32> to vector<2x128xf32>
    %392 = vector.extract_strided_slice %375 {offsets = [0, 256], sizes = [2, 128], strides = [1, 1]} : vector<2x384xf32> to vector<2x128xf32>
    %393 = vector.extract_strided_slice %379 {offsets = [0, 256], sizes = [2, 128], strides = [1, 1]} : vector<2x384xf32> to vector<2x128xf32>
    %394 = vector.broadcast %381 : vector<1x128xf32> to vector<2x128xf32>
    %395 = arith.addf %393, %394 : vector<2x128xf32>
    %396 = arith.mulf %390, %395 : vector<2x128xf32>
    %397 = arith.addf %392, %396 : vector<2x128xf32>
    %398 = math.tanh %397 : vector<2x128xf32>
    %cst_123 = arith.constant 1.000000e+00 : f32
    %399 = vector.broadcast %cst_123 : f32 to vector<2x128xf32>
    %400 = arith.subf %399, %391 : vector<2x128xf32>
    %401 = arith.mulf %400, %398 : vector<2x128xf32>
    %402 = arith.mulf %391, %328 : vector<2x128xf32>
    %403 = arith.addf %401, %402 : vector<2x128xf32>
    %404 = vector.shape_cast %8 : vector<2x1xi1> to vector<2x1xi1>
    %405 = vector.broadcast %404 : vector<2x1xi1> to vector<2x128xi1>
    %406 = arith.select %405, %403, %328 : vector<2x128xi1>, vector<2x128xf32>
    %cst_124 = arith.constant 0.000000e+00 : f32
    %407 = vector.shape_cast %8 : vector<2x1xi1> to vector<2x1xi1>
    %408 = vector.broadcast %407 : vector<2x1xi1> to vector<2x128xi1>
    %409 = vector.broadcast %cst_124 : f32 to vector<2x128xf32>
    %410 = arith.select %408, %403, %409 : vector<2x128xi1>, vector<2x128xf32>
    %c0_125 = arith.constant 0 : index
    %c8_126 = arith.constant 8 : index
    %c0_127 = arith.constant 0 : index
    %411 = vector.load %arg6[%c0_125, %c8_126, %c0_127] : memref<2x16x128xf32, #tpu.memory_space<vmem>>, vector<1x2x128xf32>
    %412 = vector.shape_cast %411 : vector<1x2x128xf32> to vector<2x128xf32>
    %413 = vector.shape_cast %374 : vector<2x128xf32> to vector<1x2x128xf32>
    tpu.vector_store %arg6[%c0_125, %c8_126, %c0_127], %413 {strides = array<i32>} : memref<2x16x128xf32, #tpu.memory_space<vmem>>, vector<1x2x128xf32>,
    %c1_128 = arith.constant 1 : index
    %c6_129 = arith.constant 6 : index
    %c0_130 = arith.constant 0 : index
    %414 = vector.load %arg6[%c1_128, %c6_129, %c0_130] : memref<2x16x128xf32, #tpu.memory_space<vmem>>, vector<1x2x128xf32>
    %415 = vector.shape_cast %414 : vector<1x2x128xf32> to vector<2x128xf32>
    %416 = vector.shape_cast %410 : vector<2x128xf32> to vector<1x2x128xf32>
    tpu.vector_store %arg6[%c1_128, %c6_129, %c0_130], %416 {strides = array<i32>} : memref<2x16x128xf32, #tpu.memory_space<vmem>>, vector<1x2x128xf32>,
    %417 = vector.extract_strided_slice %23 {offsets = [10, 0], sizes = [2, 384], strides = [1, 1]} : vector<16x384xf32> to vector<2x384xf32>
    %418 = arith.truncf %370 : vector<2x128xf32> to vector<2x128xbf16>
    %c0_131 = arith.constant 0 : index
    %c0_132 = arith.constant 0 : index
    %c0_133 = arith.constant 0 : index
    %419 = vector.load %arg3[%c0_131, %c0_132, %c0_133] : memref<2x128x384xbf16, #tpu.memory_space<vmem>>, vector<1x128x384xbf16>
    %420 = vector.shape_cast %419 : vector<1x128x384xbf16> to vector<128x384xbf16>
    %cst_134 = arith.constant dense<0.000000e+00> : vector<2x384xf32>
    %421 = tpu.matmul %418, %420, %cst_134 {dimension_numbers = #tpu.dot_dimension_numbers<[1], [0], [0], [1], [0, 0, 1, 1], [], []>} : vector<2x128xbf16>, vector<128x384xbf16>, vector<2x384xf32> -> vector<2x384xf32>
    %c0_135 = arith.constant 0 : index
    %c0_136 = arith.constant 0 : index
    %c0_137 = arith.constant 0 : index
    %422 = vector.load %arg5[%c0_135, %c0_136, %c0_137] : memref<2x1x128xf32, #tpu.memory_space<vmem>>, vector<1x1x128xf32>
    %423 = vector.shape_cast %422 : vector<1x1x128xf32> to vector<1x128xf32>
    %424 = vector.extract_strided_slice %417 {offsets = [0, 0], sizes = [2, 256], strides = [1, 1]} : vector<2x384xf32> to vector<2x256xf32>
    %425 = vector.extract_strided_slice %421 {offsets = [0, 0], sizes = [2, 256], strides = [1, 1]} : vector<2x384xf32> to vector<2x256xf32>
    %426 = arith.addf %424, %425 : vector<2x256xf32>
    %427 = arith.negf %426 : vector<2x256xf32>
    %428 = math.exp %427 : vector<2x256xf32>
    %cst_138 = arith.constant 1.000000e+00 : f32
    %429 = vector.broadcast %cst_138 : f32 to vector<2x256xf32>
    %430 = arith.addf %429, %428 : vector<2x256xf32>
    %431 = arith.divf %429, %430 : vector<2x256xf32>
    %432 = vector.extract_strided_slice %431 {offsets = [0, 0], sizes = [2, 128], strides = [1, 1]} : vector<2x256xf32> to vector<2x128xf32>
    %433 = vector.extract_strided_slice %431 {offsets = [0, 128], sizes = [2, 128], strides = [1, 1]} : vector<2x256xf32> to vector<2x128xf32>
    %434 = vector.extract_strided_slice %417 {offsets = [0, 256], sizes = [2, 128], strides = [1, 1]} : vector<2x384xf32> to vector<2x128xf32>
    %435 = vector.extract_strided_slice %421 {offsets = [0, 256], sizes = [2, 128], strides = [1, 1]} : vector<2x384xf32> to vector<2x128xf32>
    %436 = vector.broadcast %423 : vector<1x128xf32> to vector<2x128xf32>
    %437 = arith.addf %435, %436 : vector<2x128xf32>
    %438 = arith.mulf %432, %437 : vector<2x128xf32>
    %439 = arith.addf %434, %438 : vector<2x128xf32>
    %440 = math.tanh %439 : vector<2x128xf32>
    %cst_139 = arith.constant 1.000000e+00 : f32
    %441 = vector.broadcast %cst_139 : f32 to vector<2x128xf32>
    %442 = arith.subf %441, %433 : vector<2x128xf32>
    %443 = arith.mulf %442, %440 : vector<2x128xf32>
    %444 = arith.mulf %433, %370 : vector<2x128xf32>
    %445 = arith.addf %443, %444 : vector<2x128xf32>
    %446 = vector.shape_cast %12 : vector<2x1xi1> to vector<2x1xi1>
    %447 = vector.broadcast %446 : vector<2x1xi1> to vector<2x128xi1>
    %448 = arith.select %447, %445, %370 : vector<2x128xi1>, vector<2x128xf32>
    %cst_140 = arith.constant 0.000000e+00 : f32
    %449 = vector.shape_cast %12 : vector<2x1xi1> to vector<2x1xi1>
    %450 = vector.broadcast %449 : vector<2x1xi1> to vector<2x128xi1>
    %451 = vector.broadcast %cst_140 : f32 to vector<2x128xf32>
    %452 = arith.select %450, %445, %451 : vector<2x128xi1>, vector<2x128xf32>
    %453 = vector.extract_strided_slice %24 {offsets = [4, 0], sizes = [2, 384], strides = [1, 1]} : vector<16x384xf32> to vector<2x384xf32>
    %454 = arith.truncf %406 : vector<2x128xf32> to vector<2x128xbf16>
    %c1_141 = arith.constant 1 : index
    %c0_142 = arith.constant 0 : index
    %c0_143 = arith.constant 0 : index
    %455 = vector.load %arg3[%c1_141, %c0_142, %c0_143] : memref<2x128x384xbf16, #tpu.memory_space<vmem>>, vector<1x128x384xbf16>
    %456 = vector.shape_cast %455 : vector<1x128x384xbf16> to vector<128x384xbf16>
    %cst_144 = arith.constant dense<0.000000e+00> : vector<2x384xf32>
    %457 = tpu.matmul %454, %456, %cst_144 {dimension_numbers = #tpu.dot_dimension_numbers<[1], [0], [0], [1], [0, 0, 1, 1], [], []>} : vector<2x128xbf16>, vector<128x384xbf16>, vector<2x384xf32> -> vector<2x384xf32>
    %c1_145 = arith.constant 1 : index
    %c0_146 = arith.constant 0 : index
    %c0_147 = arith.constant 0 : index
    %458 = vector.load %arg5[%c1_145, %c0_146, %c0_147] : memref<2x1x128xf32, #tpu.memory_space<vmem>>, vector<1x1x128xf32>
    %459 = vector.shape_cast %458 : vector<1x1x128xf32> to vector<1x128xf32>
    %460 = vector.extract_strided_slice %453 {offsets = [0, 0], sizes = [2, 256], strides = [1, 1]} : vector<2x384xf32> to vector<2x256xf32>
    %461 = vector.extract_strided_slice %457 {offsets = [0, 0], sizes = [2, 256], strides = [1, 1]} : vector<2x384xf32> to vector<2x256xf32>
    %462 = arith.addf %460, %461 : vector<2x256xf32>
    %463 = arith.negf %462 : vector<2x256xf32>
    %464 = math.exp %463 : vector<2x256xf32>
    %cst_148 = arith.constant 1.000000e+00 : f32
    %465 = vector.broadcast %cst_148 : f32 to vector<2x256xf32>
    %466 = arith.addf %465, %464 : vector<2x256xf32>
    %467 = arith.divf %465, %466 : vector<2x256xf32>
    %468 = vector.extract_strided_slice %467 {offsets = [0, 0], sizes = [2, 128], strides = [1, 1]} : vector<2x256xf32> to vector<2x128xf32>
    %469 = vector.extract_strided_slice %467 {offsets = [0, 128], sizes = [2, 128], strides = [1, 1]} : vector<2x256xf32> to vector<2x128xf32>
    %470 = vector.extract_strided_slice %453 {offsets = [0, 256], sizes = [2, 128], strides = [1, 1]} : vector<2x384xf32> to vector<2x128xf32>
    %471 = vector.extract_strided_slice %457 {offsets = [0, 256], sizes = [2, 128], strides = [1, 1]} : vector<2x384xf32> to vector<2x128xf32>
    %472 = vector.broadcast %459 : vector<1x128xf32> to vector<2x128xf32>
    %473 = arith.addf %471, %472 : vector<2x128xf32>
    %474 = arith.mulf %468, %473 : vector<2x128xf32>
    %475 = arith.addf %470, %474 : vector<2x128xf32>
    %476 = math.tanh %475 : vector<2x128xf32>
    %cst_149 = arith.constant 1.000000e+00 : f32
    %477 = vector.broadcast %cst_149 : f32 to vector<2x128xf32>
    %478 = arith.subf %477, %469 : vector<2x128xf32>
    %479 = arith.mulf %478, %476 : vector<2x128xf32>
    %480 = arith.mulf %469, %406 : vector<2x128xf32>
    %481 = arith.addf %479, %480 : vector<2x128xf32>
    %482 = vector.shape_cast %6 : vector<2x1xi1> to vector<2x1xi1>
    %483 = vector.broadcast %482 : vector<2x1xi1> to vector<2x128xi1>
    %484 = arith.select %483, %481, %406 : vector<2x128xi1>, vector<2x128xf32>
    %cst_150 = arith.constant 0.000000e+00 : f32
    %485 = vector.shape_cast %6 : vector<2x1xi1> to vector<2x1xi1>
    %486 = vector.broadcast %485 : vector<2x1xi1> to vector<2x128xi1>
    %487 = vector.broadcast %cst_150 : f32 to vector<2x128xf32>
    %488 = arith.select %486, %481, %487 : vector<2x128xi1>, vector<2x128xf32>
    %c0_151 = arith.constant 0 : index
    %c10_152 = arith.constant 10 : index
    %c0_153 = arith.constant 0 : index
    %489 = vector.load %arg6[%c0_151, %c10_152, %c0_153] : memref<2x16x128xf32, #tpu.memory_space<vmem>>, vector<1x2x128xf32>
    %490 = vector.shape_cast %489 : vector<1x2x128xf32> to vector<2x128xf32>
    %491 = vector.shape_cast %452 : vector<2x128xf32> to vector<1x2x128xf32>
    tpu.vector_store %arg6[%c0_151, %c10_152, %c0_153], %491 {strides = array<i32>} : memref<2x16x128xf32, #tpu.memory_space<vmem>>, vector<1x2x128xf32>,
    %c1_154 = arith.constant 1 : index
    %c4_155 = arith.constant 4 : index
    %c0_156 = arith.constant 0 : index
    %492 = vector.load %arg6[%c1_154, %c4_155, %c0_156] : memref<2x16x128xf32, #tpu.memory_space<vmem>>, vector<1x2x128xf32>
    %493 = vector.shape_cast %492 : vector<1x2x128xf32> to vector<2x128xf32>
    %494 = vector.shape_cast %488 : vector<2x128xf32> to vector<1x2x128xf32>
    tpu.vector_store %arg6[%c1_154, %c4_155, %c0_156], %494 {strides = array<i32>} : memref<2x16x128xf32, #tpu.memory_space<vmem>>, vector<1x2x128xf32>,
    %495 = vector.extract_strided_slice %23 {offsets = [12, 0], sizes = [2, 384], strides = [1, 1]} : vector<16x384xf32> to vector<2x384xf32>
    %496 = arith.truncf %448 : vector<2x128xf32> to vector<2x128xbf16>
    %c0_157 = arith.constant 0 : index
    %c0_158 = arith.constant 0 : index
    %c0_159 = arith.constant 0 : index
    %497 = vector.load %arg3[%c0_157, %c0_158, %c0_159] : memref<2x128x384xbf16, #tpu.memory_space<vmem>>, vector<1x128x384xbf16>
    %498 = vector.shape_cast %497 : vector<1x128x384xbf16> to vector<128x384xbf16>
    %cst_160 = arith.constant dense<0.000000e+00> : vector<2x384xf32>
    %499 = tpu.matmul %496, %498, %cst_160 {dimension_numbers = #tpu.dot_dimension_numbers<[1], [0], [0], [1], [0, 0, 1, 1], [], []>} : vector<2x128xbf16>, vector<128x384xbf16>, vector<2x384xf32> -> vector<2x384xf32>
    %c0_161 = arith.constant 0 : index
    %c0_162 = arith.constant 0 : index
    %c0_163 = arith.constant 0 : index
    %500 = vector.load %arg5[%c0_161, %c0_162, %c0_163] : memref<2x1x128xf32, #tpu.memory_space<vmem>>, vector<1x1x128xf32>
    %501 = vector.shape_cast %500 : vector<1x1x128xf32> to vector<1x128xf32>
    %502 = vector.extract_strided_slice %495 {offsets = [0, 0], sizes = [2, 256], strides = [1, 1]} : vector<2x384xf32> to vector<2x256xf32>
    %503 = vector.extract_strided_slice %499 {offsets = [0, 0], sizes = [2, 256], strides = [1, 1]} : vector<2x384xf32> to vector<2x256xf32>
    %504 = arith.addf %502, %503 : vector<2x256xf32>
    %505 = arith.negf %504 : vector<2x256xf32>
    %506 = math.exp %505 : vector<2x256xf32>
    %cst_164 = arith.constant 1.000000e+00 : f32
    %507 = vector.broadcast %cst_164 : f32 to vector<2x256xf32>
    %508 = arith.addf %507, %506 : vector<2x256xf32>
    %509 = arith.divf %507, %508 : vector<2x256xf32>
    %510 = vector.extract_strided_slice %509 {offsets = [0, 0], sizes = [2, 128], strides = [1, 1]} : vector<2x256xf32> to vector<2x128xf32>
    %511 = vector.extract_strided_slice %509 {offsets = [0, 128], sizes = [2, 128], strides = [1, 1]} : vector<2x256xf32> to vector<2x128xf32>
    %512 = vector.extract_strided_slice %495 {offsets = [0, 256], sizes = [2, 128], strides = [1, 1]} : vector<2x384xf32> to vector<2x128xf32>
    %513 = vector.extract_strided_slice %499 {offsets = [0, 256], sizes = [2, 128], strides = [1, 1]} : vector<2x384xf32> to vector<2x128xf32>
    %514 = vector.broadcast %501 : vector<1x128xf32> to vector<2x128xf32>
    %515 = arith.addf %513, %514 : vector<2x128xf32>
    %516 = arith.mulf %510, %515 : vector<2x128xf32>
    %517 = arith.addf %512, %516 : vector<2x128xf32>
    %518 = math.tanh %517 : vector<2x128xf32>
    %cst_165 = arith.constant 1.000000e+00 : f32
    %519 = vector.broadcast %cst_165 : f32 to vector<2x128xf32>
    %520 = arith.subf %519, %511 : vector<2x128xf32>
    %521 = arith.mulf %520, %518 : vector<2x128xf32>
    %522 = arith.mulf %511, %448 : vector<2x128xf32>
    %523 = arith.addf %521, %522 : vector<2x128xf32>
    %524 = vector.shape_cast %14 : vector<2x1xi1> to vector<2x1xi1>
    %525 = vector.broadcast %524 : vector<2x1xi1> to vector<2x128xi1>
    %526 = arith.select %525, %523, %448 : vector<2x128xi1>, vector<2x128xf32>
    %cst_166 = arith.constant 0.000000e+00 : f32
    %527 = vector.shape_cast %14 : vector<2x1xi1> to vector<2x1xi1>
    %528 = vector.broadcast %527 : vector<2x1xi1> to vector<2x128xi1>
    %529 = vector.broadcast %cst_166 : f32 to vector<2x128xf32>
    %530 = arith.select %528, %523, %529 : vector<2x128xi1>, vector<2x128xf32>
    %531 = vector.extract_strided_slice %24 {offsets = [2, 0], sizes = [2, 384], strides = [1, 1]} : vector<16x384xf32> to vector<2x384xf32>
    %532 = arith.truncf %484 : vector<2x128xf32> to vector<2x128xbf16>
    %c1_167 = arith.constant 1 : index
    %c0_168 = arith.constant 0 : index
    %c0_169 = arith.constant 0 : index
    %533 = vector.load %arg3[%c1_167, %c0_168, %c0_169] : memref<2x128x384xbf16, #tpu.memory_space<vmem>>, vector<1x128x384xbf16>
    %534 = vector.shape_cast %533 : vector<1x128x384xbf16> to vector<128x384xbf16>
    %cst_170 = arith.constant dense<0.000000e+00> : vector<2x384xf32>
    %535 = tpu.matmul %532, %534, %cst_170 {dimension_numbers = #tpu.dot_dimension_numbers<[1], [0], [0], [1], [0, 0, 1, 1], [], []>} : vector<2x128xbf16>, vector<128x384xbf16>, vector<2x384xf32> -> vector<2x384xf32>
    %c1_171 = arith.constant 1 : index
    %c0_172 = arith.constant 0 : index
    %c0_173 = arith.constant 0 : index
    %536 = vector.load %arg5[%c1_171, %c0_172, %c0_173] : memref<2x1x128xf32, #tpu.memory_space<vmem>>, vector<1x1x128xf32>
    %537 = vector.shape_cast %536 : vector<1x1x128xf32> to vector<1x128xf32>
    %538 = vector.extract_strided_slice %531 {offsets = [0, 0], sizes = [2, 256], strides = [1, 1]} : vector<2x384xf32> to vector<2x256xf32>
    %539 = vector.extract_strided_slice %535 {offsets = [0, 0], sizes = [2, 256], strides = [1, 1]} : vector<2x384xf32> to vector<2x256xf32>
    %540 = arith.addf %538, %539 : vector<2x256xf32>
    %541 = arith.negf %540 : vector<2x256xf32>
    %542 = math.exp %541 : vector<2x256xf32>
    %cst_174 = arith.constant 1.000000e+00 : f32
    %543 = vector.broadcast %cst_174 : f32 to vector<2x256xf32>
    %544 = arith.addf %543, %542 : vector<2x256xf32>
    %545 = arith.divf %543, %544 : vector<2x256xf32>
    %546 = vector.extract_strided_slice %545 {offsets = [0, 0], sizes = [2, 128], strides = [1, 1]} : vector<2x256xf32> to vector<2x128xf32>
    %547 = vector.extract_strided_slice %545 {offsets = [0, 128], sizes = [2, 128], strides = [1, 1]} : vector<2x256xf32> to vector<2x128xf32>
    %548 = vector.extract_strided_slice %531 {offsets = [0, 256], sizes = [2, 128], strides = [1, 1]} : vector<2x384xf32> to vector<2x128xf32>
    %549 = vector.extract_strided_slice %535 {offsets = [0, 256], sizes = [2, 128], strides = [1, 1]} : vector<2x384xf32> to vector<2x128xf32>
    %550 = vector.broadcast %537 : vector<1x128xf32> to vector<2x128xf32>
    %551 = arith.addf %549, %550 : vector<2x128xf32>
    %552 = arith.mulf %546, %551 : vector<2x128xf32>
    %553 = arith.addf %548, %552 : vector<2x128xf32>
    %554 = math.tanh %553 : vector<2x128xf32>
    %cst_175 = arith.constant 1.000000e+00 : f32
    %555 = vector.broadcast %cst_175 : f32 to vector<2x128xf32>
    %556 = arith.subf %555, %547 : vector<2x128xf32>
    %557 = arith.mulf %556, %554 : vector<2x128xf32>
    %558 = arith.mulf %547, %484 : vector<2x128xf32>
    %559 = arith.addf %557, %558 : vector<2x128xf32>
    %560 = vector.shape_cast %4 : vector<2x1xi1> to vector<2x1xi1>
    %561 = vector.broadcast %560 : vector<2x1xi1> to vector<2x128xi1>
    %562 = arith.select %561, %559, %484 : vector<2x128xi1>, vector<2x128xf32>
    %cst_176 = arith.constant 0.000000e+00 : f32
    %563 = vector.shape_cast %4 : vector<2x1xi1> to vector<2x1xi1>
    %564 = vector.broadcast %563 : vector<2x1xi1> to vector<2x128xi1>
    %565 = vector.broadcast %cst_176 : f32 to vector<2x128xf32>
    %566 = arith.select %564, %559, %565 : vector<2x128xi1>, vector<2x128xf32>
    %c0_177 = arith.constant 0 : index
    %c12_178 = arith.constant 12 : index
    %c0_179 = arith.constant 0 : index
    %567 = vector.load %arg6[%c0_177, %c12_178, %c0_179] : memref<2x16x128xf32, #tpu.memory_space<vmem>>, vector<1x2x128xf32>
    %568 = vector.shape_cast %567 : vector<1x2x128xf32> to vector<2x128xf32>
    %569 = vector.shape_cast %530 : vector<2x128xf32> to vector<1x2x128xf32>
    tpu.vector_store %arg6[%c0_177, %c12_178, %c0_179], %569 {strides = array<i32>} : memref<2x16x128xf32, #tpu.memory_space<vmem>>, vector<1x2x128xf32>,
    %c1_180 = arith.constant 1 : index
    %c2_181 = arith.constant 2 : index
    %c0_182 = arith.constant 0 : index
    %570 = vector.load %arg6[%c1_180, %c2_181, %c0_182] : memref<2x16x128xf32, #tpu.memory_space<vmem>>, vector<1x2x128xf32>
    %571 = vector.shape_cast %570 : vector<1x2x128xf32> to vector<2x128xf32>
    %572 = vector.shape_cast %566 : vector<2x128xf32> to vector<1x2x128xf32>
    tpu.vector_store %arg6[%c1_180, %c2_181, %c0_182], %572 {strides = array<i32>} : memref<2x16x128xf32, #tpu.memory_space<vmem>>, vector<1x2x128xf32>,
    %573 = vector.extract_strided_slice %23 {offsets = [14, 0], sizes = [2, 384], strides = [1, 1]} : vector<16x384xf32> to vector<2x384xf32>
    %574 = arith.truncf %526 : vector<2x128xf32> to vector<2x128xbf16>
    %c0_183 = arith.constant 0 : index
    %c0_184 = arith.constant 0 : index
    %c0_185 = arith.constant 0 : index
    %575 = vector.load %arg3[%c0_183, %c0_184, %c0_185] : memref<2x128x384xbf16, #tpu.memory_space<vmem>>, vector<1x128x384xbf16>
    %576 = vector.shape_cast %575 : vector<1x128x384xbf16> to vector<128x384xbf16>
    %cst_186 = arith.constant dense<0.000000e+00> : vector<2x384xf32>
    %577 = tpu.matmul %574, %576, %cst_186 {dimension_numbers = #tpu.dot_dimension_numbers<[1], [0], [0], [1], [0, 0, 1, 1], [], []>} : vector<2x128xbf16>, vector<128x384xbf16>, vector<2x384xf32> -> vector<2x384xf32>
    %c0_187 = arith.constant 0 : index
    %c0_188 = arith.constant 0 : index
    %c0_189 = arith.constant 0 : index
    %578 = vector.load %arg5[%c0_187, %c0_188, %c0_189] : memref<2x1x128xf32, #tpu.memory_space<vmem>>, vector<1x1x128xf32>
    %579 = vector.shape_cast %578 : vector<1x1x128xf32> to vector<1x128xf32>
    %580 = vector.extract_strided_slice %573 {offsets = [0, 0], sizes = [2, 256], strides = [1, 1]} : vector<2x384xf32> to vector<2x256xf32>
    %581 = vector.extract_strided_slice %577 {offsets = [0, 0], sizes = [2, 256], strides = [1, 1]} : vector<2x384xf32> to vector<2x256xf32>
    %582 = arith.addf %580, %581 : vector<2x256xf32>
    %583 = arith.negf %582 : vector<2x256xf32>
    %584 = math.exp %583 : vector<2x256xf32>
    %cst_190 = arith.constant 1.000000e+00 : f32
    %585 = vector.broadcast %cst_190 : f32 to vector<2x256xf32>
    %586 = arith.addf %585, %584 : vector<2x256xf32>
    %587 = arith.divf %585, %586 : vector<2x256xf32>
    %588 = vector.extract_strided_slice %587 {offsets = [0, 0], sizes = [2, 128], strides = [1, 1]} : vector<2x256xf32> to vector<2x128xf32>
    %589 = vector.extract_strided_slice %587 {offsets = [0, 128], sizes = [2, 128], strides = [1, 1]} : vector<2x256xf32> to vector<2x128xf32>
    %590 = vector.extract_strided_slice %573 {offsets = [0, 256], sizes = [2, 128], strides = [1, 1]} : vector<2x384xf32> to vector<2x128xf32>
    %591 = vector.extract_strided_slice %577 {offsets = [0, 256], sizes = [2, 128], strides = [1, 1]} : vector<2x384xf32> to vector<2x128xf32>
    %592 = vector.broadcast %579 : vector<1x128xf32> to vector<2x128xf32>
    %593 = arith.addf %591, %592 : vector<2x128xf32>
    %594 = arith.mulf %588, %593 : vector<2x128xf32>
    %595 = arith.addf %590, %594 : vector<2x128xf32>
    %596 = math.tanh %595 : vector<2x128xf32>
    %cst_191 = arith.constant 1.000000e+00 : f32
    %597 = vector.broadcast %cst_191 : f32 to vector<2x128xf32>
    %598 = arith.subf %597, %589 : vector<2x128xf32>
    %599 = arith.mulf %598, %596 : vector<2x128xf32>
    %600 = arith.mulf %589, %526 : vector<2x128xf32>
    %601 = arith.addf %599, %600 : vector<2x128xf32>
    %cst_192 = arith.constant 0.000000e+00 : f32
    %602 = vector.shape_cast %16 : vector<2x1xi1> to vector<2x1xi1>
    %603 = vector.broadcast %602 : vector<2x1xi1> to vector<2x128xi1>
    %604 = vector.broadcast %cst_192 : f32 to vector<2x128xf32>
    %605 = arith.select %603, %601, %604 : vector<2x128xi1>, vector<2x128xf32>
    %606 = vector.extract_strided_slice %24 {offsets = [0, 0], sizes = [2, 384], strides = [1, 1]} : vector<16x384xf32> to vector<2x384xf32>
    %607 = arith.truncf %562 : vector<2x128xf32> to vector<2x128xbf16>
    %c1_193 = arith.constant 1 : index
    %c0_194 = arith.constant 0 : index
    %c0_195 = arith.constant 0 : index
    %608 = vector.load %arg3[%c1_193, %c0_194, %c0_195] : memref<2x128x384xbf16, #tpu.memory_space<vmem>>, vector<1x128x384xbf16>
    %609 = vector.shape_cast %608 : vector<1x128x384xbf16> to vector<128x384xbf16>
    %cst_196 = arith.constant dense<0.000000e+00> : vector<2x384xf32>
    %610 = tpu.matmul %607, %609, %cst_196 {dimension_numbers = #tpu.dot_dimension_numbers<[1], [0], [0], [1], [0, 0, 1, 1], [], []>} : vector<2x128xbf16>, vector<128x384xbf16>, vector<2x384xf32> -> vector<2x384xf32>
    %c1_197 = arith.constant 1 : index
    %c0_198 = arith.constant 0 : index
    %c0_199 = arith.constant 0 : index
    %611 = vector.load %arg5[%c1_197, %c0_198, %c0_199] : memref<2x1x128xf32, #tpu.memory_space<vmem>>, vector<1x1x128xf32>
    %612 = vector.shape_cast %611 : vector<1x1x128xf32> to vector<1x128xf32>
    %613 = vector.extract_strided_slice %606 {offsets = [0, 0], sizes = [2, 256], strides = [1, 1]} : vector<2x384xf32> to vector<2x256xf32>
    %614 = vector.extract_strided_slice %610 {offsets = [0, 0], sizes = [2, 256], strides = [1, 1]} : vector<2x384xf32> to vector<2x256xf32>
    %615 = arith.addf %613, %614 : vector<2x256xf32>
    %616 = arith.negf %615 : vector<2x256xf32>
    %617 = math.exp %616 : vector<2x256xf32>
    %cst_200 = arith.constant 1.000000e+00 : f32
    %618 = vector.broadcast %cst_200 : f32 to vector<2x256xf32>
    %619 = arith.addf %618, %617 : vector<2x256xf32>
    %620 = arith.divf %618, %619 : vector<2x256xf32>
    %621 = vector.extract_strided_slice %620 {offsets = [0, 0], sizes = [2, 128], strides = [1, 1]} : vector<2x256xf32> to vector<2x128xf32>
    %622 = vector.extract_strided_slice %620 {offsets = [0, 128], sizes = [2, 128], strides = [1, 1]} : vector<2x256xf32> to vector<2x128xf32>
    %623 = vector.extract_strided_slice %606 {offsets = [0, 256], sizes = [2, 128], strides = [1, 1]} : vector<2x384xf32> to vector<2x128xf32>
    %624 = vector.extract_strided_slice %610 {offsets = [0, 256], sizes = [2, 128], strides = [1, 1]} : vector<2x384xf32> to vector<2x128xf32>
    %625 = vector.broadcast %612 : vector<1x128xf32> to vector<2x128xf32>
    %626 = arith.addf %624, %625 : vector<2x128xf32>
    %627 = arith.mulf %621, %626 : vector<2x128xf32>
    %628 = arith.addf %623, %627 : vector<2x128xf32>
    %629 = math.tanh %628 : vector<2x128xf32>
    %cst_201 = arith.constant 1.000000e+00 : f32
    %630 = vector.broadcast %cst_201 : f32 to vector<2x128xf32>
    %631 = arith.subf %630, %622 : vector<2x128xf32>
    %632 = arith.mulf %631, %629 : vector<2x128xf32>
    %633 = arith.mulf %622, %562 : vector<2x128xf32>
    %634 = arith.addf %632, %633 : vector<2x128xf32>
    %cst_202 = arith.constant 0.000000e+00 : f32
    %635 = vector.shape_cast %2 : vector<2x1xi1> to vector<2x1xi1>
    %636 = vector.broadcast %635 : vector<2x1xi1> to vector<2x128xi1>
    %637 = vector.broadcast %cst_202 : f32 to vector<2x128xf32>
    %638 = arith.select %636, %634, %637 : vector<2x128xi1>, vector<2x128xf32>
    %c0_203 = arith.constant 0 : index
    %c14_204 = arith.constant 14 : index
    %c0_205 = arith.constant 0 : index
    %639 = vector.load %arg6[%c0_203, %c14_204, %c0_205] : memref<2x16x128xf32, #tpu.memory_space<vmem>>, vector<1x2x128xf32>
    %640 = vector.shape_cast %639 : vector<1x2x128xf32> to vector<2x128xf32>
    %641 = vector.shape_cast %605 : vector<2x128xf32> to vector<1x2x128xf32>
    tpu.vector_store %arg6[%c0_203, %c14_204, %c0_205], %641 {strides = array<i32>} : memref<2x16x128xf32, #tpu.memory_space<vmem>>, vector<1x2x128xf32>,
    %c1_206 = arith.constant 1 : index
    %c0_207 = arith.constant 0 : index
    %c0_208 = arith.constant 0 : index
    %642 = vector.load %arg6[%c1_206, %c0_207, %c0_208] : memref<2x16x128xf32, #tpu.memory_space<vmem>>, vector<1x2x128xf32>
    %643 = vector.shape_cast %642 : vector<1x2x128xf32> to vector<2x128xf32>
    %644 = vector.shape_cast %638 : vector<2x128xf32> to vector<1x2x128xf32>
    tpu.vector_store %arg6[%c1_206, %c0_207, %c0_208], %644 {strides = array<i32>} : memref<2x16x128xf32, #tpu.memory_space<vmem>>, vector<1x2x128xf32>,
    return
  }
}

</mosaic_0001>

<bundles_post_ra>
// kernel: tpu_custom_call.1
= control target key start
LH: loop header
LB: loop body
LE: loop exit
PB: predicated region body
PF: predicated region fallthrough
CT: control target
= control target key end

     0   :  { %11 = vsyncpa [#allocation3], 0  ;;  %s9148_s0 = inlined_call_operand.hbm [shape: f32[16,16], index: 0, kind: input, shape index: {}]   ;;  %s9149_s1 = inlined_call_operand.vmem [shape: s32[2,1], index: 1, kind: input, shape index: {}]   ;;  %s9150_s2 = inlined_call_operand.hbm [shape: f32[16,768], index: 2, kind: input, shape index: {}]   ;;  %s9151_s3 = inlined_call_operand.hbm [shape: bf16[2,128,384], index: 3, kind: input, shape index: {}]   ;;  %s9152_s4 = inlined_call_operand.vmem [shape: f32[1,768], index: 4, kind: input, shape index: {}]   ;;  %s9153_s5 = inlined_call_operand.vmem [shape: f32[2,1,128], index: 5, kind: input, shape index: {}]   ;;  %s9154_s6 = inlined_call_operand.hbm [shape: f32[2,16,128], index: 6, kind: output, shape index: {}]  }
   0x1   :  { %12 = vsyncpa [#allocation6], 0 }
   0x2   :  { %13 = vsyncpa [#allocation4], 0  ;;  %s7825_s21 = smov [#allocation5]  }
   0x3   :  { %s33_s22 = sshll.u32 %s7825_s21, 4  ;;  %s34_s22 = int_to_ptr.vmem [resolvable:$true] %s33_s22 }
   0x4   :  { %s7747_s23 = scalar_lea.vmem %s34_s22, 1536  ;;  %p7752_p1 = scmp.lt.s32.totalorder %s34_s22, %s34_s22 }
   0x5   :  { %p7748_p0 = scmp.ne.s32.totalorder %s34_s22, %s7747_s23  ;;  %p7753_p2 = scmp.lt.s32.totalorder %s7747_s23, %s7747_s23 }
   0x7   :  { %p7754_p3 = por %p7753_p2, %p7752_p1 }
   0x9   :  { %p7755_p4 = pnand %p7754_p3, %p7748_p0 }
   0xb   :  { %7758 = shalt.err (!%p7755_p4)
}
   0xc   :  { %s7826_s24 = smov 768   ;;  %s7827_s25 = smov 48  }
   0xd   :  { %39 = dma.hbm_to_vmem [thread:$0]  %s9150_s2, 1536, %s34_s22, [#allocation6], %s7826_s24, %s7826_s24, %s7827_s25  }
   0xe   :  { %s7828_s28 = smov [#allocation2]  }
   0xf   :  { %s19_s29 = sshll.u32 %s7828_s28, 4  ;;  %s20_s29 = int_to_ptr.vmem [resolvable:$true] %s19_s29 }
  0x10   :  { %s7767_s30 = scalar_lea.vmem %s20_s29, 256  ;;  %p7772_p6 = scmp.lt.s32.totalorder %s20_s29, %s20_s29 }
  0x11   :  { %p7768_p5 = scmp.ne.s32.totalorder %s20_s29, %s7767_s30  ;;  %p7773_p7 = scmp.lt.s32.totalorder %s7767_s30, %s7767_s30 }
  0x13   :  { %p7774_p8 = por %p7773_p7, %p7772_p6 }
  0x15   :  { %p7775_p9 = pnand %p7774_p8, %p7768_p5 }
  0x17   :  { %7778 = shalt.err (!%p7775_p9)
}
  0x18   :  { %s7829_s7 = smov 128   ;;  %s7830_s8 = smov 8  }
  0x19   :  { %25 = dma.hbm_to_vmem [thread:$0]  %s9148_s0, 256, %s20_s29, [#allocation3], %s7829_s7, %s7829_s7, %s7830_s8  }
  0x1a   :  { %s7831_s2 = smov [#allocation7]  }
  0x1b   :  { %s45_s11 = sshll.u32 %s7831_s2, 4  ;;  %s46_s11 = int_to_ptr.vmem [resolvable:$true] %s45_s11 }
  0x1c   :  { %s7787_s12 = scalar_lea.vmem %s46_s11, 6144  ;;  %p7792_p11 = scmp.lt.s32.totalorder %s46_s11, %s46_s11 }
  0x1d   :  { %p7788_p10 = scmp.ne.s32.totalorder %s46_s11, %s7787_s12  ;;  %p7793_p12 = scmp.lt.s32.totalorder %s7787_s12, %s7787_s12 }
  0x1f   :  { %p7794_p13 = por %p7793_p12, %p7792_p11 }
  0x21   :  { %p7795_p0 = pnand %p7794_p13, %p7788_p10 }
  0x23   :  { %7798 = shalt.err (!%p7795_p0)
}
  0x24   :  { %s7832_s13 = smov 192   ;;  %s7833_s14 = smov 12  }
  0x25   :  { %51 = dma.hbm_to_vmem [thread:$0]  %s9151_s3, 6144, %s46_s11, [#allocation6], %s7832_s13, %s7832_s13, %s7833_s14  }
  0x26   :  { %7819 = dma.done.wait [#allocation3], 256  }
  0x27   :  { %7820 = vsyncadd [#allocation3], 4294967040 }
  0x28   :  { %7821 = dma.done.wait [#allocation6], 7680  }
  0x29   :  { %7822 = vsyncadd [#allocation6], 4294959616  ;;  %v7834_v0 = vmov 0.0   ;;  %v9155_v1 = vmov 0   ;;  %vm121_vm0 = vcmask 130048   ;;  %v84_v2 = vld [vmem:[#allocation5 + $0x38] sm:$0xff] }
  0x2a   :  { %196 = vmatprep.mubr.f32.mxu0 %v7834_v0  ;;  %303 = vmatprep.mubr.f32.mxu1 %v7834_v0  ;;  %v83_v3 = vld [vmem:[#allocation5 + $0x30] sm:$0xff]  ;;  %v78_v4 = vld [vmem:[#allocation5 + $0x8] sm:$0xff]  ;;  %v7889_v5 = vand.u32 4294901760, %v84_v2  ;;  %v77_v8 = vld [vmem:[#allocation5] sm:$0xff]  ;;  %vm7836_vm1 = vmmov 0  }
  0x2b   :  { %7293 = vset.pattern.permute.xlu0 %v9155_v1  ;;  %7294 = vset.pattern.permute.xlu1 %v9155_v1  ;;  %v7891_v6 = vand.u32 4294901760, %v83_v3  ;;  %v7893_v7 = vand.u32 4294901760, %v78_v4  ;;  %v75_v9 = vld [vmem:[#allocation2] sm:$0xff]  ;;  %v76_v10 = vld [vmem:[#allocation2 + $0x8] sm:$0xff]  ;;  %v7895_v11 = vand.u32 4294901760, %v77_v8  ;;  %v86_v38 = vld [vmem:[#allocation5 + $0x48] sm:$0xff] }
  0x2c   :  { %v123_v12 = vsel %vm121_vm0, %v75_v9, 0  ;;  %v126_v13 = vsel %vm121_vm0, %v76_v10, 0  ;;  %157 = vmatprep.subr.mxu0 %v7889_v5  ;;  %v248_v14 = vsub.f32 %v84_v2, %v7889_v5  ;;  %v7938_v41 = vand.u32 4294901760, %v86_v38  ;;  %v85_v42 = vld [vmem:[#allocation5 + $0x40] sm:$0xff]  ;;  %v80_v43 = vld [vmem:[#allocation5 + $0x18] sm:$0xff]  ;;  %v79_v44 = vld [vmem:[#allocation5 + $0x10] sm:$0xff] }
  0x2d   :  { %v7899_v15 = vand.u32 4294901760, %v123_v12  ;;  %v254_v16 = vsub.f32 %v83_v3, %v7891_v6  ;;  %v7903_v17 = vsub.f32 %v78_v4, %v7893_v7  ;;  %159 = vmatpush1.msra.mxu0 %v7891_v6  ;;  %v7907_v18 = vsub.f32 %v77_v8, %v7895_v11  ;;  %v88_v56 = vld [vmem:[#allocation5 + $0x58] sm:$0xff]  ;;  %v87_v2 = vld [vmem:[#allocation5 + $0x50] sm:$0xff]  ;;  %v82_v3 = vld [vmem:[#allocation5 + $0x28] sm:$0xff] }
  0x2e   :  { %v7909_v19 = vand.u32 4294901760, %v126_v13  ;;  %161 = vmatprep.subr.mxu0 %v7893_v7  ;;  %v249_v20 = vand.u32 4294901760, %v248_v14  ;;  %v7944_v45 = vand.u32 4294901760, %v85_v42  ;;  %v7948_v46 = vand.u32 4294901760, %v80_v43 }
  0x2f   :  { %v7913_v21 = vsub.f32 %v123_v12, %v7899_v15  ;;  %v255_v22 = vand.u32 4294901760, %v254_v16  ;;  %v261_v23 = vand.u32 4294901760, %v7903_v17  ;;  %163 = vmatpush1.msra.mxu0 %v7895_v11  ;;  %v267_v24 = vand.u32 4294901760, %v7907_v18 }
  0x30   :  { %v7919_v25 = vsub.f32 %v126_v13, %v7909_v19  ;;  %v250_v26 = vsub.f32 %v248_v14, %v249_v20  ;;  %348 = vmatprep.subr.mxu0 %v248_v14  ;;  %v7951_v47 = vsub.f32 %v86_v38, %v7938_v41  ;;  %v7955_v48 = vand.u32 4294901760, %v79_v44  ;;  %v8153_v38 = vld [vmem:[#allocation7 + $0x4c] ss:$12 sps:$4 sm:$0xff]  }
  0x31   :  { %v7922_v27 = vand.u32 4294901760, %v7913_v21  ;;  %v256_v28 = vsub.f32 %v254_v16, %v255_v22  ;;  %v262_v29 = vsub.f32 %v7903_v17, %v261_v23  ;;  %v268_v30 = vsub.f32 %v7907_v18, %v267_v24 }
  0x32   :  { %v7927_v31 = vand.u32 4294901760, %v7919_v25  ;;  %v251_v32 = vand.u32 4294901760, %v250_v26  ;;  %v7961_v49 = vsub.f32 %v85_v42, %v7944_v45  ;;  %v789_v50 = vand.u32 4294901760, %v7951_v47  ;;  %v7332_v42 = vld [vmem:[#allocation7 + $0x50] ss:$12 sps:$4 sm:$0xff]  }
  0x33   :  { %v200_v33 = vsub.f32 %v7913_v21, %v7922_v27  ;;  %v257_v34 = vand.u32 4294901760, %v256_v28  ;;  %v263_v35 = vand.u32 4294901760, %v262_v29  ;;  %v269_v36 = vand.u32 4294901760, %v268_v30 }
  0x34   :  { %v211_v37 = vsub.f32 %v7919_v25, %v7927_v31  ;;  %252 = vmatprep.subr.mxu1 %v251_v32  ;;  %v7967_v51 = vsub.f32 %v80_v43, %v7948_v46  ;;  %v7971_v52 = vsub.f32 %v79_v44, %v7955_v48  ;;  %v795_v53 = vand.u32 4294901760, %v7961_v49  ;;  %v8109_v32 = vld [vmem:[#allocation7 + $0xac] ss:$12 sps:$4 sm:$0xff]   ;;  %v8172_v43 = vld [vmem:[%s9149_s1] sm:$0x3] }
  0x35   :  { %v7933_v39 = vand.u32 4294901760, %v200_v33  ;;  %258 = vmatpush1.msra.mxu1 %v257_v34  ;;  %v790_v54 = vsub.f32 %v7951_v47, %v789_v50  ;;  %v7992_v59 = vand.u32 4294901760, %v88_v56  ;;  %v8016_v8 = vand.u32 4294901760, %v87_v2  ;;  %v8115_v33 = vld [vmem:[#allocation7 + $0xa8] ss:$12 sps:$4 sm:$0xff]  }
  0x36   :  { %264 = vmatprep.subr.mxu1 %v263_v35  ;;  %v7936_v40 = vand.u32 4294901760, %v211_v37  ;;  %v801_v55 = vand.u32 4294901760, %v7967_v51  ;;  %v807_v57 = vand.u32 4294901760, %v7971_v52  ;;  %v796_v58 = vsub.f32 %v7961_v49, %v795_v53  ;;  %v8132_v34 = vld [vmem:[#allocation7 + $0x7c] ss:$12 sps:$4 sm:$0xff]  }
  0x37   :  { %202 = vmatmul.mubr.f32.vlgmr.msra.gmra.mxu0 %v7933_v39  ;;  %270 = vmatpush1.msra.mxu1 %v269_v36  ;;  %v791_v60 = vand.u32 4294901760, %v790_v54  ;;  %v8009_v4 = vsub.f32 %v88_v56, %v7992_v59  ;;  %v8019_v9 = vand.u32 4294901760, %v82_v3  ;;  %v8029_v12 = vsub.f32 %v87_v2, %v8016_v8  ;;  %v7320_v35 = vld [vmem:[#allocation7 + $0x98] ss:$12 sps:$4 sm:$0xff]   ;;  %v7324_v37 = vld [vmem:[#allocation7 + $0x80] ss:$12 sps:$4 sm:$0xff]  }
  0x38   :  { %351 = vmatpush1.msra.mxu0 %v254_v16  ;;  %207 = vmatprep.mubr.f32.mxu0 %v7834_v0  ;;  %v802_v61 = vsub.f32 %v7967_v51, %v801_v55  ;;  %v808_v62 = vsub.f32 %v7971_v52, %v807_v57  ;;  %v797_v63 = vand.u32 4294901760, %v796_v58  ;;  %v8143_v36 = vld [vmem:[#allocation7 + $0x64] ss:$12 sps:$4 sm:$0xff]   ;;  %v8174_v44 = vld [vmem:[#allocation7 + $0x1c] ss:$12 sps:$4 sm:$0xff]   ;;  %vm67_vm2 = vcmp.gt.s32.totalorder %v8172_v43, 0 }
  0x39   :  { %305 = vmatmul.mubr.f32.vlgmr.msra.gmra.mxu1 %v7899_v15  ;;  %354 = vmatprep.subr.mxu0 %v7903_v17  ;;  %v8040_v16 = vsub.f32 %v82_v3, %v8019_v9  ;;  %vm74_vm3 = vcmp.gt.s32.totalorder %v8172_v43, 7  ;;  %vm69_vm4 = vcmp.gt.s32.totalorder %v8172_v43, 2  ;;  %v8199_v54 = vld [vmem:[#allocation7 + $0x168] ss:$12 sps:$4 sm:$0xff]   ;;  %vm70_vm5 = vcmp.gt.s32.totalorder %v8172_v43, 3 }
  0x3a   :  { %310 = vmatprep.mubr.f32.mxu1 %v7834_v0  ;;  %436 = vmatprep.subr.mxu1 %v7889_v5  ;;  %v8201_v56 = vld [vmem:[#allocation7 + $0x154] ss:$12 sps:$4 sm:$0xff]   ;;  %v8208_v58 = vld [vmem:[#allocation7 + $0x150] ss:$12 sps:$4 sm:$0xff]   ;;  %vm68_vm6 = vcmp.gt.s32.totalorder %v8172_v43, 1  ;;  %vm73_vm7 = vcmp.gt.s32.totalorder %v8172_v43, 6 }
  0x3b   :  { %213 = vmatmul.mubr.f32.gmra.mxu0 %v7936_v40  ;;  %438 = vmatpush1.msra.mxu1 %v7891_v6  ;;  %v8225_v2 = vld [vmem:[#allocation7 + $0x120] ss:$12 sps:$4 sm:$0xff]   ;;  %vm72_vm8 = vcmp.gt.s32.totalorder %v8172_v43, 5  ;;  %vm71_vm9 = vcmp.gt.s32.totalorder %v8172_v43, 4 }
  0x3c   :  { %357 = vmatpush1.msra.mxu0 %v7907_v18  ;;  %390 = vmatprep.mubr.f32.mxu0 %v7834_v0  ;;  %v1335_v18 = vand.u32 4294901760, %v8029_v12  ;;  %v7353_v3 = vld [vmem:[#allocation7 + $0x140] ss:$12 sps:$4 sm:$0xff]  }
  0x3d   :  { %312 = vmatmul.mubr.f32.gmra.mxu1 %v7909_v19  ;;  %525 = vmatprep.subr.mxu0 %v249_v20  ;;  %v1341_v20 = vand.u32 4294901760, %v8040_v16 }
  0x3e   :  { %475 = vmatprep.mubr.f32.mxu1 %v7834_v0  ;;  %440 = vmatprep.subr.mxu1 %v7893_v7 }
  0x3f   :  { %393 = vmatmul.mubr.f32.vlgmr.msra.gmra.mxu0 %v7913_v21  ;;  %442 = vmatpush1.msra.mxu1 %v7895_v11 }
  0x40   :  { %529 = vmatpush1.msra.mxu0 %v255_v22  ;;  %398 = vmatprep.mubr.f32.mxu0 %v7834_v0 }
  0x41   :  { %479 = vmatmul.mubr.f32.vlgmr.msra.gmra.mxu1 %v7922_v27  ;;  %533 = vmatprep.subr.mxu0 %v261_v23  ;;  %v1336_v23 = vsub.f32 %v8029_v12, %v1335_v18 }
  0x42   :  { %484 = vmatprep.mubr.f32.mxu1 %v7834_v0  ;;  %614 = vmatprep.subr.mxu1 %v7889_v5  ;;  %v803_v5 = vand.u32 4294901760, %v802_v61  ;;  %v8216_v61 = vld [vmem:[#allocation7 + $0x138] ss:$12 sps:$4 sm:$0xff]  }
  0x43   :  { %401 = vmatmul.mubr.f32.gmra.mxu0 %v7919_v25  ;;  %616 = vmatpush1.msra.mxu1 %v7891_v6  ;;  %v81_v6 = vld [vmem:[#allocation5 + $0x20] sm:$0xff]  ;;  %v1337_v28 = vand.u32 4294901760, %v1336_v23 }
  0x44   :  { %537 = vmatpush1.msra.mxu0 %v267_v24  ;;  %570 = vmatprep.mubr.f32.mxu0 %v7834_v0  ;;  %v8021_v10 = vand.u32 4294901760, %v81_v6  ;;  %v1342_v24 = vsub.f32 %v8040_v16, %v1341_v20 }
  0x45   :  { %488 = vmatmul.mubr.f32.gmra.mxu1 %v7927_v31  ;;  %697 = vmatprep.subr.mxu0 %v7938_v41 }
  0x46   :  { %653 = vmatprep.mubr.f32.mxu1 %v7834_v0  ;;  %618 = vmatprep.subr.mxu1 %v7893_v7  ;;  %v809_v7 = vand.u32 4294901760, %v808_v62  ;;  %v8034_v13 = vsub.f32 %v81_v6, %v8021_v10  ;;  %v1343_v29 = vand.u32 4294901760, %v1342_v24  ;;  %v7352_v62 = vld [vmem:[#allocation7 + $0x158] ss:$12 sps:$4 sm:$0xff]   ;;  %v7354_v6 = vld [vmem:[#allocation7 + $0x128] ss:$12 sps:$4 sm:$0xff]  }
  0x47   :  { %572 = vmatmul.mubr.f32.vlgmr.msra.gmra.mxu0 %v7899_v15  ;;  %620 = vmatpush1.msra.mxu1 %v7895_v11  ;;  %v1329_v11 = vand.u32 4294901760, %v8009_v4  ;;  %v8292_v24 = vld [vmem:[%s9152_s4] sm:$0x3f] }
  0x48   :  { %699 = vmatpush1.msra.mxu0 %v7944_v45  ;;  %577 = vmatprep.mubr.f32.mxu0 %v7834_v0  ;;  %v1347_v22 = vand.u32 4294901760, %v8034_v13 }
  0x49   :  { %655 = vmatmul.mubr.f32.vlgmr.msra.gmra.mxu1 %v7899_v15  ;;  %701 = vmatprep.subr.mxu0 %v7948_v46  ;;  %v1330_v14 = vsub.f32 %v8009_v4, %v1329_v11 }
  0x4a   :  { %660 = vmatprep.mubr.f32.mxu1 %v7834_v0  ;;  %792 = vmatprep.subr.mxu1 %v791_v60  ;;  %v1348_v26 = vsub.f32 %v8034_v13, %v1347_v22  ;;  %v8211_v60 = vld [vmem:[#allocation7 + $0x13c] ss:$12 sps:$4 sm:$0xff]  }
  0x4b   :  { %579 = vmatmul.mubr.f32.gmra.mxu0 %v7909_v19  ;;  %798 = vmatpush1.msra.mxu1 %v797_v63  ;;  %v1331_v17 = vand.u32 4294901760, %v1330_v14  ;;  %v8219_v63 = vld [vmem:[#allocation7 + $0x124] ss:$12 sps:$4 sm:$0xff]   ;;  %v8255_v14 = vld [vmem:[#allocation7 + $0xc0] ss:$12 sps:$4 sm:$0xff]  }
  0x4c   :  { %703 = vmatpush1.msra.mxu0 %v7955_v48  ;;  %736 = vmatprep.mubr.f32.mxu0 %v7834_v0  ;;  %v1349_v30 = vand.u32 4294901760, %v1348_v26 }
  0x4d   :  { %662 = vmatmul.mubr.f32.gmra.mxu1 %v7909_v19  ;;  %888 = vmatprep.subr.mxu0 %v7951_v47  ;;  %v7336_v47 = vld [vmem:[#allocation7 + $0x38] ss:$12 sps:$4 sm:$0xff]  }
  0x4e   :  { %843 = vmatprep.mubr.f32.mxu1 %v7834_v0  ;;  %804 = vmatprep.subr.mxu1 %v803_v5  ;;  %v8234_v5 = vld [vmem:[#allocation7 + $0x108] ss:$12 sps:$4 sm:$0xff]  }
  0x4f   :  { %742 = vmatmul.mubr.f32.vlgmr.msra.gmra.mxu0 %v7933_v39  ;;  %810 = vmatpush1.msra.mxu1 %v809_v7  ;;  %v8236_v7 = vld [vmem:[#allocation7 + $0xf4] ss:$12 sps:$4 sm:$0xff]  }
  0x50   :  { %891 = vmatpush1.msra.mxu0 %v7961_v49  ;;  %747 = vmatprep.mubr.f32.mxu0 %v7834_v0  ;;  %v2305_v49 = vsel %vm74_vm3, 1, %v9155_v1 }
  0x51   :  { %845 = vmatmul.mubr.f32.vlgmr.msra.gmra.mxu1 %v7899_v15  ;;  %894 = vmatprep.subr.mxu0 %v7967_v51  ;;  %v7340_v51 = vld [vmem:[#allocation7 + $0x20] ss:$12 sps:$4 sm:$0xff]  }
  0x52   :  { %850 = vmatprep.mubr.f32.mxu1 %v7834_v0  ;;  %976 = vmatprep.subr.mxu1 %v7938_v41 }
  0x53   :  { %753 = vmatmul.mubr.f32.gmra.mxu0 %v7936_v40  ;;  %978 = vmatpush1.msra.mxu1 %v7944_v45 }
  0x54   :  { %897 = vmatpush1.msra.mxu0 %v7971_v52  ;;  %930 = vmatprep.mubr.f32.mxu0 %v7834_v0  ;;  %v8192_v52 = vld [vmem:[#allocation7 + $0x16c] ss:$12 sps:$4 sm:$0xff]  }
  0x55   :  { %852 = vmatmul.mubr.f32.gmra.mxu1 %v7909_v19  ;;  %1065 = vmatprep.subr.mxu0 %v789_v50  ;;  %v8190_v50 = vld [vmem:[#allocation7] ss:$12 sps:$4 sm:$0xff]  }
  0x56   :  { %1015 = vmatprep.mubr.f32.mxu1 %v7834_v0  ;;  %980 = vmatprep.subr.mxu1 %v7948_v46 }
  0x57   :  { %933 = vmatmul.mubr.f32.vlgmr.msra.gmra.mxu0 %v7913_v21  ;;  %982 = vmatpush1.msra.mxu1 %v7955_v48 }
  0x58   :  { %1069 = vmatpush1.msra.mxu0 %v795_v53  ;;  %938 = vmatprep.mubr.f32.mxu0 %v7834_v0  ;;  %v3188_v53 = vsel %vm69_vm4, 1, %v9155_v1 }
  0x59   :  { %1019 = vmatmul.mubr.f32.vlgmr.msra.gmra.mxu1 %v7922_v27  ;;  %1073 = vmatprep.subr.mxu0 %v801_v55  ;;  %v7344_v55 = vld [vmem:[#allocation7 + $0x8] ss:$12 sps:$4 sm:$0xff]  }
  0x5a   :  { %1024 = vmatprep.mubr.f32.mxu1 %v7834_v0  ;;  %1154 = vmatprep.subr.mxu1 %v7938_v41  ;;  %v8167_v41 = vld [vmem:[#allocation7 + $0x30] ss:$12 sps:$4 sm:$0xff]  }
  0x5b   :  { %941 = vmatmul.mubr.f32.gmra.mxu0 %v7919_v25  ;;  %1156 = vmatpush1.msra.mxu1 %v7944_v45  ;;  %v2018_v45 = vsel %vm67_vm2, 1, %v9155_v1 }
  0x5c   :  { %1077 = vmatpush1.msra.mxu0 %v807_v57  ;;  %1110 = vmatprep.mubr.f32.mxu0 %v7834_v0  ;;  %v3776_v57 = vsel %vm70_vm5, 1, %v9155_v1 }
  0x5d   :  { %1028 = vmatmul.mubr.f32.gmra.mxu1 %v7927_v31  ;;  %1237 = vmatprep.subr.mxu0 %v7992_v59 }
  0x5e   :  { %1193 = vmatprep.mubr.f32.mxu1 %v7834_v0  ;;  %1158 = vmatprep.subr.mxu1 %v7948_v46  ;;  %v8181_v46 = vld [vmem:[#allocation7 + $0x18] ss:$12 sps:$4 sm:$0xff]  }
  0x5f   :  { %1112 = vmatmul.mubr.f32.vlgmr.msra.gmra.mxu0 %v7899_v15  ;;  %1160 = vmatpush1.msra.mxu1 %v7955_v48  ;;  %v8183_v48 = vld [vmem:[#allocation7 + $0x4] ss:$12 sps:$4 sm:$0xff]  }
  0x60   :  { %1239 = vmatpush1.msra.mxu0 %v8016_v8  ;;  %1117 = vmatprep.mubr.f32.mxu0 %v7834_v0 }
  0x61   :  { %1195 = vmatmul.mubr.f32.vlgmr.msra.gmra.mxu1 %v7899_v15  ;;  %1241 = vmatprep.subr.mxu0 %v8019_v9 }
  0x62   :  { %1200 = vmatprep.mubr.f32.mxu1 %v7834_v0  ;;  %1332 = vmatprep.subr.mxu1 %v1331_v17  ;;  %v7358_v17 = vld [vmem:[#allocation7 + $0xc8] ss:$12 sps:$4 sm:$0xff]  }
  0x63   :  { %1119 = vmatmul.mubr.f32.gmra.mxu0 %v7909_v19  ;;  %1338 = vmatpush1.msra.mxu1 %v1337_v28 }
  0x64   :  { %1243 = vmatpush1.msra.mxu0 %v8021_v10  ;;  %1276 = vmatprep.mubr.f32.mxu0 %v7834_v0 }
  0x65   :  { %1202 = vmatmul.mubr.f32.gmra.mxu1 %v7909_v19  ;;  %1428 = vmatprep.subr.mxu0 %v8009_v4  ;;  %v8229_v4 = vld [vmem:[#allocation7 + $0x10c] ss:$12 sps:$4 sm:$0xff]  }
  0x66   :  { %1383 = vmatprep.mubr.f32.mxu1 %v7834_v0  ;;  %1344 = vmatprep.subr.mxu1 %v1343_v29  ;;  %v7360_v29 = vld [vmem:[#allocation7 + $0x98] ss:$12 sps:$4 sm:$0xff]  }
  0x67   :  { %1282 = vmatmul.mubr.f32.vlgmr.msra.gmra.mxu0 %v7933_v39  ;;  %1350 = vmatpush1.msra.mxu1 %v1349_v30  ;;  %v7328_v39 = vld [vmem:[#allocation7 + $0x68] ss:$12 sps:$4 sm:$0xff]  }
  0x68   :  { %1431 = vmatpush1.msra.mxu0 %v8029_v12  ;;  %1287 = vmatprep.mubr.f32.mxu0 %v7834_v0  ;;  %v7356_v12 = vld [vmem:[#allocation7 + $0xf8] ss:$12 sps:$4 sm:$0xff]  }
  0x69   :  { %1385 = vmatmul.mubr.f32.vlgmr.msra.gmra.mxu1 %v7899_v15  ;;  %1434 = vmatprep.subr.mxu0 %v8040_v16  ;;  %v7357_v16 = vld [vmem:[#allocation7 + $0xe0] ss:$12 sps:$4 sm:$0xff]  }
  0x6a   :  { %1390 = vmatprep.mubr.f32.mxu1 %v7834_v0  ;;  %1516 = vmatprep.subr.mxu1 %v7992_v59 }
  0x6b   :  { %1293 = vmatmul.mubr.f32.gmra.mxu0 %v7936_v40  ;;  %1518 = vmatpush1.msra.mxu1 %v8016_v8  ;;  %v8162_v40 = vld [vmem:[#allocation7 + $0x34] ss:$12 sps:$4 sm:$0xff]  }
  0x6c   :  { %1437 = vmatpush1.msra.mxu0 %v8034_v13  ;;  %1470 = vmatprep.mubr.f32.mxu0 %v7834_v0  ;;  %v8250_v13 = vld [vmem:[#allocation7 + $0xc4] ss:$12 sps:$4 sm:$0xff]  }
  0x6d   :  { %1392 = vmatmul.mubr.f32.gmra.mxu1 %v7909_v19  ;;  %1605 = vmatprep.subr.mxu0 %v1329_v11  ;;  %v8248_v11 = vld [vmem:[#allocation7 + $0xd8] ss:$12 sps:$4 sm:$0xff]  }
  0x6e   :  { %1555 = vmatprep.mubr.f32.mxu1 %v7834_v0  ;;  %1520 = vmatprep.subr.mxu1 %v8019_v9 }
  0x6f   :  { %1473 = vmatmul.mubr.f32.vlgmr.msra.gmra.mxu0 %v7913_v21  ;;  %1522 = vmatpush1.msra.mxu1 %v8021_v10  ;;  %v8122_v21 = vld [vmem:[#allocation7 + $0x94] ss:$12 sps:$4 sm:$0xff]  }
  0x70   :  { %1609 = vmatpush1.msra.mxu0 %v1335_v18  ;;  %1478 = vmatprep.mubr.f32.mxu0 %v7834_v0  ;;  %v91_v18 = vlaneseq }
  0x71   :  { %1559 = vmatmul.mubr.f32.vlgmr.msra.gmra.mxu1 %v7922_v27  ;;  %1613 = vmatprep.subr.mxu0 %v1341_v20  ;;  %v8128_v27 = vld [vmem:[#allocation7 + $0x90] ss:$12 sps:$4 sm:$0xff]  }
  0x72   :  { %1564 = vmatprep.mubr.f32.mxu1 %v7834_v0  ;;  %1694 = vmatprep.subr.mxu1 %v7992_v59  ;;  %v7348_v59 = vld [vmem:[#allocation7 + $0x170] ss:$12 sps:$4 sm:$0xff]   ;;  %v8285_v20 = vshrl.u32 %v91_v18, 7 }
  0x73   :  { %1481 = vmatmul.mubr.f32.gmra.mxu0 %v7919_v25  ;;  %1696 = vmatpush1.msra.mxu1 %v8016_v8  ;;  %v7316_v25 = vld [vmem:[#allocation7 + $0xb0] ss:$12 sps:$4 sm:$0xff]  }
  0x74   :  { %1617 = vmatpush1.msra.mxu0 %v1347_v22  ;;  %1650 = vmatprep.mubr.f32.mxu0 %v7834_v0  ;;  %v8241_v8 = vld [vmem:[#allocation7 + $0xf0] ss:$12 sps:$4 sm:$0xff]   ;;  %v97_v23 = vsub.s32 1, %v8285_v20  ;;  %v93_v26 = vsub.s32 0, %v8285_v20  ;;  %v105_v18 = vsub.s32 3, %v8285_v20 }
  0x75   :  { %1568 = vmatmul.mubr.f32.gmra.mxu1 %v7927_v31  ;;  %1908 = vmatprep.subr.bf16.mxu0 %v8109_v32  ;;  %v8140_v31 = vld [vmem:[#allocation7 + $0x78] ss:$12 sps:$4 sm:$0xff]   ;;  %v7359_v22 = vld [vmem:[#allocation7 + $0xb0] ss:$12 sps:$4 sm:$0xff]  }
  0x76   :  { %1733 = vmatprep.mubr.f32.mxu1 %v7834_v0  ;;  %1698 = vmatprep.subr.mxu1 %v8019_v9  ;;  %v7355_v9 = vld [vmem:[#allocation7 + $0x110] ss:$12 sps:$4 sm:$0xff]   ;;  %v98_v28 = vrot.slane %v8292_v24, %v97_v23 }
  0x77   :  { %1652 = vmatmul.mubr.f32.vlgmr.msra.gmra.mxu0 %v7899_v15  ;;  %1700 = vmatpush1.msra.mxu1 %v8021_v10  ;;  %v8243_v10 = vld [vmem:[#allocation7 + $0xdc] ss:$12 sps:$4 sm:$0xff]  }
  0x78   :  { %1909 = vmatpush1.bf16.msra.mxu0 %v8115_v33  ;;  %1657 = vmatprep.mubr.f32.mxu0 %v7834_v0 }
  0x79   :  { %1735 = vmatmul.mubr.f32.vlgmr.msra.gmra.mxu1 %v7899_v15  ;;  %1910 = vmatprep.subr.bf16.mxu0 %v8122_v21  ;;  %v8149_v15 = vld [vmem:[#allocation7 + $0x60] ss:$12 sps:$4 sm:$0xff]  }
  0x7a   :  { %1740 = vmatprep.mubr.f32.mxu1 %v7834_v0  ;;  %6960 = vmatprep.subr.bf16.mxu1 %v7834_v0 }
  0x7b   :  { %1659 = vmatmul.mubr.f32.gmra.mxu0 %v7909_v19  ;;  %6961 = vmatpush3.bf16.msra.mxu1 %v7316_v25  ;;  %v7361_v25 = vld [vmem:[#allocation7 + $0x80] ss:$12 sps:$4 sm:$0xff]  }
  0x7c   :  { %1911 = vmatpush1.bf16.msra.mxu0 %v8128_v27  ;;  %6962 = vmatprep.subr.bf16.mxu1 %v7834_v0 }
  0x7d   :  { %1742 = vmatmul.mubr.f32.gmra.mxu1 %v7909_v19  ;;  %1912 = vmatprep.subr.bf16.mxu0 %v8132_v34  ;;  %v8160_v19 = vld [vmem:[#allocation7 + $0x48] ss:$12 sps:$4 sm:$0xff]  }
  0x7e   :  { %1940 = vmatprep.mubr.bf16.mxu0 %v9155_v1  ;;  %6976 = vmatprep.mubr.msk.bf16.mxu1 %vm7836_vm1, %v7834_v0 }
  0x7f   :  { %6963 = vmatpush3.bf16.msra.mxu1 %v7320_v35  ;;  %2020 = vperm.xlu0 %7293, %v2018_v45  }
  0x80   :  { %1913 = vmatpush1.bf16.msra.mxu0 %v8140_v31  ;;  %6964 = vmatprep.subr.bf16.mxu1 %v7834_v0 }
  0x81   :  { %1914 = vmatprep.subr.bf16.mxu0 %v8143_v36 }
  0x83   :  { %6965 = vmatpush3.bf16.msra.mxu1 %v7324_v37  ;;  %2307 = vperm.xlu0 %7293, %v2305_v49  }
  0x84   :  { %1915 = vmatpush1.bf16.msra.mxu0 %v8149_v15  ;;  %6966 = vmatprep.subr.bf16.mxu1 %v7834_v0 }
  0x85   :  { %1916 = vmatprep.subr.bf16.mxu0 %v8153_v38 }
  0x87   :  { %6967 = vmatpush3.bf16.msra.mxu1 %v7328_v39  ;;  %3190 = vperm.xlu0 %7293, %v3188_v53   ;;  %v7362_v39 = vld [vmem:[#allocation7 + $0x68] ss:$12 sps:$4 sm:$0xff]  }
  0x88   :  { %1917 = vmatpush1.bf16.msra.mxu0 %v8160_v19  ;;  %6968 = vmatprep.subr.bf16.mxu1 %v7834_v0 }
  0x89   :  { %1918 = vmatprep.subr.bf16.mxu0 %v8162_v40 }
  0x8b   :  { %6969 = vmatpush3.bf16.msra.mxu1 %v7332_v42  ;;  %3778 = vperm.xlu0 %7293, %v3776_v57  }
  0x8c   :  { %1919 = vmatpush1.bf16.msra.mxu0 %v8167_v41  ;;  %6970 = vmatprep.subr.bf16.mxu1 %v7834_v0 }
  0x8d   :  { %1920 = vmatprep.subr.bf16.mxu0 %v8174_v44 }
  0x8f   :  { %6971 = vmatpush3.bf16.msra.mxu1 %v7336_v47  ;;  %v7363_v47 = vld [vmem:[#allocation7 + $0x50] ss:$12 sps:$4 sm:$0xff]  }
  0x90   :  { %1921 = vmatpush1.bf16.msra.mxu0 %v8181_v46  ;;  %6972 = vmatprep.subr.bf16.mxu1 %v7834_v0 }
  0x91   :  { %1922 = vmatprep.subr.bf16.mxu0 %v8183_v48 }
  0x93   :  { %6973 = vmatpush3.bf16.msra.mxu1 %v7340_v51 }
  0x94   :  { %1923 = vmatpush1.bf16.msra.mxu0 %v8190_v50  ;;  %6974 = vmatprep.subr.bf16.mxu1 %v7834_v0 }
  0x95   :  { %2185 = vmatprep.subr.bf16.mxu0 %v8192_v52 }
  0x97   :  { %1941 = vmatmul.mubr.bf16.vlgmr.msra.gmra.mxu0 %v9155_v1  ;;  %6975 = vmatpush3.bf16.msra.mxu1 %v7344_v55 }
  0x98   :  { %2186 = vmatpush1.bf16.msra.mxu0 %v8199_v54  ;;  %6980 = vmatprep.subr.bf16.mxu1 %v7834_v0 }
  0x99   :  { %2187 = vmatprep.subr.bf16.mxu0 %v8201_v56  ;;  %2217 = vmatprep.mubr.bf16.mxu0 %v9155_v1 }
  0x9a   :  { %6977 = vmatmul.mubr.bf16.vlgmr.msra.gmra.mxu1 %v9155_v1 }
  0x9b   :  { %6981 = vmatpush3.bf16.msra.mxu1 %v7348_v59  ;;  %6996 = vmatprep.mubr.msk.bf16.mxu1 %vm7836_vm1, %v7834_v0  ;;  %v7364_v59 = vld [vmem:[#allocation7 + $0x38] ss:$12 sps:$4 sm:$0xff]  }
  0x9c   :  { %2188 = vmatpush1.bf16.msra.mxu0 %v8208_v58  ;;  %6982 = vmatprep.subr.bf16.mxu1 %v7834_v0 }
  0x9d   :  { %2189 = vmatprep.subr.bf16.mxu0 %v8211_v60 }
  0x9f   :  { %6983 = vmatpush3.bf16.msra.mxu1 %v7352_v62 }
  0xa0   :  { %2190 = vmatpush1.bf16.msra.mxu0 %v8216_v61  ;;  %6984 = vmatprep.subr.bf16.mxu1 %v7834_v0 }
  0xa1   :  { %2191 = vmatprep.subr.bf16.mxu0 %v8219_v63 }
  0xa3   :  { %6985 = vmatpush3.bf16.msra.mxu1 %v7353_v3 }
  0xa4   :  { %2192 = vmatpush1.bf16.msra.mxu0 %v8225_v2  ;;  %6986 = vmatprep.subr.bf16.mxu1 %v7834_v0 }
  0xa5   :  { %2193 = vmatprep.subr.bf16.mxu0 %v8229_v4 }
  0xa7   :  { %6987 = vmatpush3.bf16.msra.mxu1 %v7354_v6 }
  0xa8   :  { %2194 = vmatpush1.bf16.msra.mxu0 %v8234_v5  ;;  %6988 = vmatprep.subr.bf16.mxu1 %v7834_v0 }
  0xa9   :  { %2195 = vmatprep.subr.bf16.mxu0 %v8236_v7 }
  0xab   :  { %6989 = vmatpush3.bf16.msra.mxu1 %v7355_v9  ;;  %v101_v9 = vsub.s32 2, %v8285_v20 }
  0xac   :  { %2196 = vmatpush1.bf16.msra.mxu0 %v8241_v8  ;;  %6990 = vmatprep.subr.bf16.mxu1 %v7834_v0 }
  0xad   :  { %2197 = vmatprep.subr.bf16.mxu0 %v8243_v10 }
  0xaf   :  { %6991 = vmatpush3.bf16.msra.mxu1 %v7356_v12 }
  0xb0   :  { %2198 = vmatpush1.bf16.msra.mxu0 %v8248_v11  ;;  %6992 = vmatprep.subr.bf16.mxu1 %v7834_v0 }
  0xb1   :  { %2199 = vmatprep.subr.bf16.mxu0 %v8250_v13 }
  0xb3   :  { %6993 = vmatpush3.bf16.msra.mxu1 %v7357_v16 }
  0xb4   :  { %2200 = vmatpush1.bf16.msra.mxu0 %v8255_v14  ;;  %6994 = vmatprep.subr.bf16.mxu1 %v7834_v0 }
  0xb5   :  { %2478 = vmatprep.subr.bf16.mxu0 %v8109_v32 }
  0xb7   :  { %2218 = vmatmul.mubr.bf16.vlgmr.msra.gmra.mxu0 %v9155_v1  ;;  %6995 = vmatpush3.bf16.msra.mxu1 %v7358_v17 }
  0xb8   :  { %2479 = vmatpush1.bf16.msra.mxu0 %v8115_v33  ;;  %7000 = vmatprep.subr.bf16.mxu1 %v7834_v0 }
  0xb9   :  { %2480 = vmatprep.subr.bf16.mxu0 %v8122_v21  ;;  %2510 = vmatprep.mubr.bf16.mxu0 %v9155_v1  ;;  %v8302_v21 = vrot.slane %v8292_v24, %v93_v26 }
  0xba   :  { %6997 = vmatmul.mubr.bf16.vlgmr.msra.gmra.mxu1 %v9155_v1 }
  0xbb   :  { %7016 = vmatprep.mubr.msk.bf16.mxu1 %vm7836_vm1, %v7834_v0  ;;  %7001 = vmatpush3.bf16.msra.mxu1 %v7359_v22  ;;  %v7365_v22 = vld [vmem:[#allocation7 + $0x20] ss:$12 sps:$4 sm:$0xff]  }
  0xbc   :  { %2481 = vmatpush1.bf16.msra.mxu0 %v8128_v27  ;;  %7002 = vmatprep.subr.bf16.mxu1 %v7834_v0 }
  0xbd   :  { %2482 = vmatprep.subr.bf16.mxu0 %v8132_v34 }
  0xbf   :  { %7003 = vmatpush3.bf16.msra.mxu1 %v7360_v29 }
  0xc0   :  { %2483 = vmatpush1.bf16.msra.mxu0 %v8140_v31  ;;  %7004 = vmatprep.subr.bf16.mxu1 %v7834_v0 }
  0xc1   :  { %2484 = vmatprep.subr.bf16.mxu0 %v8143_v36 }
  0xc3   :  { %7005 = vmatpush3.bf16.msra.mxu1 %v7361_v25 }
  0xc4   :  { %2485 = vmatpush1.bf16.msra.mxu0 %v8149_v15  ;;  %7006 = vmatprep.subr.bf16.mxu1 %v7834_v0 }
  0xc5   :  { %2486 = vmatprep.subr.bf16.mxu0 %v8153_v38 }
  0xc7   :  { %7007 = vmatpush3.bf16.msra.mxu1 %v7362_v39 }
  0xc8   :  { %2487 = vmatpush1.bf16.msra.mxu0 %v8160_v19  ;;  %7008 = vmatprep.subr.bf16.mxu1 %v7834_v0 }
  0xc9   :  { %2488 = vmatprep.subr.bf16.mxu0 %v8162_v40 }
  0xcb   :  { %7009 = vmatpush3.bf16.msra.mxu1 %v7363_v47 }
  0xcc   :  { %2489 = vmatpush1.bf16.msra.mxu0 %v8167_v41  ;;  %7010 = vmatprep.subr.bf16.mxu1 %v7834_v0 }
  0xcd   :  { %2490 = vmatprep.subr.bf16.mxu0 %v8174_v44 }
  0xcf   :  { %7011 = vmatpush3.bf16.msra.mxu1 %v7364_v59 }
  0xd0   :  { %2491 = vmatpush1.bf16.msra.mxu0 %v8181_v46  ;;  %7012 = vmatprep.subr.bf16.mxu1 %v7834_v0 }
  0xd1   :  { %2492 = vmatprep.subr.bf16.mxu0 %v8183_v48 }
  0xd3   :  { %7013 = vmatpush3.bf16.msra.mxu1 %v7365_v22 }
  0xd4   :  { %2493 = vmatpush1.bf16.msra.mxu0 %v8190_v50  ;;  %7014 = vmatprep.subr.bf16.mxu1 %v7834_v0 }
  0xd5   :  { %2771 = vmatprep.subr.bf16.mxu0 %v8192_v52 }
  0xf7   :  { %v8296_v30 = vpop.f32.mrf.mxu0 }
  0xf9   :  { %v205_v32 = vpop.f32.mrf.mxu0  ;;  %v8298_v33 = vpop.f32.mrf.mxu1 }
  0xfa   :  { %v206_v27 = vadd.f32 %v205_v32, %v98_v28  ;;  %v102_v32 = vrot.slane %v8292_v24, %v101_v9 }
  0xfb   :  { %v214_v34 = vpop.f32.mrf.mxu0  ;;  %v308_v31 = vpop.f32.mrf.mxu1 }
  0xfc   :  { %v215_v35 = vadd.f32 %v214_v34, %v8302_v21  ;;  %v309_v36 = vadd.f32 %v308_v31, %v206_v27 }
  0xfd   :  { %v216_v15 = vpop.f32.mrf.mxu0  ;;  %v313_v37 = vpop.f32.mrf.mxu1 }
  0xfe   :  { %v217_v38 = vadd.f32 %v216_v15, %v98_v28  ;;  %v314_v19 = vadd.f32 %v313_v37, %v215_v35  ;;  %v8326_v35 = vrot.slane %v8292_v24, %v105_v18 }
  0xff   :  { %v8306_v40 = vpop.f32.mrf.mxu0  ;;  %v315_v41 = vpop.f32.mrf.mxu1 }
 0x100   :  { %v316_v42 = vadd.f32 %v315_v41, %v217_v38 }
 0x101   :  { %v396_v44 = vpop.f32.mrf.mxu0  ;;  %v8308_v45 = vpop.f32.mrf.mxu1 }
 0x102   :  { %v397_v46 = vadd.f32 %v396_v44, %v309_v36  ;;  %v7366_v36 = vld [vmem:[#allocation7 + $0x8] ss:$12 sps:$4 sm:$0xff]  }
 0x103   :  { %v402_v48 = vpop.f32.mrf.mxu0  ;;  %v482_v49 = vpop.f32.mrf.mxu1  ;;  %7015 = vmatpush3.bf16.msra.mxu1 %v7366_v36 }
 0x104   :  { %v403_v50 = vadd.f32 %v402_v48, %v314_v19  ;;  %v483_v51 = vadd.f32 %v482_v49, %v397_v46  ;;  %7020 = vmatprep.subr.bf16.mxu1 %v7834_v0 }
 0x105   :  { %v404_v52 = vpop.f32.mrf.mxu0  ;;  %v489_v53 = vpop.f32.mrf.mxu1 }
 0x106   :  { %v405_v55 = vadd.f32 %v404_v52, %v316_v42  ;;  %v490_v57 = vadd.f32 %v489_v53, %v403_v50 }
 0x107   :  { %v8312_v62 = vpop.f32.mrf.mxu0  ;;  %v491_v3 = vpop.f32.mrf.mxu1 }
 0x108   :  { %v492_v6 = vadd.f32 %v491_v3, %v405_v55 }
 0x109   :  { %v575_v12 = vpop.f32.mrf.mxu0  ;;  %v8315_v16 = vpop.f32.mrf.mxu1 }
 0x10a   :  { %v576_v17 = vadd.f32 %v575_v12, %v483_v51 }
 0x10b   :  { %v580_v23 = vpop.f32.mrf.mxu0  ;;  %v658_v26 = vpop.f32.mrf.mxu1 }
 0x10c   :  { %v581_v28 = vadd.f32 %v580_v23, %v490_v57  ;;  %v8319_v29 = vadd.f32 %v658_v26, %v576_v17 }
 0x10d   :  { %v582_v27 = vpop.f32.mrf.mxu0  ;;  %v663_v25 = vpop.f32.mrf.mxu1 }
 0x10e   :  { %v583_v34 = vadd.f32 %v582_v27, %v492_v6  ;;  %v8323_v31 = vadd.f32 %v663_v25, %v581_v28 }
 0x10f   :  { %v743_v15 = vpop.f32.mrf.mxu0  ;;  %v665_v37 = vpop.f32.mrf.mxu1 }
 0x110   :  { %v744_v38 = vadd.f32 %v743_v15, %v102_v32  ;;  %v8328_v19 = vadd.f32 %v665_v37, %v583_v34  ;;  %v109_v34 = vsub.s32 4, %v8285_v20 }
 0x111   :  { %v745_v39 = vpop.f32.mrf.mxu0  ;;  %v846_v41 = vpop.f32.mrf.mxu1 }
 0x112   :  { %v746_v42 = vadd.f32 %v745_v39, %v8326_v35  ;;  %v847_v44 = vadd.f32 %v846_v41, %v744_v38  ;;  %v113_v38 = vsub.s32 5, %v8285_v20 }
 0x113   :  { %v754_v46 = vpop.f32.mrf.mxu0  ;;  %v848_v47 = vpop.f32.mrf.mxu1 }
 0x114   :  { %v755_v48 = vadd.f32 %v754_v46, %v102_v32  ;;  %v849_v49 = vadd.f32 %v848_v47, %v746_v42  ;;  %v8349_v46 = vrot.slane %v8292_v24, %v109_v34 }
 0x115   :  { %v8332_v50 = vpop.f32.mrf.mxu0  ;;  %v853_v51 = vpop.f32.mrf.mxu1 }
 0x116   :  { %v854_v52 = vadd.f32 %v853_v51, %v755_v48  ;;  %v114_v51 = vrot.slane %v8292_v24, %v113_v38 }
 0x117   :  { %v934_v53 = vpop.f32.mrf.mxu0  ;;  %v8334_v55 = vpop.f32.mrf.mxu1 }
 0x118   :  { %v935_v57 = vadd.f32 %v934_v53, %v847_v44 }
 0x119   :  { %v936_v59 = vpop.f32.mrf.mxu0  ;;  %v1020_v3 = vpop.f32.mrf.mxu1 }
 0x11a   :  { %v937_v6 = vadd.f32 %v936_v59, %v849_v49  ;;  %v1021_v9 = vadd.f32 %v1020_v3, %v935_v57 }
 0x11b   :  { %v942_v12 = vpop.f32.mrf.mxu0  ;;  %v1022_v17 = vpop.f32.mrf.mxu1 }
 0x11c   :  { %v943_v18 = vadd.f32 %v942_v12, %v854_v52  ;;  %v1023_v22 = vadd.f32 %v1022_v17, %v937_v6 }
 0x11d   :  { %v8336_v23 = vpop.f32.mrf.mxu0  ;;  %v1029_v26 = vpop.f32.mrf.mxu1 }
 0x11e   :  { %v1030_v28 = vadd.f32 %v1029_v26, %v943_v18 }
 0x11f   :  { %v1113_v32 = vpop.f32.mrf.mxu0  ;;  %v8338_v27 = vpop.f32.mrf.mxu1 }
 0x120   :  { %v8340_v25 = vadd.f32 %v1113_v32, %v1021_v9 }
 0x121   :  { %v1115_v36 = vpop.f32.mrf.mxu0  ;;  %v8343_v15 = vpop.f32.mrf.mxu1 }
 0x122   :  { %v1116_v37 = vadd.f32 %v1115_v36, %v1023_v22 }
 0x123   :  { %v1120_v39 = vpop.f32.mrf.mxu0  ;;  %v1198_v41 = vpop.f32.mrf.mxu1 }
 0x124   :  { %v1121_v42 = vadd.f32 %v1120_v39, %v1030_v28  ;;  %v8346_v44 = vadd.f32 %v1198_v41, %v1116_v37 }
 0x125   :  { %v8351_v47 = vpop.f32.mrf.mxu0  ;;  %v1203_v48 = vpop.f32.mrf.mxu1 }
 0x126   :  { %v8353_v49 = vadd.f32 %v1203_v48, %v1121_v42 }
 0x127   :  { %v1283_v52 = vpop.f32.mrf.mxu0  ;;  %v8356_v53 = vpop.f32.mrf.mxu1 }
 0x128   :  { %v1284_v20 = vadd.f32 %v1283_v52, %v8349_v46 }
 0x129   :  { %v1285_v57 = vpop.f32.mrf.mxu0  ;;  %v1386_v59 = vpop.f32.mrf.mxu1 }
 0x12a   :  { %v1286_v3 = vadd.f32 %v1285_v57, %v114_v51  ;;  %v1387_v6 = vadd.f32 %v1386_v59, %v1284_v20 }
 0x12b   :  { %v8359_v9 = vpop.f32.mrf.mxu0  ;;  %v1388_v12 = vpop.f32.mrf.mxu1 }
 0x12c   :  { %v1389_v17 = vadd.f32 %v1388_v12, %v1286_v3  ;;  %v2600_v12 = vsel %vm68_vm6, 1, %v9155_v1 }
 0x12d   :  { %v1296_v18 = vpop.f32.mrf.mxu0  ;;  %v8361_v22 = vpop.f32.mrf.mxu1  ;;  %2602 = vperm.xlu1 %7294, %v2600_v12  }
 0x12e   :  { %v1297_v26 = vadd.f32 %v1296_v18, %v114_v51 }
 0x12f   :  { %v1474_v28 = vpop.f32.mrf.mxu0  ;;  %v1395_v32 = vpop.f32.mrf.mxu1 }
 0x130   :  { %v1475_v24 = vadd.f32 %v1474_v28, %v1387_v6  ;;  %v1396_v34 = vadd.f32 %v1395_v32, %v1297_v26  ;;  %v2893_v32 = vsel %vm73_vm7, 1, %v9155_v1 }
 0x131   :  { %v1476_v36 = vpop.f32.mrf.mxu0  ;;  %v1560_v37 = vpop.f32.mrf.mxu1  ;;  %2895 = vperm.xlu1 %7294, %v2893_v32  }
 0x132   :  { %v1477_v38 = vadd.f32 %v1476_v36, %v1389_v17  ;;  %v1561_v39 = vadd.f32 %v1560_v37, %v1475_v24 }
 0x133   :  { %v8363_v41 = vpop.f32.mrf.mxu0  ;;  %v1562_v42 = vpop.f32.mrf.mxu1 }
 0x134   :  { %v1563_v48 = vadd.f32 %v1562_v42, %v1477_v38  ;;  %v3481_v42 = vsel %vm72_vm8, 1, %v9155_v1 }
 0x135   :  { %v1484_v52 = vpop.f32.mrf.mxu0  ;;  %v8365_v20 = vpop.f32.mrf.mxu1  ;;  %3483 = vperm.xlu1 %7294, %v3481_v42  }
 0x136   :  { %v1485_v57 = vadd.f32 %v1484_v52, %v1396_v34 }
 0x137   :  { %v1653_v59 = vpop.f32.mrf.mxu0  ;;  %v1571_v3 = vpop.f32.mrf.mxu1 }
 0x138   :  { %v1654_v51 = vadd.f32 %v1653_v59, %v1561_v39  ;;  %v1572_v6 = vadd.f32 %v1571_v3, %v1485_v57  ;;  %v4057_v57 = vsel %vm71_vm9, 1, %v9155_v1  ;;  %v204_v59 = vadd.f32 %v8296_v30, %v8302_v21 }
 0x139   :  { %v1655_v17 = vpop.f32.mrf.mxu0  ;;  %v1736_v18 = vpop.f32.mrf.mxu1  ;;  %4059 = vperm.xlu1 %7294, %v4057_v57  }
 0x13a   :  { %v1656_v26 = vadd.f32 %v1655_v17, %v1563_v48  ;;  %v8370_v28 = vadd.f32 %v1736_v18, %v1654_v51  ;;  %v307_v3 = vadd.f32 %v8298_v33, %v204_v59  ;;  %v1295_v59 = vadd.f32 %v8359_v9, %v8349_v46 }
 0x13b   :  { %v1660_v24 = vpop.f32.mrf.mxu0  ;;  %v1738_v34 = vpop.f32.mrf.mxu1 }
 0x13c   :  { %v8374_v36 = vadd.f32 %v1738_v34, %v1656_v26  ;;  %v395_v51 = vadd.f32 %v8306_v40, %v307_v3 }
 0x13d   :  { %v1662_v37 = vpop.f32.mrf.mxu0  ;;  %v8376_v38 = vpop.f32.mrf.mxu1 }
 0x13e   :  { %v1663_v39 = vadd.f32 %v1662_v37, %v1572_v6  ;;  %v481_v6 = vadd.f32 %v8308_v45, %v395_v51 }
 0x13f   :  { %v1745_v52 = vpop.f32.mrf.mxu1 }
 0x140   :  { %v8380_v48 = vadd.f32 %v1745_v52, %v1663_v39  ;;  %v574_v12 = vadd.f32 %v8312_v62, %v481_v6  ;;  %v757_v62 = vadd.f32 %v8332_v50, %v8326_v35  ;;  %v1394_v6 = vadd.f32 %v8361_v22, %v1295_v59 }
 0x142   :  { %v8390_v17 = vadd.f32 %v8315_v16, %v574_v12  ;;  %v856_v52 = vadd.f32 %v8334_v55, %v757_v62  ;;  %v8405_v12 = vld [vmem:[%s9153_s5] ss:$0 sm:$0xff]  ;;  %v1483_v50 = vadd.f32 %v8363_v41, %v1394_v6 }
 0x144   :  { %v945_v57 = vadd.f32 %v8336_v23, %v856_v52  ;;  %v1570_v22 = vadd.f32 %v8365_v20, %v1483_v50  ;;  %v8438_v50 = vld [vmem:[%s9153_s5 + $0x1] ss:$0 sm:$0xff] }
 0x146   :  { %v1032_v3 = vadd.f32 %v8338_v27, %v945_v57 }
 0x148   :  { %v1123_v35 = vadd.f32 %v8351_v47, %v1032_v3 }
 0x14a   :  { %v8411_v46 = vadd.f32 %v8356_v53, %v1123_v35 }
 0x157   :  { %v1942_v43 = vpop.f32.mrf.mxu0 }
 0x158   :  { %v1990_v18 = vadd.f32 %v1942_v43, %v8390_v17 }
 0x159   :  { %v1944_v26 = vpop.f32.mrf.mxu0 }
 0x15a   :  { %v6388_v32 = vmul.f32 -1.442695, %v1990_v18  ;;  %v1983_v37 = vpop.f32.mrf.mxu1  ;;  %v1991_v33 = vadd.f32 %v1944_v26, %v8319_v29  ;;  %v8416_v26 = vadd.f32 %v8343_v15, %v8340_v25 }
 0x15b   :  { %v1946_v34 = vpop.f32.mrf.mxu0  ;;  %v2010_v23 = vadd.f32 %v8405_v12, %v1983_v37 }
 0x15c   :  { %7579 = vpow2.f32 %v6388_v32  ;;  %v6978_v21 = vpop.f32.mrf.mxu1  ;;  %v6389_v45 = vmul.f32 -1.442695, %v1991_v33  ;;  %v1661_v32 = vadd.f32 %v1660_v24, %v1570_v22 }
 0x15d   :  { %v1947_v30 = vpop.f32.mrf.mxu0 }
 0x15e   :  { %v1986_v40 = vpop.f32.mrf.mxu1  ;;  %7581 = vpow2.f32 %v6389_v45  ;;  %v8421_v20 = vadd.f32 %v8376_v38, %v1661_v32 }
 0x160   :  { %v6979_v39 = vpop.f32.mrf.mxu1 }
 0x169   :  { %v7580_v16 = vpop.eup %7579 }
 0x16a   :  { %v1998_v42 = vadd.f32 1.0, %v7580_v16 }
 0x16b   :  { %v7582_v51 = vpop.eup %7581 }
 0x16c   :  { %7583 = vrcp.f32 %v1998_v42  ;;  %v1999_v55 = vadd.f32 1.0, %v7582_v51  ;;  %v8424_v42 = vpop.permute.xlu0 %2020  ;;  %v7367_v51 = vld [vmem:[#allocation7 + $0x170] ss:$12 sps:$4 sm:$0xff]  }
 0x16d   :  { %vm2022_vm10 = vcmp.eq.s32.totalorder %v8424_v42, 1 }
 0x16e   :  { %7585 = vrcp.f32 %v1999_v55  ;;  %vm6443_vm11 = vmpackc.low %vm2022_vm10, %vm2022_vm10  ;;  %v7368_v55 = vld [vmem:[#allocation7 + $0x158] ss:$12 sps:$4 sm:$0xff]  }
 0x177   :  { %v2219_v43 = vpop.f32.mrf.mxu0 }
 0x178   :  { %v2270_v27 = vrot.slane %v2219_v43, 2 }
 0x179   :  { %v7584_v9 = vpop.eup %7583  ;;  %v2221_v18 = vpop.f32.mrf.mxu0 }
 0x17a   :  { %v2011_v47 = vmul.f32 %v7584_v9, %v2010_v23  ;;  %v2274_v41 = vadd.f32 %v2270_v27, %v8411_v46  ;;  %v2260_v37 = vpop.f32.mrf.mxu1  ;;  %v2271_v21 = vrot.slane %v2221_v18, 2  ;;  %v7369_v27 = vld [vmem:[#allocation7 + $0x140] ss:$12 sps:$4 sm:$0xff]   ;;  %v7370_v9 = vld [vmem:[#allocation7 + $0x128] ss:$12 sps:$4 sm:$0xff]  }
 0x17b   :  { %v2223_v34 = vpop.f32.mrf.mxu0  ;;  %v7586_v62 = vpop.eup %7585  ;;  %v2294_v23 = vadd.f32 %v8438_v50, %v2260_v37  ;;  %v7378_v37 = vld [vmem:[#allocation7 + $0xb0] ss:$12 sps:$4 sm:$0xff]  }
 0x17c   :  { %v2012_v30 = vadd.f32 %v2011_v47, %v8416_v26  ;;  %v6416_v53 = vmul.f32 -1.442695, %v2274_v41  ;;  %v6998_v40 = vpop.f32.mrf.mxu1  ;;  %v2275_v15 = vadd.f32 %v2271_v21, %v8421_v20  ;;  %v2014_v24 = vsub.f32 1.0, %v7586_v62  ;;  %v8468_v41 = vpop.permute.xlu0 %2307  ;;  %v8484_v34 = vld [vmem:[#allocation7 + $0xa8] ss:$12 sps:$4 sm:$0xff]  }
 0x17d   :  { %v2224_v33 = vpop.f32.mrf.mxu0  ;;  %v2016_v59 = vmul.f32 0.0, %v7586_v62  ;;  %vm2309_vm12 = vcmp.eq.s32.totalorder %v8468_v41, 1  ;;  %v7382_v21 = vld [vmem:[#allocation7 + $0x98] ss:$12 sps:$4 sm:$0xff]  }
 0x17e   :  { %7587 = vtanh.f32 %v2012_v30  ;;  %v2263_v25 = vpop.f32.mrf.mxu1  ;;  %v6417_v45 = vmul.f32 -1.442695, %v2275_v15  ;;  %vm6476_vm13 = vmpackc.low %vm2309_vm12, %vm2309_vm12  ;;  %v8488_v30 = vld [vmem:[#allocation7 + $0x94] ss:$12 sps:$4 sm:$0xff]   ;;  %v8495_v33 = vld [vmem:[#allocation7 + $0x7c] ss:$12 sps:$4 sm:$0xff]  }
 0x17f   :  { %7589 = vpow2.f32 %v6416_v53  ;;  %v8491_v53 = vld [vmem:[#allocation7 + $0x90] ss:$12 sps:$4 sm:$0xff]   ;;  %v8498_v40 = vld [vmem:[#allocation7 + $0x78] ss:$12 sps:$4 sm:$0xff]   ;;  %v7386_v25 = vld [vmem:[#allocation7 + $0x80] ss:$12 sps:$4 sm:$0xff]  }
 0x180   :  { %v6999_v39 = vpop.f32.mrf.mxu1  ;;  %7591 = vpow2.f32 %v6417_v45  ;;  %v8502_v15 = vld [vmem:[#allocation7 + $0x64] ss:$12 sps:$4 sm:$0xff]   ;;  %v7390_v45 = vld [vmem:[#allocation7 + $0x68] ss:$12 sps:$4 sm:$0xff]   ;;  %v8509_v62 = vld [vmem:[#allocation7 + $0x4c] ss:$12 sps:$4 sm:$0xff]  }
 0x181   :  { %v8505_v39 = vld [vmem:[#allocation7 + $0x60] ss:$12 sps:$4 sm:$0xff]  }
 0x18b   :  { %v7588_v16 = vpop.eup %7587 }
 0x18c   :  { %v7590_v52 = vpop.eup %7589  ;;  %v2015_v57 = vmul.f32 %v7588_v16, %v2014_v24  ;;  %v8512_v24 = vld [vmem:[#allocation7 + $0x48] ss:$12 sps:$4 sm:$0xff]   ;;  %v7394_v16 = vld [vmem:[#allocation7 + $0x50] ss:$12 sps:$4 sm:$0xff]  }
 0x18d   :  { %v2282_v3 = vadd.f32 1.0, %v7590_v52  ;;  %v7592_v43 = vpop.eup %7591  ;;  %v8516_v52 = vld [vmem:[#allocation7 + $0x34] ss:$12 sps:$4 sm:$0xff]  }
 0x18e   :  { %v2017_v38 = vadd.f32 %v2016_v59, %v2015_v57  ;;  %v8519_v57 = vld [vmem:[#allocation7 + $0x30] ss:$12 sps:$4 sm:$0xff]   ;;  %v7398_v59 = vld [vmem:[#allocation7 + $0x38] ss:$12 sps:$4 sm:$0xff]  }
 0x18f   :  { %7593 = vrcp.f32 %v2282_v3  ;;  %v8523_v3 = vld [vmem:[#allocation7 + $0x1c] ss:$12 sps:$4 sm:$0xff]  }
 0x190   :  { %v6444_v6 = vpack.c.bf16 %v2017_v38, %v2017_v38  ;;  %v8432_v35 = vsel %vm2022_vm10, %v2017_v38, 0.0  ;;  %v8526_v38 = vld [vmem:[#allocation7 + $0x18] ss:$12 sps:$4 sm:$0xff]  }
 0x191   :  { %2314 = vst [vmem:[#allocation8] sm:$0x3] %v8432_v35 }
 0x192   :  { %6445 = vmatmul.mubr.msk.bf16.vlgmr.msra.gmra.mxu0 %vm6443_vm11, %v6444_v6  ;;  %7017 = vmatmul.mubr.msk.bf16.vlgmr.msra.gmra.mxu1 %vm6443_vm11, %v6444_v6  ;;  %v8530_v6 = vld [vmem:[#allocation7 + $0x4] ss:$12 sps:$4 sm:$0xff]  }
 0x193   :  { %2772 = vmatpush1.bf16.msra.mxu0 %v8199_v54  ;;  %7021 = vmatpush3.bf16.msra.mxu1 %v7367_v51  ;;  %v2283_v54 = vadd.f32 1.0, %v7592_v43  ;;  %v7402_v51 = vld [vmem:[#allocation7 + $0x20] ss:$12 sps:$4 sm:$0xff]  }
 0x194   :  { %2773 = vmatprep.subr.bf16.mxu0 %v8201_v56  ;;  %7022 = vmatprep.subr.bf16.mxu1 %v7834_v0  ;;  %v2296_v56 = vrot.slane %v2294_v23, 2  ;;  %v7406_v23 = vld [vmem:[#allocation7 + $0x8] ss:$12 sps:$4 sm:$0xff]   ;;  %v8538_v43 = vld [vmem:[#allocation7 + $0x16c] ss:$12 sps:$4 sm:$0xff]  }
 0x195   :  { %2803 = vmatprep.mubr.bf16.mxu0 %v9155_v1  ;;  %7036 = vmatprep.mubr.msk.bf16.mxu1 %vm7836_vm1, %v7834_v0  ;;  %7595 = vrcp.f32 %v2283_v54 }
 0x197   :  { %2774 = vmatpush1.bf16.msra.mxu0 %v8208_v58  ;;  %7023 = vmatpush3.bf16.msra.mxu1 %v7368_v55  ;;  %v8533_v55 = vld [vmem:[#allocation7] ss:$12 sps:$4 sm:$0xff]  }
 0x198   :  { %2775 = vmatprep.subr.bf16.mxu0 %v8211_v60  ;;  %7024 = vmatprep.subr.bf16.mxu1 %v7834_v0  ;;  %v7371_v60 = vld [vmem:[#allocation7 + $0x110] ss:$12 sps:$4 sm:$0xff]  }
 0x19b   :  { %2776 = vmatpush1.bf16.msra.mxu0 %v8216_v61  ;;  %7025 = vmatpush3.bf16.msra.mxu1 %v7369_v27  ;;  %v7372_v61 = vld [vmem:[#allocation7 + $0xf8] ss:$12 sps:$4 sm:$0xff]  }
 0x19c   :  { %v7594_v22 = vpop.eup %7593  ;;  %2777 = vmatprep.subr.bf16.mxu0 %v8219_v63  ;;  %7026 = vmatprep.subr.bf16.mxu1 %v7834_v0  ;;  %v7373_v63 = vld [vmem:[#allocation7 + $0xe0] ss:$12 sps:$4 sm:$0xff]  }
 0x19d   :  { %v2298_v18 = vmul.f32 %v7594_v22, %v2296_v56 }
 0x19f   :  { %v2299_v58 = vadd.f32 %v2298_v18, %v8380_v48  ;;  %2778 = vmatpush1.bf16.msra.mxu0 %v8225_v2  ;;  %7027 = vmatpush3.bf16.msra.mxu1 %v7370_v9 }
 0x1a0   :  { %2779 = vmatprep.subr.bf16.mxu0 %v8229_v4  ;;  %7028 = vmatprep.subr.bf16.mxu1 %v7834_v0  ;;  %v7374_v4 = vld [vmem:[#allocation7 + $0xc8] ss:$12 sps:$4 sm:$0xff]  }
 0x1a1   :  { %7597 = vtanh.f32 %v2299_v58 }
 0x1a2   :  { %v7596_v2 = vpop.eup %7595 }
 0x1a3   :  { %2780 = vmatpush1.bf16.msra.mxu0 %v8234_v5  ;;  %7029 = vmatpush3.bf16.msra.mxu1 %v7371_v60  ;;  %v2301_v5 = vsub.f32 1.0, %v7596_v2  ;;  %v2303_v47 = vmul.f32 0.0, %v7596_v2 }
 0x1a4   :  { %2781 = vmatprep.subr.bf16.mxu0 %v8236_v7  ;;  %7030 = vmatprep.subr.bf16.mxu1 %v7834_v0 }
 0x1a7   :  { %2782 = vmatpush1.bf16.msra.mxu0 %v8241_v8  ;;  %7031 = vmatpush3.bf16.msra.mxu1 %v7372_v61 }
 0x1a8   :  { %2783 = vmatprep.subr.bf16.mxu0 %v8243_v10  ;;  %7032 = vmatprep.subr.bf16.mxu1 %v7834_v0 }
 0x1ab   :  { %2784 = vmatpush1.bf16.msra.mxu0 %v8248_v11  ;;  %7033 = vmatpush3.bf16.msra.mxu1 %v7373_v63 }
 0x1ac   :  { %2785 = vmatprep.subr.bf16.mxu0 %v8250_v13  ;;  %7034 = vmatprep.subr.bf16.mxu1 %v7834_v0 }
 0x1ae   :  { %v7598_v7 = vpop.eup %7597 }
 0x1af   :  { %2786 = vmatpush1.bf16.msra.mxu0 %v8255_v14  ;;  %7035 = vmatpush3.bf16.msra.mxu1 %v7374_v4  ;;  %v2302_v8 = vmul.f32 %v7598_v7, %v2301_v5  ;;  %v8482_v14 = vld [vmem:[#allocation7 + $0xac] ss:$12 sps:$4 sm:$0xff]  }
 0x1b0   :  { %7040 = vmatprep.subr.bf16.mxu1 %v7834_v0  ;;  %3066 = vmatprep.subr.bf16.mxu0 %v8482_v14 }
 0x1b1   :  { %v2304_v10 = vadd.f32 %v2303_v47, %v2302_v8 }
 0x1b3   :  { %v2311_v11 = vrot.slane %v2304_v10, 6 }
 0x1b5   :  { %v6477_v32 = vpack.c.bf16 %v2311_v11, %v2311_v11  ;;  %v8473_v13 = vsel %vm2309_vm12, %v2311_v11, 0.0 }
 0x1b6   :  { %2316 = vst [vmem:[#allocation8 + $0x1e] sm:$0x3] %v8473_v13 }
 0x1b7   :  { %6478 = vmatmul.mubr.msk.bf16.vlgmr.msra.gmra.mxu0 %vm6476_vm13, %v6477_v32  ;;  %7037 = vmatmul.mubr.msk.bf16.vlgmr.msra.gmra.mxu1 %vm6476_vm13, %v6477_v32 }
 0x1b8   :  { %3098 = vmatprep.mubr.bf16.mxu0 %v9155_v1  ;;  %7056 = vmatprep.mubr.msk.bf16.mxu1 %vm7836_vm1, %v7834_v0 }
 0x1b9   :  { %3067 = vmatpush1.bf16.msra.mxu0 %v8484_v34  ;;  %7041 = vmatpush3.bf16.msra.mxu1 %v7378_v37 }
 0x1ba   :  { %7042 = vmatprep.subr.bf16.mxu1 %v7834_v0  ;;  %3068 = vmatprep.subr.bf16.mxu0 %v8488_v30 }
 0x1bd   :  { %3069 = vmatpush1.bf16.msra.mxu0 %v8491_v53  ;;  %7043 = vmatpush3.bf16.msra.mxu1 %v7382_v21 }
 0x1be   :  { %7044 = vmatprep.subr.bf16.mxu1 %v7834_v0  ;;  %3070 = vmatprep.subr.bf16.mxu0 %v8495_v33 }
 0x1c1   :  { %3071 = vmatpush1.bf16.msra.mxu0 %v8498_v40  ;;  %7045 = vmatpush3.bf16.msra.mxu1 %v7386_v25 }
 0x1c2   :  { %7046 = vmatprep.subr.bf16.mxu1 %v7834_v0  ;;  %3072 = vmatprep.subr.bf16.mxu0 %v8502_v15 }
 0x1c5   :  { %3073 = vmatpush1.bf16.msra.mxu0 %v8505_v39  ;;  %7047 = vmatpush3.bf16.msra.mxu1 %v7390_v45 }
 0x1c6   :  { %7048 = vmatprep.subr.bf16.mxu1 %v7834_v0  ;;  %3074 = vmatprep.subr.bf16.mxu0 %v8509_v62 }
 0x1c9   :  { %3075 = vmatpush1.bf16.msra.mxu0 %v8512_v24  ;;  %7049 = vmatpush3.bf16.msra.mxu1 %v7394_v16 }
 0x1ca   :  { %7050 = vmatprep.subr.bf16.mxu1 %v7834_v0  ;;  %3076 = vmatprep.subr.bf16.mxu0 %v8516_v52 }
 0x1cd   :  { %3077 = vmatpush1.bf16.msra.mxu0 %v8519_v57  ;;  %7051 = vmatpush3.bf16.msra.mxu1 %v7398_v59 }
 0x1ce   :  { %7052 = vmatprep.subr.bf16.mxu1 %v7834_v0  ;;  %3078 = vmatprep.subr.bf16.mxu0 %v8523_v3 }
 0x1d1   :  { %3079 = vmatpush1.bf16.msra.mxu0 %v8526_v38  ;;  %7053 = vmatpush3.bf16.msra.mxu1 %v7402_v51 }
 0x1d2   :  { %7054 = vmatprep.subr.bf16.mxu1 %v7834_v0  ;;  %3080 = vmatprep.subr.bf16.mxu0 %v8530_v6 }
 0x1d5   :  { %3081 = vmatpush1.bf16.msra.mxu0 %v8533_v55  ;;  %7055 = vmatpush3.bf16.msra.mxu1 %v7406_v23 }
 0x1d6   :  { %7060 = vmatprep.subr.bf16.mxu1 %v7834_v0  ;;  %3359 = vmatprep.subr.bf16.mxu0 %v8538_v43 }
 0x252   :  { %v2512_v27 = vpop.f32.mrf.mxu0  ;;  %v2553_v54 = vpop.f32.mrf.mxu1 }
 0x253   :  { %v2562_v56 = vrot.slane %v2512_v27, 6  ;;  %v2586_v11 = vadd.f32 %v8405_v12, %v2553_v54 }
 0x254   :  { %v2514_v9 = vpop.f32.mrf.mxu0  ;;  %v7018_v22 = vpop.f32.mrf.mxu1 }
 0x255   :  { %v2566_v18 = vadd.f32 %v2562_v56, %v8390_v17  ;;  %v2563_v63 = vrot.slane %v2514_v9, 6  ;;  %v2588_v37 = vrot.slane %v2586_v11, 6 }
 0x256   :  { %v2516_v58 = vpop.f32.mrf.mxu0  ;;  %v2556_v60 = vpop.f32.mrf.mxu1 }
 0x257   :  { %v6449_v61 = vmul.f32 -1.442695, %v2566_v18  ;;  %v2567_v5 = vadd.f32 %v2563_v63, %v8319_v29 }
 0x258   :  { %v2517_v2 = vpop.f32.mrf.mxu0  ;;  %v7019_v4 = vpop.f32.mrf.mxu1 }
 0x259   :  { %7599 = vpow2.f32 %v6449_v61  ;;  %v6450_v7 = vmul.f32 -1.442695, %v2567_v5  ;;  %v2596_v2 = vrot.slane %v8432_v35, 6 }
 0x25b   :  { %7601 = vpow2.f32 %v6450_v7 }
 0x266   :  { %v7600_v8 = vpop.eup %7599 }
 0x267   :  { %v2574_v47 = vadd.f32 1.0, %v7600_v8 }
 0x268   :  { %v7602_v10 = vpop.eup %7601 }
 0x269   :  { %7603 = vrcp.f32 %v2574_v47  ;;  %v2575_v32 = vadd.f32 1.0, %v7602_v10  ;;  %v8548_v10 = vpop.permute.xlu1 %2602 }
 0x26a   :  { %vm2604_vm14 = vcmp.eq.s32.totalorder %v8548_v10, 1 }
 0x26b   :  { %7605 = vrcp.f32 %v2575_v32 }
 0x276   :  { %v7604_v21 = vpop.eup %7603 }
 0x277   :  { %v2590_v25 = vmul.f32 %v7604_v21, %v2588_v37  ;;  %v2805_v45 = vpop.f32.mrf.mxu0  ;;  %v2846_v16 = vpop.f32.mrf.mxu1 }
 0x278   :  { %v2855_v59 = vrot.slane %v2805_v45, 4  ;;  %v7606_v61 = vpop.eup %7605  ;;  %v8558_v45 = vld [vmem:[#allocation7 + $0x168] ss:$12 sps:$4 sm:$0xff]  }
 0x279   :  { %v2591_v51 = vadd.f32 %v2590_v25, %v8416_v26  ;;  %v2807_v23 = vpop.f32.mrf.mxu0  ;;  %v7038_v27 = vpop.f32.mrf.mxu1  ;;  %v2593_v4 = vsub.f32 1.0, %v7606_v61  ;;  %v2598_v8 = vmul.f32 %v7606_v61, %v2596_v2 }
 0x27a   :  { %v2859_v56 = vadd.f32 %v2855_v59, %v8411_v46  ;;  %v2856_v58 = vrot.slane %v2807_v23, 4  ;;  %v7410_v59 = vld [vmem:[#allocation7 + $0x170] ss:$12 sps:$4 sm:$0xff]   ;;  %v8562_v23 = vld [vmem:[#allocation7 + $0x154] ss:$12 sps:$4 sm:$0xff]  }
 0x27b   :  { %7607 = vtanh.f32 %v2591_v51  ;;  %v2809_v9 = vpop.f32.mrf.mxu0  ;;  %v2849_v22 = vpop.f32.mrf.mxu1  ;;  %v8565_v27 = vld [vmem:[#allocation7 + $0x150] ss:$12 sps:$4 sm:$0xff]  }
 0x27c   :  { %v6483_v18 = vmul.f32 -1.442695, %v2859_v56  ;;  %v2860_v60 = vadd.f32 %v2856_v58, %v8421_v20  ;;  %v8569_v56 = vld [vmem:[#allocation7 + $0x13c] ss:$12 sps:$4 sm:$0xff]   ;;  %v2879_v22 = vadd.f32 %v8438_v50, %v2846_v16  ;;  %v7418_v58 = vld [vmem:[#allocation7 + $0x140] ss:$12 sps:$4 sm:$0xff]  }
 0x27d   :  { %v2810_v12 = vpop.f32.mrf.mxu0  ;;  %v7039_v54 = vpop.f32.mrf.mxu1  ;;  %v7422_v16 = vld [vmem:[#allocation7 + $0x128] ss:$12 sps:$4 sm:$0xff]  }
 0x27e   :  { %7609 = vpow2.f32 %v6483_v18  ;;  %v6484_v63 = vmul.f32 -1.442695, %v2860_v60  ;;  %v8576_v18 = vld [vmem:[#allocation7 + $0x138] ss:$12 sps:$4 sm:$0xff]   ;;  %v2881_v60 = vrot.slane %v2879_v22, 4 }
 0x27f   :  { %v8580_v54 = vld [vmem:[#allocation7 + $0x124] ss:$12 sps:$4 sm:$0xff]   ;;  %v7438_v22 = vld [vmem:[#allocation7 + $0xc8] ss:$12 sps:$4 sm:$0xff]  }
 0x280   :  { %7611 = vpow2.f32 %v6484_v63  ;;  %v8583_v63 = vld [vmem:[#allocation7 + $0x120] ss:$12 sps:$4 sm:$0xff]  }
 0x288   :  { %v7608_v5 = vpop.eup %7607 }
 0x289   :  { %v2594_v7 = vmul.f32 %v7608_v5, %v2593_v4  ;;  %v8587_v4 = vld [vmem:[#allocation7 + $0x10c] ss:$12 sps:$4 sm:$0xff]  }
 0x28b   :  { %v7610_v47 = vpop.eup %7609  ;;  %v2599_v11 = vadd.f32 %v2598_v8, %v2594_v7  ;;  %v8591_v7 = vld [vmem:[#allocation7 + $0x108] ss:$12 sps:$4 sm:$0xff]   ;;  %v7426_v8 = vld [vmem:[#allocation7 + $0x110] ss:$12 sps:$4 sm:$0xff]  }
 0x28c   :  { %v2867_v32 = vadd.f32 1.0, %v7610_v47  ;;  %v8595_v47 = vld [vmem:[#allocation7 + $0xf4] ss:$12 sps:$4 sm:$0xff]  }
 0x28d   :  { %v2606_v37 = vrot.slane %v2599_v11, 2  ;;  %v7612_v9 = vpop.eup %7611  ;;  %v8598_v11 = vld [vmem:[#allocation7 + $0xf0] ss:$12 sps:$4 sm:$0xff]  }
 0x28e   :  { %7613 = vrcp.f32 %v2867_v32  ;;  %v2868_v12 = vadd.f32 1.0, %v7612_v9  ;;  %v7430_v32 = vld [vmem:[#allocation7 + $0xf8] ss:$12 sps:$4 sm:$0xff]   ;;  %v8612_v9 = vld [vmem:[#allocation7 + $0xc0] ss:$12 sps:$4 sm:$0xff]  }
 0x28f   :  { %v8554_v21 = vsel %vm2604_vm14, %v2606_v37, %v8432_v35  ;;  %v2609_v25 = vsel %vm2604_vm14, %v2606_v37, 0.0  ;;  %v7414_v35 = vld [vmem:[#allocation7 + $0x158] ss:$12 sps:$4 sm:$0xff]   ;;  %v8602_v37 = vld [vmem:[#allocation7 + $0xdc] ss:$12 sps:$4 sm:$0xff]  }
 0x290   :  { %2903 = vst [vmem:[#allocation8 + $0x2] sm:$0x3] %v2609_v25  ;;  %v2905_v51 = vpack.c.bf16 %v8554_v21, %v8554_v21  ;;  %7615 = vrcp.f32 %v2868_v12  ;;  %v8605_v25 = vld [vmem:[#allocation7 + $0xd8] ss:$12 sps:$4 sm:$0xff]   ;;  %v2889_v12 = vrot.slane %v8473_v13, 4 }
 0x292   :  { %3099 = vmatmul.mubr.bf16.vlgmr.msra.gmra.mxu0 %v2905_v51  ;;  %7057 = vmatmul.mubr.bf16.vlgmr.msra.gmra.mxu1 %v2905_v51  ;;  %v8609_v51 = vld [vmem:[#allocation7 + $0xc4] ss:$12 sps:$4 sm:$0xff]  }
 0x293   :  { %3360 = vmatpush1.bf16.msra.mxu0 %v8558_v45  ;;  %7061 = vmatpush3.bf16.msra.mxu1 %v7410_v59  ;;  %v7434_v59 = vld [vmem:[#allocation7 + $0xe0] ss:$12 sps:$4 sm:$0xff]  }
 0x294   :  { %3361 = vmatprep.subr.bf16.mxu0 %v8562_v23  ;;  %7062 = vmatprep.subr.bf16.mxu1 %v7834_v0 }
 0x295   :  { %3391 = vmatprep.mubr.bf16.mxu0 %v9155_v1  ;;  %7076 = vmatprep.mubr.msk.bf16.mxu1 %vm7836_vm1, %v7834_v0 }
 0x297   :  { %3362 = vmatpush1.bf16.msra.mxu0 %v8565_v27  ;;  %7063 = vmatpush3.bf16.msra.mxu1 %v7414_v35 }
 0x298   :  { %3363 = vmatprep.subr.bf16.mxu0 %v8569_v56  ;;  %7064 = vmatprep.subr.bf16.mxu1 %v7834_v0 }
 0x29b   :  { %v7614_v61 = vpop.eup %7613  ;;  %3364 = vmatpush1.bf16.msra.mxu0 %v8576_v18  ;;  %7065 = vmatpush3.bf16.msra.mxu1 %v7418_v58 }
 0x29c   :  { %v2883_v2 = vmul.f32 %v7614_v61, %v2881_v60  ;;  %3365 = vmatprep.subr.bf16.mxu0 %v8580_v54  ;;  %7066 = vmatprep.subr.bf16.mxu1 %v7834_v0 }
 0x29d   :  { %v7616_v35 = vpop.eup %7615 }
 0x29e   :  { %v2884_v5 = vadd.f32 %v2883_v2, %v8380_v48  ;;  %v2886_v58 = vsub.f32 1.0, %v7616_v35 }
 0x29f   :  { %3366 = vmatpush1.bf16.msra.mxu0 %v8583_v63  ;;  %7067 = vmatpush3.bf16.msra.mxu1 %v7422_v16  ;;  %v2891_v16 = vmul.f32 %v7616_v35, %v2889_v12 }
 0x2a0   :  { %7617 = vtanh.f32 %v2884_v5  ;;  %3367 = vmatprep.subr.bf16.mxu0 %v8587_v4  ;;  %7068 = vmatprep.subr.bf16.mxu1 %v7834_v0  ;;  %v8620_v5 = vpop.permute.xlu1 %2895 }
 0x2a1   :  { %vm2897_vm15 = vcmp.eq.s32.totalorder %v8620_v5, 1 }
 0x2a3   :  { %3368 = vmatpush1.bf16.msra.mxu0 %v8591_v7  ;;  %7069 = vmatpush3.bf16.msra.mxu1 %v7426_v8 }
 0x2a4   :  { %3369 = vmatprep.subr.bf16.mxu0 %v8595_v47  ;;  %7070 = vmatprep.subr.bf16.mxu1 %v7834_v0 }
 0x2a7   :  { %3370 = vmatpush1.bf16.msra.mxu0 %v8598_v11  ;;  %7071 = vmatpush3.bf16.msra.mxu1 %v7430_v32 }
 0x2a8   :  { %3371 = vmatprep.subr.bf16.mxu0 %v8602_v37  ;;  %7072 = vmatprep.subr.bf16.mxu1 %v7834_v0 }
 0x2ab   :  { %3372 = vmatpush1.bf16.msra.mxu0 %v8605_v25  ;;  %7073 = vmatpush3.bf16.msra.mxu1 %v7434_v59 }
 0x2ac   :  { %3373 = vmatprep.subr.bf16.mxu0 %v8609_v51  ;;  %7074 = vmatprep.subr.bf16.mxu1 %v7834_v0 }
 0x2ad   :  { %v7618_v60 = vpop.eup %7617 }
 0x2ae   :  { %v2887_v61 = vmul.f32 %v7618_v60, %v2886_v58 }
 0x2af   :  { %3374 = vmatpush1.bf16.msra.mxu0 %v8612_v9  ;;  %7075 = vmatpush3.bf16.msra.mxu1 %v7438_v22 }
 0x2b0   :  { %v2892_v2 = vadd.f32 %v2891_v16, %v2887_v61  ;;  %3654 = vmatprep.subr.bf16.mxu0 %v8482_v14  ;;  %7080 = vmatprep.subr.bf16.mxu1 %v7834_v0  ;;  %v7440_v14 = vld [vmem:[#allocation7 + $0x98] ss:$12 sps:$4 sm:$0xff]  }
 0x2b2   :  { %v2899_v8 = vrot.slane %v2892_v2, 4 }
 0x2b4   :  { %v8626_v32 = vsel %vm2897_vm15, %v2899_v8, %v8473_v13  ;;  %v2902_v59 = vsel %vm2897_vm15, %v2899_v8, 0.0  ;;  %v7439_v13 = vld [vmem:[#allocation7 + $0xb0] ss:$12 sps:$4 sm:$0xff]  }
 0x2b5   :  { %2904 = vst [vmem:[#allocation8 + $0x1c] sm:$0x3] %v2902_v59  ;;  %v3198_v35 = vpack.c.bf16 %v8626_v32, %v8626_v32 }
 0x2b7   :  { %3392 = vmatmul.mubr.bf16.vlgmr.msra.gmra.mxu0 %v3198_v35  ;;  %7077 = vmatmul.mubr.bf16.vlgmr.msra.gmra.mxu1 %v3198_v35 }
 0x2b8   :  { %3655 = vmatpush1.bf16.msra.mxu0 %v8484_v34  ;;  %3686 = vmatprep.mubr.bf16.mxu0 %v9155_v1  ;;  %v7441_v34 = vld [vmem:[#allocation7 + $0x80] ss:$12 sps:$4 sm:$0xff]  }
 0x2b9   :  { %3656 = vmatprep.subr.bf16.mxu0 %v8488_v30  ;;  %7096 = vmatprep.mubr.msk.bf16.mxu1 %vm7836_vm1, %v7834_v0  ;;  %v7442_v30 = vld [vmem:[#allocation7 + $0x68] ss:$12 sps:$4 sm:$0xff]  }
 0x2ba   :  { %7081 = vmatpush3.bf16.msra.mxu1 %v7439_v13 }
 0x2bb   :  { %7082 = vmatprep.subr.bf16.mxu1 %v7834_v0 }
 0x2bc   :  { %3657 = vmatpush1.bf16.msra.mxu0 %v8491_v53  ;;  %v7443_v53 = vld [vmem:[#allocation7 + $0x50] ss:$12 sps:$4 sm:$0xff]  }
 0x2bd   :  { %3658 = vmatprep.subr.bf16.mxu0 %v8495_v33  ;;  %v7444_v33 = vld [vmem:[#allocation7 + $0x38] ss:$12 sps:$4 sm:$0xff]  }
 0x2be   :  { %7083 = vmatpush3.bf16.msra.mxu1 %v7440_v14 }
 0x2bf   :  { %7084 = vmatprep.subr.bf16.mxu1 %v7834_v0 }
 0x2c0   :  { %3659 = vmatpush1.bf16.msra.mxu0 %v8498_v40  ;;  %v7445_v40 = vld [vmem:[#allocation7 + $0x20] ss:$12 sps:$4 sm:$0xff]  }
 0x2c1   :  { %3660 = vmatprep.subr.bf16.mxu0 %v8502_v15  ;;  %v7446_v15 = vld [vmem:[#allocation7 + $0x8] ss:$12 sps:$4 sm:$0xff]  }
 0x2c2   :  { %7085 = vmatpush3.bf16.msra.mxu1 %v7441_v34 }
 0x2c3   :  { %7086 = vmatprep.subr.bf16.mxu1 %v7834_v0 }
 0x2c4   :  { %3661 = vmatpush1.bf16.msra.mxu0 %v8505_v39 }
 0x2c5   :  { %3662 = vmatprep.subr.bf16.mxu0 %v8509_v62 }
 0x2c6   :  { %7087 = vmatpush3.bf16.msra.mxu1 %v7442_v30 }
 0x2c7   :  { %7088 = vmatprep.subr.bf16.mxu1 %v7834_v0 }
 0x2c8   :  { %3663 = vmatpush1.bf16.msra.mxu0 %v8512_v24 }
 0x2c9   :  { %3664 = vmatprep.subr.bf16.mxu0 %v8516_v52 }
 0x2ca   :  { %7089 = vmatpush3.bf16.msra.mxu1 %v7443_v53 }
 0x2cb   :  { %7090 = vmatprep.subr.bf16.mxu1 %v7834_v0 }
 0x2cc   :  { %3665 = vmatpush1.bf16.msra.mxu0 %v8519_v57 }
 0x2cd   :  { %3666 = vmatprep.subr.bf16.mxu0 %v8523_v3 }
 0x2ce   :  { %7091 = vmatpush3.bf16.msra.mxu1 %v7444_v33  ;;  %v8664_v33 = vld [vmem:[%s9153_s5] ss:$0 sm:$0xff] }
 0x2cf   :  { %7092 = vmatprep.subr.bf16.mxu1 %v7834_v0 }
 0x2d0   :  { %3667 = vmatpush1.bf16.msra.mxu0 %v8526_v38 }
 0x2d1   :  { %3668 = vmatprep.subr.bf16.mxu0 %v8530_v6 }
 0x2d2   :  { %7093 = vmatpush3.bf16.msra.mxu1 %v7445_v40 }
 0x2d3   :  { %7094 = vmatprep.subr.bf16.mxu1 %v7834_v0 }
 0x2d4   :  { %3669 = vmatpush1.bf16.msra.mxu0 %v8533_v55 }
 0x2d5   :  { %3947 = vmatprep.subr.bf16.mxu0 %v8538_v43 }
 0x2d6   :  { %7095 = vmatpush3.bf16.msra.mxu1 %v7446_v15 }
 0x2d7   :  { %7100 = vmatprep.subr.bf16.mxu1 %v7834_v0 }
 0x352   :  { %v3100_v39 = vpop.f32.mrf.mxu0  ;;  %v3141_v22 = vpop.f32.mrf.mxu1 }
 0x353   :  { %v3150_v58 = vrot.slane %v3100_v39, 4  ;;  %v3174_v15 = vadd.f32 %v8664_v33, %v3141_v22 }
 0x354   :  { %v3102_v12 = vpop.f32.mrf.mxu0  ;;  %v7058_v60 = vpop.f32.mrf.mxu1 }
 0x355   :  { %v3154_v61 = vadd.f32 %v3150_v58, %v8390_v17  ;;  %v3151_v59 = vrot.slane %v3102_v12, 4  ;;  %v3176_v58 = vrot.slane %v3174_v15, 4 }
 0x356   :  { %v3104_v16 = vpop.f32.mrf.mxu0  ;;  %v3144_v2 = vpop.f32.mrf.mxu1 }
 0x357   :  { %v6510_v8 = vmul.f32 -1.442695, %v3154_v61  ;;  %v3155_v14 = vadd.f32 %v3151_v59, %v8319_v29 }
 0x358   :  { %v3105_v35 = vpop.f32.mrf.mxu0  ;;  %v7059_v13 = vpop.f32.mrf.mxu1 }
 0x359   :  { %7619 = vpow2.f32 %v6510_v8  ;;  %v6511_v34 = vmul.f32 -1.442695, %v3155_v14 }
 0x35b   :  { %7621 = vpow2.f32 %v6511_v34 }
 0x366   :  { %v7620_v30 = vpop.eup %7619 }
 0x367   :  { %v3162_v53 = vadd.f32 1.0, %v7620_v30 }
 0x368   :  { %v7622_v40 = vpop.eup %7621 }
 0x369   :  { %7623 = vrcp.f32 %v3162_v53  ;;  %v3163_v39 = vadd.f32 1.0, %v7622_v40 }
 0x36b   :  { %7625 = vrcp.f32 %v3163_v39 }
 0x376   :  { %v7624_v12 = vpop.eup %7623 }
 0x377   :  { %v3178_v60 = vmul.f32 %v7624_v12, %v3176_v58  ;;  %v3393_v61 = vpop.f32.mrf.mxu0  ;;  %v3434_v16 = vpop.f32.mrf.mxu1  ;;  %v3184_v12 = vrot.slane %v8554_v21, 4 }
 0x378   :  { %v3443_v2 = vrot.slane %v3393_v61, 6  ;;  %v7626_v39 = vpop.eup %7625 }
 0x379   :  { %v3179_v8 = vadd.f32 %v3178_v60, %v8416_v26  ;;  %v3395_v59 = vpop.f32.mrf.mxu0  ;;  %v7078_v35 = vpop.f32.mrf.mxu1  ;;  %v3181_v61 = vsub.f32 1.0, %v7626_v39  ;;  %v3186_v1 = vmul.f32 %v7626_v39, %v3184_v12  ;;  %v7449_v39 = vld [vmem:[#allocation7 + $0x140] ss:$12 sps:$4 sm:$0xff]  }
 0x37a   :  { %v3447_v13 = vadd.f32 %v3443_v2, %v8411_v46  ;;  %v3444_v53 = vrot.slane %v3395_v59, 6 }
 0x37b   :  { %7627 = vtanh.f32 %v3179_v8  ;;  %v3397_v14 = vpop.f32.mrf.mxu0  ;;  %v3437_v34 = vpop.f32.mrf.mxu1 }
 0x37c   :  { %v6538_v30 = vmul.f32 -1.442695, %v3447_v13  ;;  %v3448_v15 = vadd.f32 %v3444_v53, %v8421_v20  ;;  %v8671_v34 = vpop.permute.xlu0 %3190  ;;  %v7447_v53 = vld [vmem:[#allocation7 + $0x170] ss:$12 sps:$4 sm:$0xff]  }
 0x37d   :  { %v3398_v22 = vpop.f32.mrf.mxu0  ;;  %v7079_v40 = vpop.f32.mrf.mxu1  ;;  %vm3192_vm0 = vcmp.eq.s32.totalorder %v8671_v34, 1  ;;  %v7555_v34 = vld [vmem:[#allocation7 + $0x90] ss:$12 sps:$4 sm:$0xff]  }
 0x37e   :  { %7629 = vpow2.f32 %v6538_v30  ;;  %v6539_v58 = vmul.f32 -1.442695, %v3448_v15  ;;  %v7448_v22 = vld [vmem:[#allocation7 + $0x158] ss:$12 sps:$4 sm:$0xff]   ;;  %v9157_v40 = vmov 0   ;;  %v3467_v15 = vadd.f32 %v8438_v50, %v3434_v16 }
 0x37f   :  { %v7451_v16 = vld [vmem:[#allocation7 + $0x110] ss:$12 sps:$4 sm:$0xff]  }
 0x380   :  { %7631 = vpow2.f32 %v6539_v58  ;;  %v3469_v12 = vrot.slane %v3467_v15, 6 }
 0x388   :  { %v7628_v60 = vpop.eup %7627 }
 0x389   :  { %v3182_v35 = vmul.f32 %v7628_v60, %v3181_v61  ;;  %v7450_v60 = vld [vmem:[#allocation7 + $0x128] ss:$12 sps:$4 sm:$0xff]  }
 0x38b   :  { %v7630_v2 = vpop.eup %7629  ;;  %v3187_v8 = vadd.f32 %v3186_v1, %v3182_v35 }
 0x38c   :  { %v3455_v14 = vadd.f32 1.0, %v7630_v2  ;;  %v7452_v2 = vld [vmem:[#allocation7 + $0xf8] ss:$12 sps:$4 sm:$0xff]  }
 0x38d   :  { %v3194_v59 = vrot.slane %v3187_v8, 4  ;;  %v7453_v8 = vld [vmem:[#allocation7 + $0xe0] ss:$12 sps:$4 sm:$0xff]  }
 0x38e   :  { %7633 = vrcp.f32 %v3455_v14 }
 0x38f   :  { %v8677_v13 = vsel %vm3192_vm0, %v3194_v59, %v8554_v21  ;;  %v3197_v30 = vsel %vm3192_vm0, %v3194_v59, 0.0  ;;  %v7632_v21 = vpop.eup %7631  ;;  %v7454_v59 = vld [vmem:[#allocation7 + $0xc8] ss:$12 sps:$4 sm:$0xff]  }
 0x390   :  { %3491 = vst [vmem:[#allocation8 + $0x4] sm:$0x3] %v3197_v30  ;;  %v3493_v1 = vpack.c.bf16 %v8677_v13, %v8677_v13  ;;  %v3456_v58 = vadd.f32 1.0, %v7632_v21  ;;  %v3477_v30 = vrot.slane %v8626_v32, 6 }
 0x392   :  { %3687 = vmatmul.mubr.bf16.vlgmr.msra.gmra.mxu0 %v3493_v1  ;;  %7097 = vmatmul.mubr.bf16.vlgmr.msra.gmra.mxu1 %v3493_v1  ;;  %7635 = vrcp.f32 %v3456_v58 }
 0x393   :  { %3948 = vmatpush1.bf16.msra.mxu0 %v8558_v45  ;;  %7101 = vmatpush3.bf16.msra.mxu1 %v7447_v53 }
 0x394   :  { %3949 = vmatprep.subr.bf16.mxu0 %v8562_v23  ;;  %7102 = vmatprep.subr.bf16.mxu1 %v7834_v0 }
 0x395   :  { %3979 = vmatprep.mubr.bf16.mxu0 %v9157_v40  ;;  %7116 = vmatprep.mubr.msk.bf16.mxu1 %vm7836_vm1, %v7834_v0 }
 0x397   :  { %3950 = vmatpush1.bf16.msra.mxu0 %v8565_v27  ;;  %7103 = vmatpush3.bf16.msra.mxu1 %v7448_v22 }
 0x398   :  { %3951 = vmatprep.subr.bf16.mxu0 %v8569_v56  ;;  %7104 = vmatprep.subr.bf16.mxu1 %v7834_v0 }
 0x39b   :  { %v7634_v61 = vpop.eup %7633  ;;  %3952 = vmatpush1.bf16.msra.mxu0 %v8576_v18  ;;  %7105 = vmatpush3.bf16.msra.mxu1 %v7449_v39  ;;  %v8712_v39 = vpop.permute.xlu1 %3483 }
 0x39c   :  { %v3471_v35 = vmul.f32 %v7634_v61, %v3469_v12  ;;  %3953 = vmatprep.subr.bf16.mxu0 %v8580_v54  ;;  %7106 = vmatprep.subr.bf16.mxu1 %v7834_v0  ;;  %vm3485_vm2 = vcmp.eq.s32.totalorder %v8712_v39, 1 }
 0x39e   :  { %v3472_v50 = vadd.f32 %v3471_v35, %v8380_v48  ;;  %v8727_v35 = vld [vmem:[#allocation7 + $0xac] ss:$12 sps:$4 sm:$0xff]  }
 0x39f   :  { %3954 = vmatpush1.bf16.msra.mxu0 %v8583_v63  ;;  %7107 = vmatpush3.bf16.msra.mxu1 %v7450_v60  ;;  %v7636_v14 = vpop.eup %7635 }
 0x3a0   :  { %7637 = vtanh.f32 %v3472_v50  ;;  %3955 = vmatprep.subr.bf16.mxu0 %v8587_v4  ;;  %7108 = vmatprep.subr.bf16.mxu1 %v7834_v0  ;;  %v3474_v53 = vsub.f32 1.0, %v7636_v14  ;;  %v3479_v21 = vmul.f32 %v7636_v14, %v3477_v30  ;;  %v8729_v50 = vld [vmem:[#allocation7 + $0xa8] ss:$12 sps:$4 sm:$0xff]   ;;  %v7466_v30 = vld [vmem:[#allocation7 + $0x80] ss:$12 sps:$4 sm:$0xff]  }
 0x3a1   :  { %v8740_v14 = vld [vmem:[#allocation7 + $0x7c] ss:$12 sps:$4 sm:$0xff]  }
 0x3a3   :  { %3956 = vmatpush1.bf16.msra.mxu0 %v8591_v7  ;;  %7109 = vmatpush3.bf16.msra.mxu1 %v7451_v16  ;;  %v8733_v16 = vld [vmem:[#allocation7 + $0x94] ss:$12 sps:$4 sm:$0xff]  }
 0x3a4   :  { %3957 = vmatprep.subr.bf16.mxu0 %v8595_v47  ;;  %7110 = vmatprep.subr.bf16.mxu1 %v7834_v0 }
 0x3a7   :  { %3958 = vmatpush1.bf16.msra.mxu0 %v8598_v11  ;;  %7111 = vmatpush3.bf16.msra.mxu1 %v7452_v2  ;;  %v8736_v2 = vld [vmem:[#allocation7 + $0x90] ss:$12 sps:$4 sm:$0xff]  }
 0x3a8   :  { %3959 = vmatprep.subr.bf16.mxu0 %v8602_v37  ;;  %7112 = vmatprep.subr.bf16.mxu1 %v7834_v0 }
 0x3ab   :  { %3960 = vmatpush1.bf16.msra.mxu0 %v8605_v25  ;;  %7113 = vmatpush3.bf16.msra.mxu1 %v7453_v8  ;;  %v7462_v8 = vld [vmem:[#allocation7 + $0x98] ss:$12 sps:$4 sm:$0xff]  }
 0x3ac   :  { %3961 = vmatprep.subr.bf16.mxu0 %v8609_v51  ;;  %7114 = vmatprep.subr.bf16.mxu1 %v7834_v0 }
 0x3ad   :  { %v7638_v1 = vpop.eup %7637 }
 0x3ae   :  { %v3475_v22 = vmul.f32 %v7638_v1, %v3474_v53  ;;  %v8747_v53 = vld [vmem:[#allocation7 + $0x64] ss:$12 sps:$4 sm:$0xff]   ;;  %v8750_v1 = vld [vmem:[#allocation7 + $0x60] ss:$12 sps:$4 sm:$0xff]  }
 0x3af   :  { %3962 = vmatpush1.bf16.msra.mxu0 %v8612_v9  ;;  %7115 = vmatpush3.bf16.msra.mxu1 %v7454_v59  ;;  %v8743_v59 = vld [vmem:[#allocation7 + $0x78] ss:$12 sps:$4 sm:$0xff]  }
 0x3b0   :  { %v3480_v15 = vadd.f32 %v3479_v21, %v3475_v22  ;;  %7120 = vmatprep.subr.bf16.mxu1 %v7834_v0  ;;  %4227 = vmatprep.subr.bf16.mxu0 %v8727_v35  ;;  %v7470_v22 = vld [vmem:[#allocation7 + $0x68] ss:$12 sps:$4 sm:$0xff]   ;;  %v7471_v21 = vld [vmem:[#allocation7 + $0x50] ss:$12 sps:$4 sm:$0xff]  }
 0x3b2   :  { %v3487_v58 = vrot.slane %v3480_v15, 2  ;;  %v7472_v15 = vld [vmem:[#allocation7 + $0x38] ss:$12 sps:$4 sm:$0xff]  }
 0x3b4   :  { %v8718_v12 = vsel %vm3485_vm2, %v3487_v58, %v8626_v32  ;;  %v3490_v61 = vsel %vm3485_vm2, %v3487_v58, 0.0  ;;  %v7458_v32 = vld [vmem:[#allocation7 + $0xb0] ss:$12 sps:$4 sm:$0xff]   ;;  %v7473_v58 = vld [vmem:[#allocation7 + $0x20] ss:$12 sps:$4 sm:$0xff]  }
 0x3b5   :  { %3492 = vst [vmem:[#allocation8 + $0x1a] sm:$0x3] %v3490_v61  ;;  %v3786_v60 = vpack.c.bf16 %v8718_v12, %v8718_v12 }
 0x3b7   :  { %3980 = vmatmul.mubr.bf16.vlgmr.msra.gmra.mxu0 %v3786_v60  ;;  %7117 = vmatmul.mubr.bf16.vlgmr.msra.gmra.mxu1 %v3786_v60 }
 0x3b8   :  { %4259 = vmatprep.mubr.bf16.mxu0 %v9157_v40  ;;  %7136 = vmatprep.mubr.msk.bf16.mxu1 %vm7836_vm1, %v7834_v0 }
 0x3b9   :  { %4228 = vmatpush1.bf16.msra.mxu0 %v8729_v50  ;;  %7121 = vmatpush3.bf16.msra.mxu1 %v7458_v32 }
 0x3ba   :  { %7122 = vmatprep.subr.bf16.mxu1 %v7834_v0  ;;  %4229 = vmatprep.subr.bf16.mxu0 %v8733_v16 }
 0x3bd   :  { %4230 = vmatpush1.bf16.msra.mxu0 %v8736_v2  ;;  %7123 = vmatpush3.bf16.msra.mxu1 %v7462_v8 }
 0x3be   :  { %7124 = vmatprep.subr.bf16.mxu1 %v7834_v0  ;;  %4231 = vmatprep.subr.bf16.mxu0 %v8740_v14 }
 0x3c1   :  { %4232 = vmatpush1.bf16.msra.mxu0 %v8743_v59  ;;  %7125 = vmatpush3.bf16.msra.mxu1 %v7466_v30 }
 0x3c2   :  { %7126 = vmatprep.subr.bf16.mxu1 %v7834_v0  ;;  %4233 = vmatprep.subr.bf16.mxu0 %v8747_v53 }
 0x3c5   :  { %4234 = vmatpush1.bf16.msra.mxu0 %v8750_v1  ;;  %7127 = vmatpush3.bf16.msra.mxu1 %v7470_v22 }
 0x3c6   :  { %4235 = vmatprep.subr.bf16.mxu0 %v8509_v62  ;;  %7128 = vmatprep.subr.bf16.mxu1 %v7834_v0  ;;  %v7474_v62 = vld [vmem:[#allocation7 + $0x8] ss:$12 sps:$4 sm:$0xff]  }
 0x3c9   :  { %4236 = vmatpush1.bf16.msra.mxu0 %v8512_v24  ;;  %7129 = vmatpush3.bf16.msra.mxu1 %v7471_v21 }
 0x3ca   :  { %4237 = vmatprep.subr.bf16.mxu0 %v8516_v52  ;;  %7130 = vmatprep.subr.bf16.mxu1 %v7834_v0 }
 0x3cd   :  { %4238 = vmatpush1.bf16.msra.mxu0 %v8519_v57  ;;  %7131 = vmatpush3.bf16.msra.mxu1 %v7472_v15 }
 0x3ce   :  { %4239 = vmatprep.subr.bf16.mxu0 %v8523_v3  ;;  %7132 = vmatprep.subr.bf16.mxu1 %v7834_v0 }
 0x3d1   :  { %4240 = vmatpush1.bf16.msra.mxu0 %v8526_v38  ;;  %7133 = vmatpush3.bf16.msra.mxu1 %v7473_v58 }
 0x3d2   :  { %4241 = vmatprep.subr.bf16.mxu0 %v8530_v6  ;;  %7134 = vmatprep.subr.bf16.mxu1 %v7834_v0 }
 0x3d5   :  { %4242 = vmatpush1.bf16.msra.mxu0 %v8533_v55  ;;  %7135 = vmatpush3.bf16.msra.mxu1 %v7474_v62 }
 0x3d6   :  { %4500 = vmatprep.subr.bf16.mxu0 %v8538_v43  ;;  %7140 = vmatprep.subr.bf16.mxu1 %v7834_v0 }
 0x452   :  { %v3688_v24 = vpop.f32.mrf.mxu0  ;;  %v3729_v52 = vpop.f32.mrf.mxu1 }
 0x453   :  { %v3738_v57 = vrot.slane %v3688_v24, 2  ;;  %v3762_v62 = vadd.f32 %v8664_v33, %v3729_v52 }
 0x454   :  { %v3690_v3 = vpop.f32.mrf.mxu0  ;;  %v7098_v61 = vpop.f32.mrf.mxu1 }
 0x455   :  { %v3742_v38 = vadd.f32 %v3738_v57, %v8390_v17  ;;  %v3739_v8 = vrot.slane %v3690_v3, 2  ;;  %v3764_v61 = vrot.slane %v3762_v62, 2 }
 0x456   :  { %v3692_v60 = vpop.f32.mrf.mxu0  ;;  %v3732_v32 = vpop.f32.mrf.mxu1 }
 0x457   :  { %v6565_v6 = vmul.f32 -1.442695, %v3742_v38  ;;  %v3743_v55 = vadd.f32 %v3739_v8, %v8319_v29 }
 0x458   :  { %v3693_v30 = vpop.f32.mrf.mxu0  ;;  %v7099_v22 = vpop.f32.mrf.mxu1 }
 0x459   :  { %7639 = vpow2.f32 %v6565_v6  ;;  %v6566_v21 = vmul.f32 -1.442695, %v3743_v55 }
 0x45b   :  { %7641 = vpow2.f32 %v6566_v21 }
 0x466   :  { %v7640_v43 = vpop.eup %7639 }
 0x467   :  { %v3750_v15 = vadd.f32 1.0, %v7640_v43 }
 0x468   :  { %v7642_v58 = vpop.eup %7641 }
 0x469   :  { %7643 = vrcp.f32 %v3750_v15  ;;  %v3751_v24 = vadd.f32 1.0, %v7642_v58  ;;  %v3772_v58 = vrot.slane %v8677_v13, 2 }
 0x46b   :  { %7645 = vrcp.f32 %v3751_v24 }
 0x476   :  { %v7644_v17 = vpop.eup %7643 }
 0x477   :  { %v3766_v57 = vmul.f32 %v7644_v17, %v3764_v61  ;;  %v3981_v38 = vpop.f32.mrf.mxu0  ;;  %v4022_v3 = vpop.f32.mrf.mxu1 }
 0x478   :  { %v4029_v60 = vadd.f32 %v3981_v38, %v8411_v46  ;;  %v7646_v15 = vpop.eup %7645 }
 0x479   :  { %v3767_v32 = vadd.f32 %v3766_v57, %v8416_v26  ;;  %v3983_v29 = vpop.f32.mrf.mxu0  ;;  %v7118_v6 = vpop.f32.mrf.mxu1  ;;  %v3769_v62 = vsub.f32 1.0, %v7646_v15  ;;  %v3774_v61 = vmul.f32 %v7646_v15, %v3772_v58  ;;  %v7485_v15 = vld [vmem:[#allocation7 + $0x80] ss:$12 sps:$4 sm:$0xff]   ;;  %v7486_v58 = vld [vmem:[#allocation7 + $0x68] ss:$12 sps:$4 sm:$0xff]  }
 0x47a   :  { %v6593_v8 = vmul.f32 -1.442695, %v4029_v60  ;;  %v4030_v21 = vadd.f32 %v3983_v29, %v8421_v20  ;;  %v8775_v57 = vpop.permute.xlu0 %3778  ;;  %v7475_v29 = vld [vmem:[#allocation7 + $0x170] ss:$12 sps:$4 sm:$0xff]  }
 0x47b   :  { %7647 = vtanh.f32 %v3767_v32  ;;  %v3985_v30 = vpop.f32.mrf.mxu0  ;;  %v4025_v22 = vpop.f32.mrf.mxu1  ;;  %vm3780_vm3 = vcmp.eq.s32.totalorder %v8775_v57, 1 }
 0x47c   :  { %7649 = vpow2.f32 %v6593_v8  ;;  %v6594_v43 = vmul.f32 -1.442695, %v4030_v21  ;;  %v7476_v30 = vld [vmem:[#allocation7 + $0x158] ss:$12 sps:$4 sm:$0xff]   ;;  %v7478_v21 = vld [vmem:[#allocation7 + $0x128] ss:$12 sps:$4 sm:$0xff]  }
 0x47d   :  { %v3986_v55 = vpop.f32.mrf.mxu0  ;;  %v7119_v52 = vpop.f32.mrf.mxu1 }
 0x47e   :  { %7651 = vpow2.f32 %v6594_v43 }
 0x488   :  { %v7648_v46 = vpop.eup %7647 }
 0x489   :  { %v7650_v24 = vpop.eup %7649  ;;  %v3770_v26 = vmul.f32 %v7648_v46, %v3769_v62  ;;  %v8847_v62 = vld [vmem:[#allocation7 + $0x4c] ss:$12 sps:$4 sm:$0xff]   ;;  %v8850_v46 = vld [vmem:[#allocation7 + $0x48] ss:$12 sps:$4 sm:$0xff]  }
 0x48a   :  { %v4037_v17 = vadd.f32 1.0, %v7650_v24  ;;  %v7490_v24 = vld [vmem:[#allocation7 + $0x50] ss:$12 sps:$4 sm:$0xff]  }
 0x48b   :  { %v3775_v38 = vadd.f32 %v3774_v61, %v3770_v26  ;;  %v7652_v8 = vpop.eup %7651  ;;  %v8854_v26 = vld [vmem:[#allocation7 + $0x34] ss:$12 sps:$4 sm:$0xff]   ;;  %v8857_v61 = vld [vmem:[#allocation7 + $0x30] ss:$12 sps:$4 sm:$0xff]  }
 0x48c   :  { %7653 = vrcp.f32 %v4037_v17  ;;  %v4038_v22 = vadd.f32 1.0, %v7652_v8  ;;  %v7494_v17 = vld [vmem:[#allocation7 + $0x38] ss:$12 sps:$4 sm:$0xff]   ;;  %v7502_v8 = vld [vmem:[#allocation7 + $0x8] ss:$12 sps:$4 sm:$0xff]  }
 0x48d   :  { %v3782_v60 = vrot.slane %v3775_v38, 6  ;;  %v8861_v38 = vld [vmem:[#allocation7 + $0x1c] ss:$12 sps:$4 sm:$0xff]  }
 0x48e   :  { %7655 = vrcp.f32 %v4038_v22 }
 0x48f   :  { %v8781_v20 = vsel %vm3780_vm3, %v3782_v60, %v8677_v13  ;;  %v3785_v32 = vsel %vm3780_vm3, %v3782_v60, 0.0  ;;  %v8793_v13 = vld [vmem:[%s9153_s5 + $0x1] ss:$0 sm:$0xff]  ;;  %v8864_v60 = vld [vmem:[#allocation7 + $0x18] ss:$12 sps:$4 sm:$0xff]  }
 0x490   :  { %4064 = vst [vmem:[#allocation8 + $0x6] sm:$0x3] %v3785_v32  ;;  %v4066_v6 = vpack.c.bf16 %v8781_v20, %v8781_v20  ;;  %v4049_v55 = vadd.f32 %v8793_v13, %v4022_v3  ;;  %v7498_v32 = vld [vmem:[#allocation7 + $0x20] ss:$12 sps:$4 sm:$0xff]  }
 0x492   :  { %4260 = vmatmul.mubr.bf16.vlgmr.msra.gmra.mxu0 %v4066_v6  ;;  %7137 = vmatmul.mubr.bf16.vlgmr.msra.gmra.mxu1 %v4066_v6  ;;  %v8871_v6 = vld [vmem:[#allocation7] ss:$12 sps:$4 sm:$0xff]  }
 0x493   :  { %4501 = vmatpush1.bf16.msra.mxu0 %v8558_v45  ;;  %7141 = vmatpush3.bf16.msra.mxu1 %v7475_v29  ;;  %v7477_v45 = vld [vmem:[#allocation7 + $0x140] ss:$12 sps:$4 sm:$0xff]   ;;  %v8868_v29 = vld [vmem:[#allocation7 + $0x4] ss:$12 sps:$4 sm:$0xff]  }
 0x494   :  { %4502 = vmatprep.subr.bf16.mxu0 %v8562_v23  ;;  %7142 = vmatprep.subr.bf16.mxu1 %v7834_v0 }
 0x495   :  { %4532 = vmatprep.mubr.bf16.mxu0 %v9157_v40  ;;  %7156 = vmatprep.mubr.msk.bf16.mxu1 %vm7836_vm1, %v7834_v0 }
 0x497   :  { %4503 = vmatpush1.bf16.msra.mxu0 %v8565_v27  ;;  %7143 = vmatpush3.bf16.msra.mxu1 %v7476_v30  ;;  %v7479_v27 = vld [vmem:[#allocation7 + $0x110] ss:$12 sps:$4 sm:$0xff]   ;;  %v8876_v30 = vld [vmem:[#allocation7 + $0x16c] ss:$12 sps:$4 sm:$0xff]  }
 0x498   :  { %4504 = vmatprep.subr.bf16.mxu0 %v8569_v56  ;;  %7144 = vmatprep.subr.bf16.mxu1 %v7834_v0  ;;  %v7480_v56 = vld [vmem:[#allocation7 + $0xf8] ss:$12 sps:$4 sm:$0xff]  }
 0x499   :  { %v7654_v23 = vpop.eup %7653 }
 0x49a   :  { %v4050_v52 = vmul.f32 %v7654_v23, %v4049_v55 }
 0x49b   :  { %4505 = vmatpush1.bf16.msra.mxu0 %v8576_v18  ;;  %7145 = vmatpush3.bf16.msra.mxu1 %v7477_v45  ;;  %v7481_v18 = vld [vmem:[#allocation7 + $0xe0] ss:$12 sps:$4 sm:$0xff]  }
 0x49c   :  { %v4051_v43 = vadd.f32 %v4050_v52, %v8380_v48  ;;  %4506 = vmatprep.subr.bf16.mxu0 %v8580_v54  ;;  %7146 = vmatprep.subr.bf16.mxu1 %v7834_v0  ;;  %v7656_v48 = vpop.eup %7655 }
 0x49d   :  { %v4053_v54 = vsub.f32 1.0, %v7656_v48 }
 0x49e   :  { %7657 = vtanh.f32 %v4051_v43 }
 0x49f   :  { %4507 = vmatpush1.bf16.msra.mxu0 %v8583_v63  ;;  %7147 = vmatpush3.bf16.msra.mxu1 %v7478_v21 }
 0x4a0   :  { %4508 = vmatprep.subr.bf16.mxu0 %v8587_v4  ;;  %7148 = vmatprep.subr.bf16.mxu1 %v7834_v0  ;;  %v7482_v4 = vld [vmem:[#allocation7 + $0xc8] ss:$12 sps:$4 sm:$0xff]  }
 0x4a3   :  { %4509 = vmatpush1.bf16.msra.mxu0 %v8591_v7  ;;  %7149 = vmatpush3.bf16.msra.mxu1 %v7479_v27  ;;  %v8816_v7 = vpop.permute.xlu1 %4059 }
 0x4a4   :  { %4510 = vmatprep.subr.bf16.mxu0 %v8595_v47  ;;  %7150 = vmatprep.subr.bf16.mxu1 %v7834_v0  ;;  %vm4061_vm4 = vcmp.eq.s32.totalorder %v8816_v7, 1  ;;  %v8904_v7 = vld [vmem:[#allocation7 + $0x13c] ss:$12 sps:$4 sm:$0xff]  }
 0x4a7   :  { %4511 = vmatpush1.bf16.msra.mxu0 %v8598_v11  ;;  %7151 = vmatpush3.bf16.msra.mxu1 %v7480_v56  ;;  %v4055_v11 = vmul.f32 %v7656_v48, %v8718_v12 }
 0x4a8   :  { %4512 = vmatprep.subr.bf16.mxu0 %v8602_v37  ;;  %7152 = vmatprep.subr.bf16.mxu1 %v7834_v0 }
 0x4ab   :  { %v7658_v63 = vpop.eup %7657  ;;  %4513 = vmatpush1.bf16.msra.mxu0 %v8605_v25  ;;  %7153 = vmatpush3.bf16.msra.mxu1 %v7481_v18 }
 0x4ac   :  { %4514 = vmatprep.subr.bf16.mxu0 %v8609_v51  ;;  %7154 = vmatprep.subr.bf16.mxu1 %v7834_v0  ;;  %v4054_v47 = vmul.f32 %v7658_v63, %v4053_v54 }
 0x4ae   :  { %v4056_v3 = vadd.f32 %v4055_v11, %v4054_v47 }
 0x4af   :  { %4515 = vmatpush1.bf16.msra.mxu0 %v8612_v9  ;;  %7155 = vmatpush3.bf16.msra.mxu1 %v7482_v4  ;;  %v7483_v9 = vld [vmem:[#allocation7 + $0xb0] ss:$12 sps:$4 sm:$0xff]  }
 0x4b0   :  { %v8826_v37 = vsel %vm4061_vm4, %v4056_v3, %v8718_v12  ;;  %v4063_v25 = vsel %vm4061_vm4, %v4056_v3, 0.0  ;;  %4790 = vmatprep.subr.bf16.mxu0 %v8727_v35  ;;  %7160 = vmatprep.subr.bf16.mxu1 %v7834_v0  ;;  %v7484_v12 = vld [vmem:[#allocation7 + $0x98] ss:$12 sps:$4 sm:$0xff]  }
 0x4b1   :  { %4065 = vst [vmem:[#allocation8 + $0x18] sm:$0x3] %v4063_v25  ;;  %v4339_v51 = vpack.c.bf16 %v8826_v37, %v8826_v37 }
 0x4b3   :  { %4533 = vmatmul.mubr.bf16.vlgmr.msra.gmra.mxu0 %v4339_v51  ;;  %7157 = vmatmul.mubr.bf16.vlgmr.msra.gmra.mxu1 %v4339_v51 }
 0x4b4   :  { %4791 = vmatpush1.bf16.msra.mxu0 %v8729_v50  ;;  %4822 = vmatprep.mubr.bf16.mxu0 %v9157_v40 }
 0x4b5   :  { %4792 = vmatprep.subr.bf16.mxu0 %v8733_v16  ;;  %7176 = vmatprep.mubr.msk.bf16.mxu1 %vm7836_vm1, %v7834_v0 }
 0x4b6   :  { %7161 = vmatpush3.bf16.msra.mxu1 %v7483_v9 }
 0x4b7   :  { %7162 = vmatprep.subr.bf16.mxu1 %v7834_v0 }
 0x4b8   :  { %4793 = vmatpush1.bf16.msra.mxu0 %v8736_v2 }
 0x4b9   :  { %4794 = vmatprep.subr.bf16.mxu0 %v8740_v14 }
 0x4ba   :  { %7163 = vmatpush3.bf16.msra.mxu1 %v7484_v12 }
 0x4bb   :  { %7164 = vmatprep.subr.bf16.mxu1 %v7834_v0 }
 0x4bc   :  { %4795 = vmatpush1.bf16.msra.mxu0 %v8743_v59 }
 0x4bd   :  { %4796 = vmatprep.subr.bf16.mxu0 %v8747_v53 }
 0x4be   :  { %7165 = vmatpush3.bf16.msra.mxu1 %v7485_v15 }
 0x4bf   :  { %7166 = vmatprep.subr.bf16.mxu1 %v7834_v0 }
 0x4c0   :  { %4797 = vmatpush1.bf16.msra.mxu0 %v8750_v1 }
 0x4c1   :  { %4798 = vmatprep.subr.bf16.mxu0 %v8847_v62 }
 0x4c2   :  { %7167 = vmatpush3.bf16.msra.mxu1 %v7486_v58 }
 0x4c3   :  { %7168 = vmatprep.subr.bf16.mxu1 %v7834_v0 }
 0x4c4   :  { %4799 = vmatpush1.bf16.msra.mxu0 %v8850_v46 }
 0x4c5   :  { %4800 = vmatprep.subr.bf16.mxu0 %v8854_v26 }
 0x4c6   :  { %7169 = vmatpush3.bf16.msra.mxu1 %v7490_v24 }
 0x4c7   :  { %7170 = vmatprep.subr.bf16.mxu1 %v7834_v0 }
 0x4c8   :  { %4801 = vmatpush1.bf16.msra.mxu0 %v8857_v61 }
 0x4c9   :  { %4802 = vmatprep.subr.bf16.mxu0 %v8861_v38 }
 0x4ca   :  { %7171 = vmatpush3.bf16.msra.mxu1 %v7494_v17 }
 0x4cb   :  { %7172 = vmatprep.subr.bf16.mxu1 %v7834_v0 }
 0x4cc   :  { %4803 = vmatpush1.bf16.msra.mxu0 %v8864_v60 }
 0x4cd   :  { %4804 = vmatprep.subr.bf16.mxu0 %v8868_v29 }
 0x4ce   :  { %7173 = vmatpush3.bf16.msra.mxu1 %v7498_v32 }
 0x4cf   :  { %7174 = vmatprep.subr.bf16.mxu1 %v7834_v0 }
 0x4d0   :  { %4805 = vmatpush1.bf16.msra.mxu0 %v8871_v6 }
 0x4d1   :  { %5078 = vmatprep.subr.bf16.mxu0 %v8876_v30 }
 0x4d2   :  { %7175 = vmatpush3.bf16.msra.mxu1 %v7502_v8 }
 0x4d3   :  { %7180 = vmatprep.subr.bf16.mxu1 %v7834_v0 }
 0x552   :  { %v4261_v22 = vpop.f32.mrf.mxu0  ;;  %v4302_v45 = vpop.f32.mrf.mxu1 }
 0x553   :  { %v4309_v55 = vadd.f32 %v4261_v22, %v8323_v31  ;;  %v4329_v3 = vadd.f32 %v8664_v33, %v4302_v45 }
 0x554   :  { %v4263_v23 = vpop.f32.mrf.mxu0  ;;  %v7138_v52 = vpop.f32.mrf.mxu1 }
 0x555   :  { %v6620_v21 = vmul.f32 -1.442695, %v4309_v55  ;;  %v4310_v18 = vadd.f32 %v4263_v23, %v8328_v19 }
 0x556   :  { %v4265_v43 = vpop.f32.mrf.mxu0  ;;  %v4305_v27 = vpop.f32.mrf.mxu1 }
 0x557   :  { %7659 = vpow2.f32 %v6620_v21  ;;  %v6621_v54 = vmul.f32 -1.442695, %v4310_v18 }
 0x558   :  { %v4266_v56 = vpop.f32.mrf.mxu0  ;;  %v7139_v48 = vpop.f32.mrf.mxu1 }
 0x559   :  { %7661 = vpow2.f32 %v6621_v54 }
 0x564   :  { %v7660_v63 = vpop.eup %7659 }
 0x565   :  { %v4317_v4 = vadd.f32 1.0, %v7660_v63 }
 0x566   :  { %v7662_v47 = vpop.eup %7661 }
 0x567   :  { %7663 = vrcp.f32 %v4317_v4  ;;  %v4318_v11 = vadd.f32 1.0, %v7662_v47 }
 0x569   :  { %7665 = vrcp.f32 %v4318_v11 }
 0x573   :  { %v4534_v25 = vpop.f32.mrf.mxu0  ;;  %v4575_v51 = vpop.f32.mrf.mxu1 }
 0x574   :  { %v7664_v9 = vpop.eup %7663  ;;  %v4584_v12 = vrot.slane %v4534_v25, 2  ;;  %v7506_v25 = vld [vmem:[#allocation7 + $0x170] ss:$12 sps:$4 sm:$0xff]  }
 0x575   :  { %v4330_v15 = vmul.f32 %v7664_v9, %v4329_v3  ;;  %v4536_v58 = vpop.f32.mrf.mxu0  ;;  %v7158_v24 = vpop.f32.mrf.mxu1  ;;  %v8893_v3 = vld [vmem:[#allocation7 + $0x168] ss:$12 sps:$4 sm:$0xff]  }
 0x576   :  { %v4588_v17 = vadd.f32 %v4584_v12, %v8346_v44  ;;  %v4585_v23 = vrot.slane %v4536_v58, 2  ;;  %v7666_v43 = vpop.eup %7665  ;;  %v8897_v12 = vld [vmem:[#allocation7 + $0x154] ss:$12 sps:$4 sm:$0xff]   ;;  %v4608_v24 = vadd.f32 %v8793_v13, %v4575_v51 }
 0x577   :  { %v4331_v32 = vadd.f32 %v4330_v15, %v8353_v49  ;;  %v4538_v8 = vpop.f32.mrf.mxu0  ;;  %v4578_v22 = vpop.f32.mrf.mxu1  ;;  %v4333_v27 = vsub.f32 1.0, %v7666_v43  ;;  %v4335_v54 = vmul.f32 %v7666_v43, %v8781_v20  ;;  %v8900_v15 = vld [vmem:[#allocation7 + $0x150] ss:$12 sps:$4 sm:$0xff]   ;;  %v7518_v51 = vld [vmem:[#allocation7 + $0x128] ss:$12 sps:$4 sm:$0xff]  }
 0x578   :  { %v6648_v55 = vmul.f32 -1.442695, %v4588_v17  ;;  %v4589_v33 = vadd.f32 %v4585_v23, %v8370_v28  ;;  %v8911_v17 = vld [vmem:[#allocation7 + $0x138] ss:$12 sps:$4 sm:$0xff]   ;;  %v8926_v43 = vld [vmem:[#allocation7 + $0x108] ss:$12 sps:$4 sm:$0xff]  }
 0x579   :  { %7667 = vtanh.f32 %v4331_v32  ;;  %v4539_v52 = vpop.f32.mrf.mxu0  ;;  %v7159_v21 = vpop.f32.mrf.mxu1  ;;  %v7514_v32 = vld [vmem:[#allocation7 + $0x140] ss:$12 sps:$4 sm:$0xff]   ;;  %v8915_v22 = vld [vmem:[#allocation7 + $0x124] ss:$12 sps:$4 sm:$0xff]  }
 0x57a   :  { %7669 = vpow2.f32 %v6648_v55  ;;  %v6649_v45 = vmul.f32 -1.442695, %v4589_v33  ;;  %v4610_v55 = vrot.slane %v4608_v24, 2  ;;  %v8918_v52 = vld [vmem:[#allocation7 + $0x120] ss:$12 sps:$4 sm:$0xff]  }
 0x57b   :  { %v8922_v33 = vld [vmem:[#allocation7 + $0x10c] ss:$12 sps:$4 sm:$0xff]  }
 0x57c   :  { %7671 = vpow2.f32 %v6649_v45 }
 0x586   :  { %v7668_v56 = vpop.eup %7667 }
 0x587   :  { %v7670_v48 = vpop.eup %7669  ;;  %v4334_v18 = vmul.f32 %v7668_v56, %v4333_v27  ;;  %v7522_v27 = vld [vmem:[#allocation7 + $0x110] ss:$12 sps:$4 sm:$0xff]   ;;  %v8930_v56 = vld [vmem:[#allocation7 + $0xf4] ss:$12 sps:$4 sm:$0xff]  }
 0x588   :  { %v4596_v63 = vadd.f32 1.0, %v7670_v48  ;;  %v8933_v48 = vld [vmem:[#allocation7 + $0xf0] ss:$12 sps:$4 sm:$0xff]  }
 0x589   :  { %v4336_v4 = vadd.f32 %v4335_v54, %v4334_v18  ;;  %v7672_v58 = vpop.eup %7671  ;;  %v7526_v18 = vld [vmem:[#allocation7 + $0xf8] ss:$12 sps:$4 sm:$0xff]   ;;  %v8937_v54 = vld [vmem:[#allocation7 + $0xdc] ss:$12 sps:$4 sm:$0xff]  }
 0x58a   :  { %7673 = vrcp.f32 %v4596_v63  ;;  %v4597_v8 = vadd.f32 1.0, %v7672_v58  ;;  %v8940_v63 = vld [vmem:[#allocation7 + $0xd8] ss:$12 sps:$4 sm:$0xff]   ;;  %v4618_v58 = vrot.slane %v8826_v37, 2 }
 0x58b   :  { %v8889_v47 = vsel %vm4061_vm4, %v4336_v4, %v8781_v20  ;;  %v4338_v11 = vsel %vm4061_vm4, %v4336_v4, 0.0  ;;  %v7510_v20 = vld [vmem:[#allocation7 + $0x158] ss:$12 sps:$4 sm:$0xff]   ;;  %v7530_v4 = vld [vmem:[#allocation7 + $0xe0] ss:$12 sps:$4 sm:$0xff]  }
 0x58c   :  { %4627 = vst [vmem:[#allocation8 + $0x8] sm:$0x3] %v4338_v11  ;;  %v4629_v9 = vpack.c.bf16 %v8889_v47, %v8889_v47  ;;  %7675 = vrcp.f32 %v4597_v8  ;;  %v8944_v11 = vld [vmem:[#allocation7 + $0xc4] ss:$12 sps:$4 sm:$0xff]  }
 0x58e   :  { %4823 = vmatmul.mubr.bf16.vlgmr.msra.gmra.mxu0 %v4629_v9  ;;  %7177 = vmatmul.mubr.bf16.vlgmr.msra.gmra.mxu1 %v4629_v9  ;;  %v8947_v9 = vld [vmem:[#allocation7 + $0xc0] ss:$12 sps:$4 sm:$0xff]  }
 0x58f   :  { %5079 = vmatpush1.bf16.msra.mxu0 %v8893_v3  ;;  %7181 = vmatpush3.bf16.msra.mxu1 %v7506_v25 }
 0x590   :  { %5080 = vmatprep.subr.bf16.mxu0 %v8897_v12  ;;  %7182 = vmatprep.subr.bf16.mxu1 %v7834_v0 }
 0x591   :  { %5110 = vmatprep.mubr.bf16.mxu0 %v9157_v40  ;;  %7196 = vmatprep.mubr.msk.bf16.mxu1 %vm7836_vm1, %v7834_v0 }
 0x593   :  { %5081 = vmatpush1.bf16.msra.mxu0 %v8900_v15  ;;  %7183 = vmatpush3.bf16.msra.mxu1 %v7510_v20  ;;  %v7534_v20 = vld [vmem:[#allocation7 + $0xc8] ss:$12 sps:$4 sm:$0xff]  }
 0x594   :  { %5082 = vmatprep.subr.bf16.mxu0 %v8904_v7  ;;  %7184 = vmatprep.subr.bf16.mxu1 %v7834_v0 }
 0x597   :  { %v7674_v23 = vpop.eup %7673  ;;  %5083 = vmatpush1.bf16.msra.mxu0 %v8911_v17  ;;  %7185 = vmatpush3.bf16.msra.mxu1 %v7514_v32 }
 0x598   :  { %v4612_v21 = vmul.f32 %v7674_v23, %v4610_v55  ;;  %5084 = vmatprep.subr.bf16.mxu0 %v8915_v22  ;;  %7186 = vmatprep.subr.bf16.mxu1 %v7834_v0 }
 0x599   :  { %v7676_v25 = vpop.eup %7675 }
 0x59a   :  { %v4613_v45 = vadd.f32 %v4612_v21, %v8374_v36  ;;  %v4615_v24 = vsub.f32 1.0, %v7676_v25  ;;  %v4620_v55 = vmul.f32 %v7676_v25, %v4618_v58 }
 0x59b   :  { %5085 = vmatpush1.bf16.msra.mxu0 %v8918_v52  ;;  %7187 = vmatpush3.bf16.msra.mxu1 %v7518_v51 }
 0x59c   :  { %7677 = vtanh.f32 %v4613_v45  ;;  %5086 = vmatprep.subr.bf16.mxu0 %v8922_v33  ;;  %7188 = vmatprep.subr.bf16.mxu1 %v7834_v0 }
 0x59f   :  { %5087 = vmatpush1.bf16.msra.mxu0 %v8926_v43  ;;  %7189 = vmatpush3.bf16.msra.mxu1 %v7522_v27 }
 0x5a0   :  { %5088 = vmatprep.subr.bf16.mxu0 %v8930_v56  ;;  %7190 = vmatprep.subr.bf16.mxu1 %v7834_v0 }
 0x5a3   :  { %5089 = vmatpush1.bf16.msra.mxu0 %v8933_v48  ;;  %7191 = vmatpush3.bf16.msra.mxu1 %v7526_v18 }
 0x5a4   :  { %5090 = vmatprep.subr.bf16.mxu0 %v8937_v54  ;;  %7192 = vmatprep.subr.bf16.mxu1 %v7834_v0 }
 0x5a7   :  { %5091 = vmatpush1.bf16.msra.mxu0 %v8940_v63  ;;  %7193 = vmatpush3.bf16.msra.mxu1 %v7530_v4 }
 0x5a8   :  { %5092 = vmatprep.subr.bf16.mxu0 %v8944_v11  ;;  %7194 = vmatprep.subr.bf16.mxu1 %v7834_v0 }
 0x5a9   :  { %v7678_v32 = vpop.eup %7677 }
 0x5aa   :  { %v4616_v8 = vmul.f32 %v7678_v32, %v4615_v24 }
 0x5ab   :  { %5093 = vmatpush1.bf16.msra.mxu0 %v8947_v9  ;;  %7195 = vmatpush3.bf16.msra.mxu1 %v7534_v20 }
 0x5ac   :  { %v4621_v23 = vadd.f32 %v4620_v55, %v4616_v8  ;;  %5368 = vmatprep.subr.bf16.mxu0 %v8727_v35  ;;  %7200 = vmatprep.subr.bf16.mxu1 %v7834_v0  ;;  %v7535_v35 = vld [vmem:[#allocation7 + $0xb0] ss:$12 sps:$4 sm:$0xff]  }
 0x5ae   :  { %v4623_v51 = vrot.slane %v4621_v23, 6 }
 0x5b0   :  { %v8958_v21 = vsel %vm3780_vm3, %v4623_v51, %v8826_v37  ;;  %v4626_v45 = vsel %vm3780_vm3, %v4623_v51, 0.0 }
 0x5b1   :  { %4628 = vst [vmem:[#allocation8 + $0x16] sm:$0x3] %v4626_v45  ;;  %v4917_v27 = vpack.c.bf16 %v8958_v21, %v8958_v21 }
 0x5b3   :  { %5111 = vmatmul.mubr.bf16.vlgmr.msra.gmra.mxu0 %v4917_v27  ;;  %7197 = vmatmul.mubr.bf16.vlgmr.msra.gmra.mxu1 %v4917_v27 }
 0x5b4   :  { %5369 = vmatpush1.bf16.msra.mxu0 %v8729_v50  ;;  %5400 = vmatprep.mubr.bf16.mxu0 %v9157_v40  ;;  %v7536_v50 = vld [vmem:[#allocation7 + $0x98] ss:$12 sps:$4 sm:$0xff]  }
 0x5b5   :  { %5370 = vmatprep.subr.bf16.mxu0 %v8733_v16  ;;  %7216 = vmatprep.mubr.msk.bf16.mxu1 %vm7836_vm1, %v7834_v0  ;;  %v7537_v16 = vld [vmem:[#allocation7 + $0x80] ss:$12 sps:$4 sm:$0xff]  }
 0x5b6   :  { %7201 = vmatpush3.bf16.msra.mxu1 %v7535_v35 }
 0x5b7   :  { %7202 = vmatprep.subr.bf16.mxu1 %v7834_v0 }
 0x5b8   :  { %5371 = vmatpush1.bf16.msra.mxu0 %v8736_v2  ;;  %v7538_v2 = vld [vmem:[#allocation7 + $0x68] ss:$12 sps:$4 sm:$0xff]  }
 0x5b9   :  { %5372 = vmatprep.subr.bf16.mxu0 %v8740_v14  ;;  %v7539_v14 = vld [vmem:[#allocation7 + $0x50] ss:$12 sps:$4 sm:$0xff]  }
 0x5ba   :  { %7203 = vmatpush3.bf16.msra.mxu1 %v7536_v50  ;;  %v8996_v50 = vld [vmem:[%s9153_s5] ss:$0 sm:$0xff] }
 0x5bb   :  { %7204 = vmatprep.subr.bf16.mxu1 %v7834_v0 }
 0x5bc   :  { %5373 = vmatpush1.bf16.msra.mxu0 %v8743_v59  ;;  %v7540_v59 = vld [vmem:[#allocation7 + $0x38] ss:$12 sps:$4 sm:$0xff]  }
 0x5bd   :  { %5374 = vmatprep.subr.bf16.mxu0 %v8747_v53  ;;  %v7541_v53 = vld [vmem:[#allocation7 + $0x20] ss:$12 sps:$4 sm:$0xff]  }
 0x5be   :  { %7205 = vmatpush3.bf16.msra.mxu1 %v7537_v16 }
 0x5bf   :  { %7206 = vmatprep.subr.bf16.mxu1 %v7834_v0 }
 0x5c0   :  { %5375 = vmatpush1.bf16.msra.mxu0 %v8750_v1  ;;  %v7542_v1 = vld [vmem:[#allocation7 + $0x8] ss:$12 sps:$4 sm:$0xff]  }
 0x5c1   :  { %5376 = vmatprep.subr.bf16.mxu0 %v8847_v62 }
 0x5c2   :  { %7207 = vmatpush3.bf16.msra.mxu1 %v7538_v2 }
 0x5c3   :  { %7208 = vmatprep.subr.bf16.mxu1 %v7834_v0 }
 0x5c4   :  { %5377 = vmatpush1.bf16.msra.mxu0 %v8850_v46 }
 0x5c5   :  { %5378 = vmatprep.subr.bf16.mxu0 %v8854_v26 }
 0x5c6   :  { %7209 = vmatpush3.bf16.msra.mxu1 %v7539_v14 }
 0x5c7   :  { %7210 = vmatprep.subr.bf16.mxu1 %v7834_v0 }
 0x5c8   :  { %5379 = vmatpush1.bf16.msra.mxu0 %v8857_v61 }
 0x5c9   :  { %5380 = vmatprep.subr.bf16.mxu0 %v8861_v38 }
 0x5ca   :  { %7211 = vmatpush3.bf16.msra.mxu1 %v7540_v59 }
 0x5cb   :  { %7212 = vmatprep.subr.bf16.mxu1 %v7834_v0 }
 0x5cc   :  { %5381 = vmatpush1.bf16.msra.mxu0 %v8864_v60 }
 0x5cd   :  { %5382 = vmatprep.subr.bf16.mxu0 %v8868_v29 }
 0x5ce   :  { %7213 = vmatpush3.bf16.msra.mxu1 %v7541_v53 }
 0x5cf   :  { %7214 = vmatprep.subr.bf16.mxu1 %v7834_v0 }
 0x5d0   :  { %5383 = vmatpush1.bf16.msra.mxu0 %v8871_v6 }
 0x5d1   :  { %5656 = vmatprep.subr.bf16.mxu0 %v8876_v30 }
 0x5d2   :  { %7215 = vmatpush3.bf16.msra.mxu1 %v7542_v1 }
 0x5d3   :  { %7220 = vmatprep.subr.bf16.mxu1 %v7834_v0 }
 0x64e   :  { %v4824_v57 = vpop.f32.mrf.mxu0  ;;  %v4865_v37 = vpop.f32.mrf.mxu1 }
 0x64f   :  { %v4874_v18 = vrot.slane %v4824_v57, 6  ;;  %v4898_v2 = vadd.f32 %v8996_v50, %v4865_v37 }
 0x650   :  { %v4826_v4 = vpop.f32.mrf.mxu0  ;;  %v7178_v25 = vpop.f32.mrf.mxu1 }
 0x651   :  { %v4878_v20 = vadd.f32 %v4874_v18, %v8323_v31  ;;  %v4875_v8 = vrot.slane %v4826_v4, 6  ;;  %v4900_v59 = vrot.slane %v4898_v2, 6 }
 0x652   :  { %v4828_v58 = vpop.f32.mrf.mxu0  ;;  %v4868_v24 = vpop.f32.mrf.mxu1 }
 0x653   :  { %v6675_v32 = vmul.f32 -1.442695, %v4878_v20  ;;  %v4879_v51 = vadd.f32 %v4875_v8, %v8328_v19 }
 0x654   :  { %v4829_v55 = vpop.f32.mrf.mxu0  ;;  %v7179_v23 = vpop.f32.mrf.mxu1 }
 0x655   :  { %7679 = vpow2.f32 %v6675_v32  ;;  %v6676_v45 = vmul.f32 -1.442695, %v4879_v51 }
 0x657   :  { %7681 = vpow2.f32 %v6676_v45 }
 0x662   :  { %v7680_v27 = vpop.eup %7679 }
 0x663   :  { %v4886_v35 = vadd.f32 1.0, %v7680_v27 }
 0x664   :  { %v7682_v16 = vpop.eup %7681 }
 0x665   :  { %7683 = vrcp.f32 %v4886_v35  ;;  %v4887_v14 = vadd.f32 1.0, %v7682_v16  ;;  %v4908_v16 = vrot.slane %v8889_v47, 6 }
 0x667   :  { %7685 = vrcp.f32 %v4887_v14 }
 0x672   :  { %v7684_v53 = vpop.eup %7683 }
 0x673   :  { %v4902_v1 = vmul.f32 %v7684_v53, %v4900_v59  ;;  %v5112_v57 = vpop.f32.mrf.mxu0  ;;  %v5153_v18 = vpop.f32.mrf.mxu1 }
 0x674   :  { %v5162_v4 = vrot.slane %v5112_v57, 4  ;;  %v7686_v27 = vpop.eup %7685  ;;  %v5186_v39 = vadd.f32 %v8793_v13, %v5153_v18  ;;  %v7547_v18 = vld [vmem:[#allocation7 + $0x110] ss:$12 sps:$4 sm:$0xff]  }
 0x675   :  { %v4903_v25 = vadd.f32 %v4902_v1, %v8353_v49  ;;  %v5114_v20 = vpop.f32.mrf.mxu0  ;;  %v7198_v58 = vpop.f32.mrf.mxu1  ;;  %v4905_v2 = vsub.f32 1.0, %v7686_v27  ;;  %v4910_v53 = vmul.f32 %v7686_v27, %v4908_v16  ;;  %v7549_v16 = vld [vmem:[#allocation7 + $0xe0] ss:$12 sps:$4 sm:$0xff]  }
 0x676   :  { %v5166_v24 = vadd.f32 %v5162_v4, %v8346_v44  ;;  %v5163_v23 = vrot.slane %v5114_v20, 4 }
 0x677   :  { %7687 = vtanh.f32 %v4903_v25  ;;  %v5116_v32 = vpop.f32.mrf.mxu0  ;;  %v5156_v8 = vpop.f32.mrf.mxu1 }
 0x678   :  { %v6703_v55 = vmul.f32 -1.442695, %v5166_v24  ;;  %v5167_v45 = vadd.f32 %v5163_v23, %v8370_v28  ;;  %v7543_v24 = vld [vmem:[#allocation7 + $0x170] ss:$12 sps:$4 sm:$0xff]   ;;  %v7544_v8 = vld [vmem:[#allocation7 + $0x158] ss:$12 sps:$4 sm:$0xff]  }
 0x679   :  { %v5117_v37 = vpop.f32.mrf.mxu0  ;;  %v7199_v51 = vpop.f32.mrf.mxu1 }
 0x67a   :  { %7689 = vpow2.f32 %v6703_v55  ;;  %v6704_v35 = vmul.f32 -1.442695, %v5167_v45  ;;  %v7545_v55 = vld [vmem:[#allocation7 + $0x140] ss:$12 sps:$4 sm:$0xff]   ;;  %v5188_v37 = vrot.slane %v5186_v39, 4 }
 0x67b   :  { %v7546_v45 = vld [vmem:[#allocation7 + $0x128] ss:$12 sps:$4 sm:$0xff]  }
 0x67c   :  { %7691 = vpow2.f32 %v6704_v35  ;;  %v7548_v35 = vld [vmem:[#allocation7 + $0xf8] ss:$12 sps:$4 sm:$0xff]   ;;  %v7551_v39 = vld [vmem:[#allocation7 + $0xa8] ss:$12 sps:$4 sm:$0xff]  }
 0x684   :  { %v7688_v14 = vpop.eup %7687 }
 0x685   :  { %v4906_v59 = vmul.f32 %v7688_v14, %v4905_v2  ;;  %v7550_v14 = vld [vmem:[#allocation7 + $0xc8] ss:$12 sps:$4 sm:$0xff]  }
 0x687   :  { %v7690_v1 = vpop.eup %7689  ;;  %v4911_v57 = vadd.f32 %v4910_v53, %v4906_v59  ;;  %v5196_v59 = vrot.slane %v8958_v21, 4 }
 0x688   :  { %v5174_v4 = vadd.f32 1.0, %v7690_v1 }
 0x689   :  { %v4913_v25 = vrot.slane %v4911_v57, 2 }
 0x68a   :  { %7693 = vrcp.f32 %v5174_v4 }
 0x68b   :  { %v9006_v20 = vsel %vm3485_vm2, %v4913_v25, %v8889_v47  ;;  %v4916_v58 = vsel %vm3485_vm2, %v4913_v25, 0.0  ;;  %v7692_v47 = vpop.eup %7691 }
 0x68c   :  { %5205 = vst [vmem:[#allocation8 + $0xa] sm:$0x3] %v4916_v58  ;;  %v5207_v32 = vpack.c.bf16 %v9006_v20, %v9006_v20  ;;  %v5175_v23 = vadd.f32 1.0, %v7692_v47  ;;  %v7553_v47 = vld [vmem:[#allocation7 + $0xac] ss:$12 sps:$4 sm:$0xff]  }
 0x68e   :  { %5401 = vmatmul.mubr.bf16.vlgmr.msra.gmra.mxu0 %v5207_v32  ;;  %7217 = vmatmul.mubr.bf16.vlgmr.msra.gmra.mxu1 %v5207_v32  ;;  %7695 = vrcp.f32 %v5175_v23  ;;  %v7558_v23 = vld [vmem:[#allocation7 + $0x98] ss:$12 sps:$4 sm:$0xff]  }
 0x68f   :  { %5657 = vmatpush1.bf16.msra.mxu0 %v8893_v3  ;;  %7221 = vmatpush3.bf16.msra.mxu1 %v7543_v24 }
 0x690   :  { %5658 = vmatprep.subr.bf16.mxu0 %v8897_v12  ;;  %7222 = vmatprep.subr.bf16.mxu1 %v7834_v0 }
 0x691   :  { %5688 = vmatprep.mubr.bf16.mxu0 %v9157_v40  ;;  %7236 = vmatprep.mubr.msk.bf16.mxu1 %vm7836_vm1, %v7834_v0 }
 0x693   :  { %5659 = vmatpush1.bf16.msra.mxu0 %v8900_v15  ;;  %7223 = vmatpush3.bf16.msra.mxu1 %v7544_v8 }
 0x694   :  { %5660 = vmatprep.subr.bf16.mxu0 %v8904_v7  ;;  %7224 = vmatprep.subr.bf16.mxu1 %v7834_v0 }
 0x697   :  { %v7694_v51 = vpop.eup %7693  ;;  %5661 = vmatpush1.bf16.msra.mxu0 %v8911_v17  ;;  %7225 = vmatpush3.bf16.msra.mxu1 %v7545_v55  ;;  %v7554_v55 = vld [vmem:[#allocation7 + $0xb0] ss:$12 sps:$4 sm:$0xff]  }
 0x698   :  { %v5190_v27 = vmul.f32 %v7694_v51, %v5188_v37  ;;  %5662 = vmatprep.subr.bf16.mxu0 %v8915_v22  ;;  %7226 = vmatprep.subr.bf16.mxu1 %v7834_v0  ;;  %v7561_v37 = vld [vmem:[#allocation7 + $0x7c] ss:$12 sps:$4 sm:$0xff]   ;;  %v7559_v51 = vld [vmem:[#allocation7 + $0x78] ss:$12 sps:$4 sm:$0xff]  }
 0x69a   :  { %v5191_v13 = vadd.f32 %v5190_v27, %v8374_v36  ;;  %v7565_v27 = vld [vmem:[#allocation7 + $0x64] ss:$12 sps:$4 sm:$0xff]  }
 0x69b   :  { %5663 = vmatpush1.bf16.msra.mxu0 %v8918_v52  ;;  %7227 = vmatpush3.bf16.msra.mxu1 %v7546_v45  ;;  %v7696_v2 = vpop.eup %7695  ;;  %v7562_v45 = vld [vmem:[#allocation7 + $0x80] ss:$12 sps:$4 sm:$0xff]  }
 0x69c   :  { %7697 = vtanh.f32 %v5191_v13  ;;  %5664 = vmatprep.subr.bf16.mxu0 %v8922_v33  ;;  %7228 = vmatprep.subr.bf16.mxu1 %v7834_v0  ;;  %v5193_v53 = vsub.f32 1.0, %v7696_v2  ;;  %v5198_v4 = vmul.f32 %v7696_v2, %v5196_v59  ;;  %v7563_v13 = vld [vmem:[#allocation7 + $0x60] ss:$12 sps:$4 sm:$0xff]  }
 0x69d   :  { %v7569_v2 = vld [vmem:[#allocation7 + $0x20] ss:$12 sps:$4 sm:$0xff]  }
 0x69f   :  { %5665 = vmatpush1.bf16.msra.mxu0 %v8926_v43  ;;  %7229 = vmatpush3.bf16.msra.mxu1 %v7547_v18  ;;  %v7566_v18 = vld [vmem:[#allocation7 + $0x68] ss:$12 sps:$4 sm:$0xff]  }
 0x6a0   :  { %5666 = vmatprep.subr.bf16.mxu0 %v8930_v56  ;;  %7230 = vmatprep.subr.bf16.mxu1 %v7834_v0 }
 0x6a3   :  { %5667 = vmatpush1.bf16.msra.mxu0 %v8933_v48  ;;  %7231 = vmatpush3.bf16.msra.mxu1 %v7548_v35  ;;  %v7567_v35 = vld [vmem:[#allocation7 + $0x50] ss:$12 sps:$4 sm:$0xff]  }
 0x6a4   :  { %5668 = vmatprep.subr.bf16.mxu0 %v8937_v54  ;;  %7232 = vmatprep.subr.bf16.mxu1 %v7834_v0 }
 0x6a7   :  { %5669 = vmatpush1.bf16.msra.mxu0 %v8940_v63  ;;  %7233 = vmatpush3.bf16.msra.mxu1 %v7549_v16  ;;  %v7568_v16 = vld [vmem:[#allocation7 + $0x38] ss:$12 sps:$4 sm:$0xff]  }
 0x6a8   :  { %5670 = vmatprep.subr.bf16.mxu0 %v8944_v11  ;;  %7234 = vmatprep.subr.bf16.mxu1 %v7834_v0 }
 0x6a9   :  { %v7698_v1 = vpop.eup %7697 }
 0x6aa   :  { %v5194_v57 = vmul.f32 %v7698_v1, %v5193_v53 }
 0x6ab   :  { %5671 = vmatpush1.bf16.msra.mxu0 %v8947_v9  ;;  %7235 = vmatpush3.bf16.msra.mxu1 %v7550_v14 }
 0x6ac   :  { %v5199_v25 = vadd.f32 %v5198_v4, %v5194_v57  ;;  %7240 = vmatprep.subr.bf16.mxu1 %v7834_v0  ;;  %5946 = vmatprep.subr.bf16.mxu0 %v7553_v47 }
 0x6ae   :  { %v5201_v58 = vrot.slane %v5199_v25, 4 }
 0x6b0   :  { %v9044_v24 = vsel %vm3192_vm0, %v5201_v58, %v8958_v21  ;;  %v5204_v32 = vsel %vm3192_vm0, %v5201_v58, 0.0  ;;  %v7557_v21 = vld [vmem:[#allocation7 + $0x94] ss:$12 sps:$4 sm:$0xff]  }
 0x6b1   :  { %5206 = vst [vmem:[#allocation8 + $0x14] sm:$0x3] %v5204_v32  ;;  %v5495_v8 = vpack.c.bf16 %v9044_v24, %v9044_v24 }
 0x6b3   :  { %5689 = vmatmul.mubr.bf16.vlgmr.msra.gmra.mxu0 %v5495_v8  ;;  %7237 = vmatmul.mubr.bf16.vlgmr.msra.gmra.mxu1 %v5495_v8 }
 0x6b4   :  { %5978 = vmatprep.mubr.bf16.mxu0 %v9157_v40  ;;  %7256 = vmatprep.mubr.msk.bf16.mxu1 %vm7836_vm1, %v7834_v0 }
 0x6b5   :  { %5947 = vmatpush1.bf16.msra.mxu0 %v7551_v39  ;;  %7241 = vmatpush3.bf16.msra.mxu1 %v7554_v55 }
 0x6b6   :  { %7242 = vmatprep.subr.bf16.mxu1 %v7834_v0  ;;  %5948 = vmatprep.subr.bf16.mxu0 %v7557_v21 }
 0x6b9   :  { %5949 = vmatpush1.bf16.msra.mxu0 %v7555_v34  ;;  %7243 = vmatpush3.bf16.msra.mxu1 %v7558_v23 }
 0x6ba   :  { %7244 = vmatprep.subr.bf16.mxu1 %v7834_v0  ;;  %5950 = vmatprep.subr.bf16.mxu0 %v7561_v37 }
 0x6bd   :  { %5951 = vmatpush1.bf16.msra.mxu0 %v7559_v51  ;;  %7245 = vmatpush3.bf16.msra.mxu1 %v7562_v45 }
 0x6be   :  { %7246 = vmatprep.subr.bf16.mxu1 %v7834_v0  ;;  %5952 = vmatprep.subr.bf16.mxu0 %v7565_v27 }
 0x6c1   :  { %5953 = vmatpush1.bf16.msra.mxu0 %v7563_v13  ;;  %7247 = vmatpush3.bf16.msra.mxu1 %v7566_v18 }
 0x6c2   :  { %5954 = vmatprep.subr.bf16.mxu0 %v8847_v62  ;;  %7248 = vmatprep.subr.bf16.mxu1 %v7834_v0  ;;  %v7570_v62 = vld [vmem:[#allocation7 + $0x8] ss:$12 sps:$4 sm:$0xff]  }
 0x6c5   :  { %5955 = vmatpush1.bf16.msra.mxu0 %v8850_v46  ;;  %7249 = vmatpush3.bf16.msra.mxu1 %v7567_v35 }
 0x6c6   :  { %5956 = vmatprep.subr.bf16.mxu0 %v8854_v26  ;;  %7250 = vmatprep.subr.bf16.mxu1 %v7834_v0 }
 0x6c9   :  { %5957 = vmatpush1.bf16.msra.mxu0 %v8857_v61  ;;  %7251 = vmatpush3.bf16.msra.mxu1 %v7568_v16 }
 0x6ca   :  { %5958 = vmatprep.subr.bf16.mxu0 %v8861_v38  ;;  %7252 = vmatprep.subr.bf16.mxu1 %v7834_v0 }
 0x6cd   :  { %5959 = vmatpush1.bf16.msra.mxu0 %v8864_v60  ;;  %7253 = vmatpush3.bf16.msra.mxu1 %v7569_v2 }
 0x6ce   :  { %5960 = vmatprep.subr.bf16.mxu0 %v8868_v29  ;;  %7254 = vmatprep.subr.bf16.mxu1 %v7834_v0 }
 0x6d1   :  { %5961 = vmatpush1.bf16.msra.mxu0 %v8871_v6  ;;  %7255 = vmatpush3.bf16.msra.mxu1 %v7570_v62 }
 0x6d2   :  { %6233 = vmatprep.subr.bf16.mxu0 %v8876_v30  ;;  %7260 = vmatprep.subr.bf16.mxu1 %v7834_v0 }
 0x74e   :  { %v5402_v46 = vpop.f32.mrf.mxu0  ;;  %v5443_v26 = vpop.f32.mrf.mxu1 }
 0x74f   :  { %v5452_v61 = vrot.slane %v5402_v46, 4  ;;  %v5476_v8 = vadd.f32 %v8996_v50, %v5443_v26 }
 0x750   :  { %v5404_v38 = vpop.f32.mrf.mxu0  ;;  %v7218_v14 = vpop.f32.mrf.mxu1 }
 0x751   :  { %v5456_v60 = vadd.f32 %v5452_v61, %v8323_v31  ;;  %v5453_v1 = vrot.slane %v5404_v38, 4  ;;  %v5478_v39 = vrot.slane %v5476_v8, 4  ;;  %v5486_v14 = vrot.slane %v9006_v20, 4  ;;  %v9089_v8 = vld [vmem:[%s9153_s5 + $0x1] ss:$0 sm:$0xff]  ;;  %s7837_s5 = smov [#allocation8]  }
 0x752   :  { %v5406_v59 = vpop.f32.mrf.mxu0  ;;  %v5446_v53 = vpop.f32.mrf.mxu1  ;;  %s6351_s29 = sshll.u32 %s7837_s5, 4  ;;  %s6352_s29 = int_to_ptr.vmem [resolvable:$true] %s6351_s29 }
 0x753   :  { %v6730_v29 = vmul.f32 -1.442695, %v5456_v60  ;;  %v5457_v6 = vadd.f32 %v5453_v1, %v8328_v19  ;;  %s7799_s30 = scalar_lea.vmem %s6352_s29, 512  ;;  %p7804_p2 = scmp.lt.s32.totalorder %s6352_s29, %s6352_s29 }
 0x754   :  { %v5407_v57 = vpop.f32.mrf.mxu0  ;;  %v7219_v4 = vpop.f32.mrf.mxu1  ;;  %p7800_p1 = scmp.ne.s32.totalorder %s6352_s29, %s7799_s30  ;;  %p7805_p3 = scmp.lt.s32.totalorder %s7799_s30, %s7799_s30 }
 0x755   :  { %7699 = vpow2.f32 %v6730_v29  ;;  %v6731_v25 = vmul.f32 -1.442695, %v5457_v6 }
 0x756   :  { %p7806_p4 = por %p7805_p3, %p7804_p2 }
 0x757   :  { %7701 = vpow2.f32 %v6731_v25 }
 0x758   :  { %p7807_p5 = pnand %p7806_p4, %p7800_p1 }
 0x762   :  { %v7700_v30 = vpop.eup %7699 }
 0x763   :  { %v5464_v58 = vadd.f32 1.0, %v7700_v30 }
 0x764   :  { %v7702_v32 = vpop.eup %7701 }
 0x765   :  { %7703 = vrcp.f32 %v5464_v58  ;;  %v5465_v47 = vadd.f32 1.0, %v7702_v32  ;;  %v7571_v58 = vld [vmem:[#allocation7 + $0x170] ss:$12 sps:$4 sm:$0xff]  }
 0x767   :  { %7705 = vrcp.f32 %v5465_v47 }
 0x772   :  { %v7704_v55 = vpop.eup %7703 }
 0x773   :  { %v5480_v21 = vmul.f32 %v7704_v55, %v5478_v39  ;;  %v5690_v34 = vpop.f32.mrf.mxu0  ;;  %v5731_v23 = vpop.f32.mrf.mxu1  ;;  %v7573_v39 = vld [vmem:[#allocation7 + $0x140] ss:$12 sps:$4 sm:$0xff]  }
 0x774   :  { %v5740_v37 = vrot.slane %v5690_v34, 6  ;;  %v7706_v61 = vpop.eup %7705  ;;  %v5764_v47 = vadd.f32 %v9089_v8, %v5731_v23 }
 0x775   :  { %v5481_v51 = vadd.f32 %v5480_v21, %v8353_v49  ;;  %v5692_v45 = vpop.f32.mrf.mxu0  ;;  %v7238_v27 = vpop.f32.mrf.mxu1  ;;  %v5483_v60 = vsub.f32 1.0, %v7706_v61  ;;  %v5488_v29 = vmul.f32 %v7706_v61, %v5486_v14 }
 0x776   :  { %v5744_v13 = vadd.f32 %v5740_v37, %v8346_v44  ;;  %v5741_v2 = vrot.slane %v5692_v45, 6 }
 0x777   :  { %7707 = vtanh.f32 %v5481_v51  ;;  %v5694_v18 = vpop.f32.mrf.mxu0  ;;  %v5734_v35 = vpop.f32.mrf.mxu1 }
 0x778   :  { %v6758_v16 = vmul.f32 -1.442695, %v5744_v13  ;;  %v5745_v26 = vadd.f32 %v5741_v2, %v8370_v28 }
 0x779   :  { %v5695_v62 = vpop.f32.mrf.mxu0  ;;  %v7239_v46 = vpop.f32.mrf.mxu1 }
 0x77a   :  { %7709 = vpow2.f32 %v6758_v16  ;;  %v6759_v38 = vmul.f32 -1.442695, %v5745_v26 }
 0x77c   :  { %7711 = vpow2.f32 %v6759_v38 }
 0x784   :  { %v7708_v59 = vpop.eup %7707 }
 0x785   :  { %v5484_v53 = vmul.f32 %v7708_v59, %v5483_v60 }
 0x787   :  { %v7710_v1 = vpop.eup %7709  ;;  %v5489_v57 = vadd.f32 %v5488_v29, %v5484_v53 }
 0x788   :  { %v5752_v4 = vadd.f32 1.0, %v7710_v1 }
 0x789   :  { %v5491_v6 = vrot.slane %v5489_v57, 4  ;;  %v7712_v5 = vpop.eup %7711 }
 0x78a   :  { %7713 = vrcp.f32 %v5752_v4  ;;  %v5753_v55 = vadd.f32 1.0, %v7712_v5 }
 0x78b   :  { %v9080_v25 = vsel %vm2897_vm15, %v5491_v6, %v9006_v20  ;;  %v5494_v30 = vsel %vm2897_vm15, %v5491_v6, 0.0  ;;  %v7572_v20 = vld [vmem:[#allocation7 + $0x158] ss:$12 sps:$4 sm:$0xff]  }
 0x78c   :  { %5783 = vst [vmem:[#allocation8 + $0xc] sm:$0x3] %v5494_v30  ;;  %v5785_v32 = vpack.c.bf16 %v9080_v25, %v9080_v25  ;;  %7715 = vrcp.f32 %v5753_v55 }
 0x78e   :  { %5979 = vmatmul.mubr.bf16.vlgmr.msra.gmra.mxu0 %v5785_v32  ;;  %7257 = vmatmul.mubr.bf16.vlgmr.msra.gmra.mxu1 %v5785_v32 }
 0x78f   :  { %6234 = vmatpush1.bf16.msra.mxu0 %v8893_v3  ;;  %7261 = vmatpush3.bf16.msra.mxu1 %v7571_v58  ;;  %v5766_v3 = vrot.slane %v5764_v47, 6 }
 0x790   :  { %6235 = vmatprep.subr.bf16.mxu0 %v8897_v12  ;;  %7262 = vmatprep.subr.bf16.mxu1 %v7834_v0 }
 0x791   :  { %6265 = vmatprep.mubr.bf16.mxu0 %v9157_v40  ;;  %7276 = vmatprep.mubr.msk.bf16.mxu1 %vm7836_vm1, %v7834_v0  ;;  %v7574_v40 = vld [vmem:[#allocation7 + $0x128] ss:$12 sps:$4 sm:$0xff]  }
 0x793   :  { %6236 = vmatpush1.bf16.msra.mxu0 %v8900_v15  ;;  %7263 = vmatpush3.bf16.msra.mxu1 %v7572_v20 }
 0x794   :  { %6237 = vmatprep.subr.bf16.mxu0 %v8904_v7  ;;  %7264 = vmatprep.subr.bf16.mxu1 %v7834_v0  ;;  %v7575_v7 = vld [vmem:[#allocation7 + $0x110] ss:$12 sps:$4 sm:$0xff]  }
 0x797   :  { %v7714_v12 = vpop.eup %7713  ;;  %6238 = vmatpush1.bf16.msra.mxu0 %v8911_v17  ;;  %7265 = vmatpush3.bf16.msra.mxu1 %v7573_v39  ;;  %v7576_v17 = vld [vmem:[#allocation7 + $0xf8] ss:$12 sps:$4 sm:$0xff]  }
 0x798   :  { %v5768_v21 = vmul.f32 %v7714_v12, %v5766_v3  ;;  %6239 = vmatprep.subr.bf16.mxu0 %v8915_v22  ;;  %7266 = vmatprep.subr.bf16.mxu1 %v7834_v0  ;;  %v7577_v22 = vld [vmem:[#allocation7 + $0xe0] ss:$12 sps:$4 sm:$0xff]   ;;  %v6064_v3 = vrot.slane %v9080_v25, 2 }
 0x79a   :  { %v5769_v15 = vadd.f32 %v5768_v21, %v8374_v36 }
 0x79b   :  { %6240 = vmatpush1.bf16.msra.mxu0 %v8918_v52  ;;  %7267 = vmatpush3.bf16.msra.mxu1 %v7574_v40  ;;  %v7716_v52 = vpop.eup %7715 }
 0x79c   :  { %7717 = vtanh.f32 %v5769_v15  ;;  %6241 = vmatprep.subr.bf16.mxu0 %v8922_v33  ;;  %7268 = vmatprep.subr.bf16.mxu1 %v7834_v0  ;;  %v7578_v33 = vld [vmem:[#allocation7 + $0xc8] ss:$12 sps:$4 sm:$0xff]  }
 0x79f   :  { %6242 = vmatpush1.bf16.msra.mxu0 %v8926_v43  ;;  %7269 = vmatpush3.bf16.msra.mxu1 %v7575_v7  ;;  %v5774_v43 = vrot.slane %v9044_v24, 6 }
 0x7a0   :  { %6243 = vmatprep.subr.bf16.mxu0 %v8930_v56  ;;  %7270 = vmatprep.subr.bf16.mxu1 %v7834_v0  ;;  %v5771_v56 = vsub.f32 1.0, %v7716_v52 }
 0x7a1   :  { %v5776_v23 = vmul.f32 %v7716_v52, %v5774_v43 }
 0x7a3   :  { %6244 = vmatpush1.bf16.msra.mxu0 %v8933_v48  ;;  %7271 = vmatpush3.bf16.msra.mxu1 %v7576_v17 }
 0x7a4   :  { %6245 = vmatprep.subr.bf16.mxu0 %v8937_v54  ;;  %7272 = vmatprep.subr.bf16.mxu1 %v7834_v0 }
 0x7a7   :  { %6246 = vmatpush1.bf16.msra.mxu0 %v8940_v63  ;;  %7273 = vmatpush3.bf16.msra.mxu1 %v7577_v22 }
 0x7a8   :  { %6247 = vmatprep.subr.bf16.mxu0 %v8944_v11  ;;  %7274 = vmatprep.subr.bf16.mxu1 %v7834_v0 }
 0x7a9   :  { %v7718_v34 = vpop.eup %7717 }
 0x7aa   :  { %v5772_v48 = vmul.f32 %v7718_v34, %v5771_v56 }
 0x7ab   :  { %6248 = vmatpush1.bf16.msra.mxu0 %v8947_v9  ;;  %7275 = vmatpush3.bf16.msra.mxu1 %v7578_v33 }
 0x7ac   :  { %v5777_v54 = vadd.f32 %v5776_v23, %v5772_v48 }
 0x7ae   :  { %v5779_v37 = vrot.slane %v5777_v54, 2 }
 0x7b0   :  { %v9122_v63 = vsel %vm2604_vm14, %v5779_v37, %v9044_v24  ;;  %v5782_v51 = vsel %vm2604_vm14, %v5779_v37, 0.0 }
 0x7b1   :  { %5784 = vst [vmem:[#allocation8 + $0x12] sm:$0x3] %v5782_v51  ;;  %v6072_v0 = vpack.c.bf16 %v9122_v63, %v9122_v63 }
 0x7b3   :  { %6266 = vmatmul.mubr.bf16.vlgmr.msra.gmra.mxu0 %v6072_v0  ;;  %7277 = vmatmul.mubr.bf16.vlgmr.msra.gmra.mxu1 %v6072_v0 }
 0x84e   :  { %v5980_v11 = vpop.f32.mrf.mxu0  ;;  %v6021_v45 = vpop.f32.mrf.mxu1 }
 0x84f   :  { %v6030_v9 = vrot.slane %v5980_v11, 2  ;;  %v6054_v60 = vadd.f32 %v8996_v50, %v6021_v45 }
 0x850   :  { %v5982_v27 = vpop.f32.mrf.mxu0  ;;  %v7258_v13 = vpop.f32.mrf.mxu1 }
 0x851   :  { %v6034_v18 = vadd.f32 %v6030_v9, %v8323_v31  ;;  %v6031_v2 = vrot.slane %v5982_v27, 2  ;;  %v6056_v53 = vrot.slane %v6054_v60, 2 }
 0x852   :  { %v5984_v35 = vpop.f32.mrf.mxu0  ;;  %v6024_v16 = vpop.f32.mrf.mxu1 }
 0x853   :  { %v6785_v24 = vmul.f32 -1.442695, %v6034_v18  ;;  %v6035_v46 = vadd.f32 %v6031_v2, %v8328_v19 }
 0x854   :  { %v5985_v62 = vpop.f32.mrf.mxu0  ;;  %v7259_v10 = vpop.f32.mrf.mxu1 }
 0x855   :  { %7719 = vpow2.f32 %v6785_v24  ;;  %v6786_v26 = vmul.f32 -1.442695, %v6035_v46 }
 0x857   :  { %7721 = vpow2.f32 %v6786_v26 }
 0x862   :  { %v7720_v61 = vpop.eup %7719 }
 0x863   :  { %v6042_v38 = vadd.f32 1.0, %v7720_v61 }
 0x864   :  { %v7722_v14 = vpop.eup %7721 }
 0x865   :  { %7723 = vrcp.f32 %v6042_v38  ;;  %v6043_v59 = vadd.f32 1.0, %v7722_v14 }
 0x867   :  { %7725 = vrcp.f32 %v6043_v59 }
 0x872   :  { %v7724_v31 = vpop.eup %7723 }
 0x873   :  { %v6058_v29 = vmul.f32 %v7724_v31, %v6056_v53  ;;  %v6267_v1 = vpop.f32.mrf.mxu0  ;;  %v6308_v57 = vpop.f32.mrf.mxu1 }
 0x874   :  { %v6315_v4 = vadd.f32 %v6267_v1, %v8346_v44  ;;  %v7726_v55 = vpop.eup %7725  ;;  %v6335_v33 = vadd.f32 %v9089_v8, %v6308_v57 }
 0x875   :  { %v6059_v6 = vadd.f32 %v6058_v29, %v8353_v49  ;;  %v6269_v19 = vpop.f32.mrf.mxu0  ;;  %v7278_v30 = vpop.f32.mrf.mxu1  ;;  %v6061_v12 = vsub.f32 1.0, %v7726_v55  ;;  %v6066_v21 = vmul.f32 %v7726_v55, %v6064_v3 }
 0x876   :  { %v6813_v58 = vmul.f32 -1.442695, %v6315_v4  ;;  %v6316_v47 = vadd.f32 %v6269_v19, %v8370_v28 }
 0x877   :  { %7727 = vtanh.f32 %v6059_v6  ;;  %v6271_v32 = vpop.f32.mrf.mxu0  ;;  %v6311_v20 = vpop.f32.mrf.mxu1 }
 0x878   :  { %7729 = vpow2.f32 %v6813_v58  ;;  %v6814_v39 = vmul.f32 -1.442695, %v6316_v47 }
 0x879   :  { %v6272_v5 = vpop.f32.mrf.mxu0  ;;  %v7279_v50 = vpop.f32.mrf.mxu1 }
 0x87a   :  { %7731 = vpow2.f32 %v6814_v39 }
 0x884   :  { %v7728_v44 = vpop.eup %7727 }
 0x885   :  { %v7730_v40 = vpop.eup %7729  ;;  %v6062_v49 = vmul.f32 %v7728_v44, %v6061_v12 }
 0x886   :  { %v6323_v15 = vadd.f32 1.0, %v7730_v40 }
 0x887   :  { %v6067_v7 = vadd.f32 %v6066_v21, %v6062_v49  ;;  %v7732_v52 = vpop.eup %7731 }
 0x888   :  { %7733 = vrcp.f32 %v6323_v15  ;;  %v6324_v28 = vadd.f32 1.0, %v7732_v52 }
 0x889   :  { %v6069_v17 = vrot.slane %v6067_v7, 6 }
 0x88a   :  { %7735 = vrcp.f32 %v6324_v28 }
 0x88b   :  { %v6071_v22 = vsel %vm2309_vm12, %v6069_v17, 0.0 }
 0x88c   :  { %6344 = vst [vmem:[#allocation8 + $0xe] sm:$0x3] %v6071_v22 }
 0x895   :  { %v7734_v43 = vpop.eup %7733 }
 0x896   :  { %v6336_v56 = vmul.f32 %v7734_v43, %v6335_v33 }
 0x897   :  { %v7736_v34 = vpop.eup %7735 }
 0x898   :  { %v6337_v25 = vadd.f32 %v6336_v56, %v8374_v36  ;;  %v6339_v48 = vsub.f32 1.0, %v7736_v34  ;;  %v6341_v37 = vmul.f32 %v7736_v34, %v9122_v63 }
 0x89a   :  { %7737 = vtanh.f32 %v6337_v25 }
 0x8a7   :  { %v7738_v23 = vpop.eup %7737 }
 0x8a8   :  { %v6340_v54 = vmul.f32 %v7738_v23, %v6339_v48 }
 0x8aa   :  { %v6342_v41 = vadd.f32 %v6341_v37, %v6340_v54 }
 0x8ac   :  { %v6343_v51 = vsel %vm2022_vm10, %v6342_v41, 0.0 }
 0x8ad   :  { %6345 = vst [vmem:[#allocation8 + $0x10] sm:$0x3] %v6343_v51 }
 0x8ae   :  { %7810 = shalt.err (!%p7807_p5)
}
 0x8af   :  { %6357 = dma.vmem_to_hbm [thread:$0]  %s6352_s29, 512, %s9154_s6, [#allocation4], %s7829_s7, %s7829_s7, %s7830_s8  }
 0x8b0   :  { %7823 = dma.done.wait [#allocation4], 512  }
 0x8b1   :  { %7824 = vsyncadd [#allocation4], 4294966784 }
 0x8b2   :  { %6361 = vsyncpa [#allocation3], 1 }
 0x8b3   :  { %6362 = vsyncpa [#allocation6], 1 }
 0x8b4   :  { %6363 = vsyncpa [#allocation4], 1 }

</bundles_post_ra>
